<compile_context>
chip_gen: v7x
topology: tpu7x:2x2x1
jax: 0.10.0
libtpu: 0.0.40
codegen_flags: <defaults>
</compile_context>

<pallas_src>
import functools

import numpy as np

import jax
import jax.numpy as jnp
from jax.experimental import pallas as pl
from jax.experimental.pallas import tpu as pltpu


_TB_CAP = 256            # batch-tile cap: safe for all generations (v7x 64 MiB VMEM)
_VMEM_LIMIT = 48 << 20   # raised scoped-VMEM budget, headroom under v7x physical VMEM


# ----------------------------------------------------------------------------
# The single fused Pallas kernel
# ----------------------------------------------------------------------------
def _fused_kernel(x_ref, b1_ref, b1v_ref, s1e_ref,
                  b2_ref, b2v_ref, s2e_ref, s2o_ref,
                  w1_ref, f1b_ref, w2_ref, f2b_ref, out_ref, *, tb):
    f32 = jnp.float32

    # x block: (28, tb, 28)  [image row, batch, image col] -> rows = h*tb + b
    x2 = x_ref[...].reshape(28 * tb, 28)

    # ---- conv1 (1 -> 5, k=5): 5 banded matmuls, one per kernel row dy -------
    # acc1 rows = i*tb + b (i in [0,24)), cols = c*24 + j, zero-padded to 128.
    acc1 = jnp.dot(x2[0:24 * tb, :], b1_ref[0], preferred_element_type=f32)
    for dy in range(1, 5):
        acc1 = acc1 + jnp.dot(x2[dy * tb:(dy + 24) * tb, :], b1_ref[dy],
                              preferred_element_type=f32)
    acc1 = acc1 + b1v_ref[...]                        # (1, 128) bias broadcast

    # ---- 2x2 max-pool + relu -------------------------------------------------
    a = acc1.reshape(12, 2, tb, 128)                  # pair conv rows (sublane only)
    hmax = jnp.maximum(a[:, 0], a[:, 1]).reshape(12 * tb, 128)
    # Column-pair max via a native 128-wide lane rotate on the XLU:
    # shift = 127 == -1 (np.roll semantics), so lane i sees lane i+1; the
    # wrap (lane 127 -> 0) only touches the zero-padded columns, which the
    # even-column selector never reads.
    hm = jnp.maximum(hmax, pltpu.roll(hmax, shift=127, axis=1))
    p1 = jnp.maximum(jnp.dot(hm, s1e_ref[...], preferred_element_type=f32), 0.0)
    # p1: (12*tb, 60), cols = c*12 + j

    # ---- conv2 (5 -> 8, k=5): 5 matmuls of K=60 (channel-stacked banded W) ---
    acc2 = jnp.dot(p1[0:8 * tb, :], b2_ref[0], preferred_element_type=f32)
    for dy in range(1, 5):
        acc2 = acc2 + jnp.dot(p1[dy * tb:(dy + 8) * tb, :], b2_ref[dy],
                              preferred_element_type=f32)
    acc2 = acc2 + b2v_ref[...]                        # (8*tb, 64): cols = o*8 + j

    # ---- 2x2 max-pool + relu (tiny selector matmuls) --------------------------
    a2 = acc2.reshape(4, 2, tb, 64)
    hmax2 = jnp.maximum(a2[:, 0], a2[:, 1]).reshape(4 * tb, 64)
    z = jnp.maximum(
        jnp.maximum(jnp.dot(hmax2, s2e_ref[...], preferred_element_type=f32),
                    jnp.dot(hmax2, s2o_ref[...], preferred_element_type=f32)),
        0.0)                                          # (4*tb, 32): cols = o*4 + j

    # ---- fc1 (128 -> 20) + relu: flatten order folded into w1 row order ------
    h = jnp.dot(z[0:tb, :], w1_ref[0:32, :], preferred_element_type=f32)
    for i in range(1, 4):
        h = h + jnp.dot(z[i * tb:(i + 1) * tb, :], w1_ref[i * 32:(i + 1) * 32, :],
                        preferred_element_type=f32)
    h = jnp.maximum(h + f1b_ref[...], 0.0)            # (tb, 20)

    # ---- fc2 (20 -> latent_dim), output lanes padded to 128 -------------------
    out = jnp.dot(h, w2_ref[...], preferred_element_type=f32) + f2b_ref[...]
    out_ref[...] = out.astype(out_ref.dtype)


# ----------------------------------------------------------------------------
# Wrapper: one pallas_call, batch-tiled, weights resident in VMEM
# ----------------------------------------------------------------------------
def mnist_small_net_forward(x_nchw, params, tb=None):
    B, C, H, W = x_nchw.shape
    assert (C, H, W) == (1, 28, 28), "MNIST_small_net expects (B, 1, 28, 28)"
    L = params["latent_dim"]

    # Adaptive batch tile: big enough to amortize per-step overhead and feed
    # the MXU, but never (much) larger than the actual batch.
    if tb is None:
        tb = min(_TB_CAP, ((B + 31) // 32) * 32)
    tb = max(32, ((tb + 31) // 32) * 32)              # keep all reshapes trivial

    Bp = ((B + tb - 1) // tb) * tb
    # (B,1,28,28) -> (28, B, 28): row-major in H, batch on the sublane dim.
    xt = jnp.transpose(x_nchw[:, 0, :, :].astype(jnp.float32), (1, 0, 2))
    if Bp != B:
        xt = jnp.pad(xt, ((0, 0), (0, Bp - B), (0, 0)))

    def const_spec(shape):
        n = len(shape)
        return pl.BlockSpec(shape, lambda g, _n=n: (0,) * _n)

    out = pl.pallas_call(
        functools.partial(_fused_kernel, tb=tb),
        out_shape=jax.ShapeDtypeStruct((Bp, 128), jnp.float32),
        grid=(Bp // tb,),
        in_specs=[
            pl.BlockSpec((28, tb, 28), lambda g: (0, g, 0)),   # input tile
            const_spec((5, 28, 128)),    # conv1 banded weights (cols padded to 128)
            const_spec((1, 128)),        # conv1 bias (expanded, padded)
            const_spec((128, 60)),       # pool1 even-column selector
            const_spec((5, 60, 64)),     # conv2 banded weights (channel-stacked)
            const_spec((1, 64)),         # conv2 bias (expanded)
            const_spec((64, 32)),        # pool2 even-column selector
            const_spec((64, 32)),        # pool2 odd-column selector
            const_spec((128, 20)),       # fc1 weight (rows permuted for flatten)
            const_spec((1, 20)),         # fc1 bias
            const_spec((20, 128)),       # fc2 weight (cols padded to 128)
            const_spec((1, 128)),        # fc2 bias (padded)
        ],
        out_specs=pl.BlockSpec((tb, 128), lambda g: (g, 0)),
        compiler_params=pltpu.CompilerParams(
            dimension_semantics=("parallel",),
            vmem_limit_bytes=_VMEM_LIMIT),
    )(xt, params["B1"], params["b1v"], params["S1e"],
      params["B2"], params["b2v"], params["S2e"], params["S2o"],
      params["W1"], params["f1b"], params["W2"], params["f2b"])
    return out[:B, :L]


# ----------------------------------------------------------------------------
# Host-side weight preparation (from PyTorch-layout weights)
# ----------------------------------------------------------------------------
def prepare_kernel_params(tw):
    c1w = np.asarray(tw["c1w"], np.float32)   # (5, 1, 5, 5)
    c1b = np.asarray(tw["c1b"], np.float32)
    c2w = np.asarray(tw["c2w"], np.float32)   # (8, 5, 5, 5)
    c2b = np.asarray(tw["c2b"], np.float32)
    f1w = np.asarray(tw["f1w"], np.float32)   # (20, 128)
    f1b = np.asarray(tw["f1b"], np.float32)
    f2w = np.asarray(tw["f2w"], np.float32)   # (L, 20)
    f2b = np.asarray(tw["f2b"], np.float32)
    L = f2w.shape[0]

    # conv1 banded matrices, output lanes padded 120 -> 128:
    #   B1[dy, w, c*24 + j] = c1w[c, 0, dy, w - j]
    B1 = np.zeros((5, 28, 128), np.float32)
    for dy in range(5):
        for c in range(5):
            for j in range(24):
                for dx in range(5):
                    B1[dy, j + dx, c * 24 + j] = c1w[c, 0, dy, dx]
    b1v = np.zeros((1, 128), np.float32)
    b1v[0, :120] = np.repeat(c1b, 24)

    # pool1 even-column selector (rows 120..127 are the zero pad):
    S1e = np.zeros((128, 60), np.float32)
    for c in range(5):
        for j in range(12):
            S1e[c * 24 + 2 * j, c * 12 + j] = 1.0

    # conv2 banded matrices, stacked over input channels (K = 60 per dy):
    #   B2[dy, ci*12 + j, o*8 + jo] = c2w[o, ci, dy, j - jo]
    B2 = np.zeros((5, 60, 64), np.float32)
    for dy in range(5):
        for ci in range(5):
            for o in range(8):
                for jo in range(8):
                    for dx in range(5):
                        B2[dy, ci * 12 + jo + dx, o * 8 + jo] = c2w[o, ci, dy, dx]
    b2v = np.repeat(c2b, 8)[None, :]                          # (1, 64)

    # pool2 even/odd-column selectors:
    S2e = np.zeros((64, 32), np.float32)
    S2o = np.zeros((64, 32), np.float32)
    for o in range(8):
        for j in range(4):
            S2e[o * 8 + 2 * j, o * 4 + j] = 1.0
            S2o[o * 8 + 2 * j + 1, o * 4 + j] = 1.0

    # fc1 weight with the PyTorch NCHW flatten (f = o*16 + i*4 + j) folded in:
    # kernel row order is i*32 + o*4 + j.
    W1 = np.zeros((128, 20), np.float32)
    for i in range(4):
        for o in range(8):
            for j in range(4):
                W1[i * 32 + o * 4 + j, :] = f1w[:, o * 16 + i * 4 + j]

    # fc2 weight/bias padded to 128 output lanes (lane-dense store).
    W2 = np.zeros((20, 128), np.float32)
    W2[:, :L] = f2w.T
    f2bp = np.zeros((1, 128), np.float32)
    f2bp[0, :L] = f2b

    as_j = lambda a: jnp.asarray(a, jnp.float32)
    return dict(B1=as_j(B1), b1v=as_j(b1v), S1e=as_j(S1e),
                B2=as_j(B2), b2v=as_j(b2v), S2e=as_j(S2e), S2o=as_j(S2o),
                W1=as_j(W1), f1b=as_j(f1b[None, :]),
                W2=as_j(W2), f2b=as_j(f2bp), latent_dim=L)


# ----------------------------------------------------------------------------
# Deterministic PyTorch-layout parameter init + pure-JAX reference
# ----------------------------------------------------------------------------
def init_torch_params(latent_dim, key):
    ks = jax.random.split(key, 8)

    def uni(k, shape, fan_in):
        b = 1.0 / float(np.sqrt(fan_in))
        return jax.random.uniform(k, shape, jnp.float32, -b, b)

    return dict(
        c1w=uni(ks[0], (5, 1, 5, 5), 25), c1b=uni(ks[1], (5,), 25),
        c2w=uni(ks[2], (8, 5, 5, 5), 125), c2b=uni(ks[3], (8,), 125),
        f1w=uni(ks[4], (20, 128), 128), f1b=uni(ks[5], (20,), 128),
        f2w=uni(ks[6], (latent_dim, 20), 20), f2b=uni(ks[7], (latent_dim,), 20))


def _maxpool2(y):
    b, c, h, w = y.shape
    return y.reshape(b, c, h // 2, 2, w // 2, 2).max(axis=(3, 5))


def reference_forward(x, tw):
    hp = jax.lax.Precision.HIGHEST
    dn = ("NCHW", "OIHW", "NCHW")
    y = jax.lax.conv_general_dilated(x, tw["c1w"], (1, 1), "VALID",
                                     dimension_numbers=dn, precision=hp)
    y = jnp.maximum(_maxpool2(y + tw["c1b"][None, :, None, None]), 0.0)
    y = jax.lax.conv_general_dilated(y, tw["c2w"], (1, 1), "VALID",
                                     dimension_numbers=dn, precision=hp)
    y = jnp.maximum(_maxpool2(y + tw["c2b"][None, :, None, None]), 0.0)
    y = y.reshape(y.shape[0], -1)                      # PyTorch view(-1, 128)
    y = jnp.maximum(jnp.dot(y, tw["f1w"].T, precision=hp) + tw["f1b"], 0.0)
    return jnp.dot(y, tw["f2w"].T, precision=hp) + tw["f2b"]   # no softmax


# ----------------------------------------------------------------------------
if __name__ == "__main__":
    latent_dim = 10
    key = jax.random.PRNGKey(0)
    k_param, k_x = jax.random.split(key)

    torch_params = init_torch_params(latent_dim, k_param)
    kparams = prepare_kernel_params(torch_params)

    x = jax.random.normal(k_x, (2, 1, 28, 28), dtype=jnp.float32)

    fwd = jax.jit(lambda xx: mnist_small_net_forward(xx, kparams))
    out = fwd(x)
    jax.block_until_ready(out)
    assert out.shape == (2, latent_dim)

    ref = reference_forward(x, torch_params)
    err = float(jnp.max(jnp.abs(out - ref)))
    # fp32 path typically matches to ~1e-5; tolerance keeps margin for MXU
    # f32 multi-pass precision differences across TPU generations (5x tighter
    # than the previous 5e-2 check, against a HIGHEST-precision reference).
    assert jnp.allclose(out, ref, atol=1e-2, rtol=1e-2), f"max abs err {err}"

    print("KERNEL_OK")
</pallas_src>

<mosaic_0001>
module attributes {stable_mosaic.version = 11 : i64} {
  func.func @_fused_kernel(%arg0: i32, %arg1: memref<28x32x28xf32, #tpu.memory_space<vmem>>, %arg2: memref<5x28x128xf32, #tpu.memory_space<vmem>>, %arg3: memref<1x128xf32, #tpu.memory_space<vmem>>, %arg4: memref<128x60xf32, #tpu.memory_space<vmem>>, %arg5: memref<5x60x64xf32, #tpu.memory_space<vmem>>, %arg6: memref<1x64xf32, #tpu.memory_space<vmem>>, %arg7: memref<64x32xf32, #tpu.memory_space<vmem>>, %arg8: memref<64x32xf32, #tpu.memory_space<vmem>>, %arg9: memref<128x20xf32, #tpu.memory_space<vmem>>, %arg10: memref<1x20xf32, #tpu.memory_space<vmem>>, %arg11: memref<20x128xf32, #tpu.memory_space<vmem>>, %arg12: memref<1x128xf32, #tpu.memory_space<vmem>>, %arg13: memref<32x128xf32, #tpu.memory_space<vmem>>) attributes {dimension_semantics = [#tpu.dimension_semantics<parallel>], iteration_bounds = array<i64: 1>, scalar_prefetch = 0 : i64, scratch_operands = 0 : i64, tpu.core_type = #tpu.core_type<tc>, window_params = [{transform_indices = @transform_0, window_bounds = array<i64: 28, 32, 28>}, {pipeline_mode = #tpu.pipeline_mode<synchronous>, transform_indices = @transform_1, window_bounds = array<i64: 5, 28, 128>}, {pipeline_mode = #tpu.pipeline_mode<synchronous>, transform_indices = @transform_2, window_bounds = array<i64: 1, 128>}, {pipeline_mode = #tpu.pipeline_mode<synchronous>, transform_indices = @transform_3, window_bounds = array<i64: 128, 60>}, {pipeline_mode = #tpu.pipeline_mode<synchronous>, transform_indices = @transform_4, window_bounds = array<i64: 5, 60, 64>}, {pipeline_mode = #tpu.pipeline_mode<synchronous>, transform_indices = @transform_5, window_bounds = array<i64: 1, 64>}, {pipeline_mode = #tpu.pipeline_mode<synchronous>, transform_indices = @transform_6, window_bounds = array<i64: 64, 32>}, {pipeline_mode = #tpu.pipeline_mode<synchronous>, transform_indices = @transform_7, window_bounds = array<i64: 64, 32>}, {pipeline_mode = #tpu.pipeline_mode<synchronous>, transform_indices = @transform_8, window_bounds = array<i64: 128, 20>}, {pipeline_mode = #tpu.pipeline_mode<synchronous>, transform_indices = @transform_9, window_bounds = array<i64: 1, 20>}, {pipeline_mode = #tpu.pipeline_mode<synchronous>, transform_indices = @transform_10, window_bounds = array<i64: 20, 128>}, {pipeline_mode = #tpu.pipeline_mode<synchronous>, transform_indices = @transform_11, window_bounds = array<i64: 1, 128>}, {transform_indices = @transform_12, window_bounds = array<i64: 32, 128>}]} {
    %c0 = arith.constant 0 : index
    %c0_0 = arith.constant 0 : index
    %c0_1 = arith.constant 0 : index
    %0 = vector.load %arg1[%c0, %c0_0, %c0_1] : memref<28x32x28xf32, #tpu.memory_space<vmem>>, vector<28x32x28xf32>
    %1 = vector.shape_cast %0 : vector<28x32x28xf32> to vector<896x28xf32>
    %2 = vector.extract_strided_slice %1 {offsets = [0, 0], sizes = [768, 28], strides = [1, 1]} : vector<896x28xf32> to vector<768x28xf32>
    %c0_2 = arith.constant 0 : index
    %c0_3 = arith.constant 0 : index
    %c0_4 = arith.constant 0 : index
    %3 = vector.load %arg2[%c0_2, %c0_3, %c0_4] : memref<5x28x128xf32, #tpu.memory_space<vmem>>, vector<1x28x128xf32>
    %4 = vector.shape_cast %3 : vector<1x28x128xf32> to vector<28x128xf32>
    %cst = arith.constant dense<0.000000e+00> : vector<768x128xf32>
    %5 = tpu.matmul %2, %4, %cst {dimension_numbers = #tpu.dot_dimension_numbers<[1], [0], [0], [1], [0, 0, 1, 1], [], []>} : vector<768x28xf32>, vector<28x128xf32>, vector<768x128xf32> -> vector<768x128xf32>
    %6 = vector.extract_strided_slice %1 {offsets = [32, 0], sizes = [768, 28], strides = [1, 1]} : vector<896x28xf32> to vector<768x28xf32>
    %c1 = arith.constant 1 : index
    %c0_5 = arith.constant 0 : index
    %c0_6 = arith.constant 0 : index
    %7 = vector.load %arg2[%c1, %c0_5, %c0_6] : memref<5x28x128xf32, #tpu.memory_space<vmem>>, vector<1x28x128xf32>
    %8 = vector.shape_cast %7 : vector<1x28x128xf32> to vector<28x128xf32>
    %cst_7 = arith.constant dense<0.000000e+00> : vector<768x128xf32>
    %9 = tpu.matmul %6, %8, %cst_7 {dimension_numbers = #tpu.dot_dimension_numbers<[1], [0], [0], [1], [0, 0, 1, 1], [], []>} : vector<768x28xf32>, vector<28x128xf32>, vector<768x128xf32> -> vector<768x128xf32>
    %10 = arith.addf %5, %9 : vector<768x128xf32>
    %11 = vector.extract_strided_slice %1 {offsets = [64, 0], sizes = [768, 28], strides = [1, 1]} : vector<896x28xf32> to vector<768x28xf32>
    %c2 = arith.constant 2 : index
    %c0_8 = arith.constant 0 : index
    %c0_9 = arith.constant 0 : index
    %12 = vector.load %arg2[%c2, %c0_8, %c0_9] : memref<5x28x128xf32, #tpu.memory_space<vmem>>, vector<1x28x128xf32>
    %13 = vector.shape_cast %12 : vector<1x28x128xf32> to vector<28x128xf32>
    %cst_10 = arith.constant dense<0.000000e+00> : vector<768x128xf32>
    %14 = tpu.matmul %11, %13, %cst_10 {dimension_numbers = #tpu.dot_dimension_numbers<[1], [0], [0], [1], [0, 0, 1, 1], [], []>} : vector<768x28xf32>, vector<28x128xf32>, vector<768x128xf32> -> vector<768x128xf32>
    %15 = arith.addf %10, %14 : vector<768x128xf32>
    %16 = vector.extract_strided_slice %1 {offsets = [96, 0], sizes = [768, 28], strides = [1, 1]} : vector<896x28xf32> to vector<768x28xf32>
    %c3 = arith.constant 3 : index
    %c0_11 = arith.constant 0 : index
    %c0_12 = arith.constant 0 : index
    %17 = vector.load %arg2[%c3, %c0_11, %c0_12] : memref<5x28x128xf32, #tpu.memory_space<vmem>>, vector<1x28x128xf32>
    %18 = vector.shape_cast %17 : vector<1x28x128xf32> to vector<28x128xf32>
    %cst_13 = arith.constant dense<0.000000e+00> : vector<768x128xf32>
    %19 = tpu.matmul %16, %18, %cst_13 {dimension_numbers = #tpu.dot_dimension_numbers<[1], [0], [0], [1], [0, 0, 1, 1], [], []>} : vector<768x28xf32>, vector<28x128xf32>, vector<768x128xf32> -> vector<768x128xf32>
    %20 = arith.addf %15, %19 : vector<768x128xf32>
    %21 = vector.extract_strided_slice %1 {offsets = [128, 0], sizes = [768, 28], strides = [1, 1]} : vector<896x28xf32> to vector<768x28xf32>
    %c4 = arith.constant 4 : index
    %c0_14 = arith.constant 0 : index
    %c0_15 = arith.constant 0 : index
    %22 = vector.load %arg2[%c4, %c0_14, %c0_15] : memref<5x28x128xf32, #tpu.memory_space<vmem>>, vector<1x28x128xf32>
    %23 = vector.shape_cast %22 : vector<1x28x128xf32> to vector<28x128xf32>
    %cst_16 = arith.constant dense<0.000000e+00> : vector<768x128xf32>
    %24 = tpu.matmul %21, %23, %cst_16 {dimension_numbers = #tpu.dot_dimension_numbers<[1], [0], [0], [1], [0, 0, 1, 1], [], []>} : vector<768x28xf32>, vector<28x128xf32>, vector<768x128xf32> -> vector<768x128xf32>
    %25 = arith.addf %20, %24 : vector<768x128xf32>
    %c0_17 = arith.constant 0 : index
    %c0_18 = arith.constant 0 : index
    %26 = vector.load %arg3[%c0_17, %c0_18] : memref<1x128xf32, #tpu.memory_space<vmem>>, vector<1x128xf32>
    %27 = vector.broadcast %26 : vector<1x128xf32> to vector<768x128xf32>
    %28 = arith.addf %25, %27 : vector<768x128xf32>
    %29 = vector.shape_cast %28 : vector<768x128xf32> to vector<12x2x32x128xf32>
    %30 = vector.extract_strided_slice %29 {offsets = [0, 0, 0, 0], sizes = [12, 1, 32, 128], strides = [1, 1, 1, 1]} : vector<12x2x32x128xf32> to vector<12x1x32x128xf32>
    %31 = vector.shape_cast %30 : vector<12x1x32x128xf32> to vector<12x32x128xf32>
    %32 = vector.extract_strided_slice %29 {offsets = [0, 1, 0, 0], sizes = [12, 1, 32, 128], strides = [1, 1, 1, 1]} : vector<12x2x32x128xf32> to vector<12x1x32x128xf32>
    %33 = vector.shape_cast %32 : vector<12x1x32x128xf32> to vector<12x32x128xf32>
    %34 = arith.maximumf %31, %33 : vector<12x32x128xf32>
    %35 = vector.shape_cast %34 : vector<12x32x128xf32> to vector<384x128xf32>
    %c127_i32 = arith.constant 127 : i32
    %36 = tpu.dynamic_rotate %35 by %c127_i32 dim 1 : vector<384x128xf32>, i32 -> vector<384x128xf32>
    %37 = arith.maximumf %35, %36 : vector<384x128xf32>
    %c0_19 = arith.constant 0 : index
    %c0_20 = arith.constant 0 : index
    %38 = vector.load %arg4[%c0_19, %c0_20] : memref<128x60xf32, #tpu.memory_space<vmem>>, vector<128x60xf32>
    %cst_21 = arith.constant dense<0.000000e+00> : vector<384x60xf32>
    %39 = tpu.matmul %37, %38, %cst_21 {dimension_numbers = #tpu.dot_dimension_numbers<[1], [0], [0], [1], [0, 0, 1, 1], [], []>} : vector<384x128xf32>, vector<128x60xf32>, vector<384x60xf32> -> vector<384x60xf32>
    %cst_22 = arith.constant 0.000000e+00 : f32
    %40 = vector.broadcast %cst_22 : f32 to vector<384x60xf32>
    %41 = arith.maximumf %39, %40 : vector<384x60xf32>
    %42 = vector.extract_strided_slice %41 {offsets = [0, 0], sizes = [256, 60], strides = [1, 1]} : vector<384x60xf32> to vector<256x60xf32>
    %c0_23 = arith.constant 0 : index
    %c0_24 = arith.constant 0 : index
    %c0_25 = arith.constant 0 : index
    %43 = vector.load %arg5[%c0_23, %c0_24, %c0_25] : memref<5x60x64xf32, #tpu.memory_space<vmem>>, vector<1x60x64xf32>
    %44 = vector.shape_cast %43 : vector<1x60x64xf32> to vector<60x64xf32>
    %cst_26 = arith.constant dense<0.000000e+00> : vector<256x64xf32>
    %45 = tpu.matmul %42, %44, %cst_26 {dimension_numbers = #tpu.dot_dimension_numbers<[1], [0], [0], [1], [0, 0, 1, 1], [], []>} : vector<256x60xf32>, vector<60x64xf32>, vector<256x64xf32> -> vector<256x64xf32>
    %46 = vector.extract_strided_slice %41 {offsets = [32, 0], sizes = [256, 60], strides = [1, 1]} : vector<384x60xf32> to vector<256x60xf32>
    %c1_27 = arith.constant 1 : index
    %c0_28 = arith.constant 0 : index
    %c0_29 = arith.constant 0 : index
    %47 = vector.load %arg5[%c1_27, %c0_28, %c0_29] : memref<5x60x64xf32, #tpu.memory_space<vmem>>, vector<1x60x64xf32>
    %48 = vector.shape_cast %47 : vector<1x60x64xf32> to vector<60x64xf32>
    %cst_30 = arith.constant dense<0.000000e+00> : vector<256x64xf32>
    %49 = tpu.matmul %46, %48, %cst_30 {dimension_numbers = #tpu.dot_dimension_numbers<[1], [0], [0], [1], [0, 0, 1, 1], [], []>} : vector<256x60xf32>, vector<60x64xf32>, vector<256x64xf32> -> vector<256x64xf32>
    %50 = arith.addf %45, %49 : vector<256x64xf32>
    %51 = vector.extract_strided_slice %41 {offsets = [64, 0], sizes = [256, 60], strides = [1, 1]} : vector<384x60xf32> to vector<256x60xf32>
    %c2_31 = arith.constant 2 : index
    %c0_32 = arith.constant 0 : index
    %c0_33 = arith.constant 0 : index
    %52 = vector.load %arg5[%c2_31, %c0_32, %c0_33] : memref<5x60x64xf32, #tpu.memory_space<vmem>>, vector<1x60x64xf32>
    %53 = vector.shape_cast %52 : vector<1x60x64xf32> to vector<60x64xf32>
    %cst_34 = arith.constant dense<0.000000e+00> : vector<256x64xf32>
    %54 = tpu.matmul %51, %53, %cst_34 {dimension_numbers = #tpu.dot_dimension_numbers<[1], [0], [0], [1], [0, 0, 1, 1], [], []>} : vector<256x60xf32>, vector<60x64xf32>, vector<256x64xf32> -> vector<256x64xf32>
    %55 = arith.addf %50, %54 : vector<256x64xf32>
    %56 = vector.extract_strided_slice %41 {offsets = [96, 0], sizes = [256, 60], strides = [1, 1]} : vector<384x60xf32> to vector<256x60xf32>
    %c3_35 = arith.constant 3 : index
    %c0_36 = arith.constant 0 : index
    %c0_37 = arith.constant 0 : index
    %57 = vector.load %arg5[%c3_35, %c0_36, %c0_37] : memref<5x60x64xf32, #tpu.memory_space<vmem>>, vector<1x60x64xf32>
    %58 = vector.shape_cast %57 : vector<1x60x64xf32> to vector<60x64xf32>
    %cst_38 = arith.constant dense<0.000000e+00> : vector<256x64xf32>
    %59 = tpu.matmul %56, %58, %cst_38 {dimension_numbers = #tpu.dot_dimension_numbers<[1], [0], [0], [1], [0, 0, 1, 1], [], []>} : vector<256x60xf32>, vector<60x64xf32>, vector<256x64xf32> -> vector<256x64xf32>
    %60 = arith.addf %55, %59 : vector<256x64xf32>
    %61 = vector.extract_strided_slice %41 {offsets = [128, 0], sizes = [256, 60], strides = [1, 1]} : vector<384x60xf32> to vector<256x60xf32>
    %c4_39 = arith.constant 4 : index
    %c0_40 = arith.constant 0 : index
    %c0_41 = arith.constant 0 : index
    %62 = vector.load %arg5[%c4_39, %c0_40, %c0_41] : memref<5x60x64xf32, #tpu.memory_space<vmem>>, vector<1x60x64xf32>
    %63 = vector.shape_cast %62 : vector<1x60x64xf32> to vector<60x64xf32>
    %cst_42 = arith.constant dense<0.000000e+00> : vector<256x64xf32>
    %64 = tpu.matmul %61, %63, %cst_42 {dimension_numbers = #tpu.dot_dimension_numbers<[1], [0], [0], [1], [0, 0, 1, 1], [], []>} : vector<256x60xf32>, vector<60x64xf32>, vector<256x64xf32> -> vector<256x64xf32>
    %65 = arith.addf %60, %64 : vector<256x64xf32>
    %c0_43 = arith.constant 0 : index
    %c0_44 = arith.constant 0 : index
    %66 = vector.load %arg6[%c0_43, %c0_44] : memref<1x64xf32, #tpu.memory_space<vmem>>, vector<1x64xf32>
    %67 = vector.broadcast %66 : vector<1x64xf32> to vector<256x64xf32>
    %68 = arith.addf %65, %67 : vector<256x64xf32>
    %69 = vector.shape_cast %68 : vector<256x64xf32> to vector<4x2x32x64xf32>
    %70 = vector.extract_strided_slice %69 {offsets = [0, 0, 0, 0], sizes = [4, 1, 32, 64], strides = [1, 1, 1, 1]} : vector<4x2x32x64xf32> to vector<4x1x32x64xf32>
    %71 = vector.shape_cast %70 : vector<4x1x32x64xf32> to vector<4x32x64xf32>
    %72 = vector.extract_strided_slice %69 {offsets = [0, 1, 0, 0], sizes = [4, 1, 32, 64], strides = [1, 1, 1, 1]} : vector<4x2x32x64xf32> to vector<4x1x32x64xf32>
    %73 = vector.shape_cast %72 : vector<4x1x32x64xf32> to vector<4x32x64xf32>
    %74 = arith.maximumf %71, %73 : vector<4x32x64xf32>
    %75 = vector.shape_cast %74 : vector<4x32x64xf32> to vector<128x64xf32>
    %c0_45 = arith.constant 0 : index
    %c0_46 = arith.constant 0 : index
    %76 = vector.load %arg7[%c0_45, %c0_46] : memref<64x32xf32, #tpu.memory_space<vmem>>, vector<64x32xf32>
    %cst_47 = arith.constant dense<0.000000e+00> : vector<128x32xf32>
    %77 = tpu.matmul %75, %76, %cst_47 {dimension_numbers = #tpu.dot_dimension_numbers<[1], [0], [0], [1], [0, 0, 1, 1], [], []>} : vector<128x64xf32>, vector<64x32xf32>, vector<128x32xf32> -> vector<128x32xf32>
    %c0_48 = arith.constant 0 : index
    %c0_49 = arith.constant 0 : index
    %78 = vector.load %arg8[%c0_48, %c0_49] : memref<64x32xf32, #tpu.memory_space<vmem>>, vector<64x32xf32>
    %cst_50 = arith.constant dense<0.000000e+00> : vector<128x32xf32>
    %79 = tpu.matmul %75, %78, %cst_50 {dimension_numbers = #tpu.dot_dimension_numbers<[1], [0], [0], [1], [0, 0, 1, 1], [], []>} : vector<128x64xf32>, vector<64x32xf32>, vector<128x32xf32> -> vector<128x32xf32>
    %80 = arith.maximumf %77, %79 : vector<128x32xf32>
    %cst_51 = arith.constant 0.000000e+00 : f32
    %81 = vector.broadcast %cst_51 : f32 to vector<128x32xf32>
    %82 = arith.maximumf %80, %81 : vector<128x32xf32>
    %83 = vector.extract_strided_slice %82 {offsets = [0, 0], sizes = [32, 32], strides = [1, 1]} : vector<128x32xf32> to vector<32x32xf32>
    %c0_52 = arith.constant 0 : index
    %c0_53 = arith.constant 0 : index
    %84 = vector.load %arg9[%c0_52, %c0_53] : memref<128x20xf32, #tpu.memory_space<vmem>>, vector<32x20xf32>
    %cst_54 = arith.constant dense<0.000000e+00> : vector<32x20xf32>
    %85 = tpu.matmul %83, %84, %cst_54 {dimension_numbers = #tpu.dot_dimension_numbers<[1], [0], [0], [1], [0, 0, 1, 1], [], []>} : vector<32x32xf32>, vector<32x20xf32>, vector<32x20xf32> -> vector<32x20xf32>
    %86 = vector.extract_strided_slice %82 {offsets = [32, 0], sizes = [32, 32], strides = [1, 1]} : vector<128x32xf32> to vector<32x32xf32>
    %c32 = arith.constant 32 : index
    %c0_55 = arith.constant 0 : index
    %87 = vector.load %arg9[%c32, %c0_55] : memref<128x20xf32, #tpu.memory_space<vmem>>, vector<32x20xf32>
    %cst_56 = arith.constant dense<0.000000e+00> : vector<32x20xf32>
    %88 = tpu.matmul %86, %87, %cst_56 {dimension_numbers = #tpu.dot_dimension_numbers<[1], [0], [0], [1], [0, 0, 1, 1], [], []>} : vector<32x32xf32>, vector<32x20xf32>, vector<32x20xf32> -> vector<32x20xf32>
    %89 = arith.addf %85, %88 : vector<32x20xf32>
    %90 = vector.extract_strided_slice %82 {offsets = [64, 0], sizes = [32, 32], strides = [1, 1]} : vector<128x32xf32> to vector<32x32xf32>
    %c64 = arith.constant 64 : index
    %c0_57 = arith.constant 0 : index
    %91 = vector.load %arg9[%c64, %c0_57] : memref<128x20xf32, #tpu.memory_space<vmem>>, vector<32x20xf32>
    %cst_58 = arith.constant dense<0.000000e+00> : vector<32x20xf32>
    %92 = tpu.matmul %90, %91, %cst_58 {dimension_numbers = #tpu.dot_dimension_numbers<[1], [0], [0], [1], [0, 0, 1, 1], [], []>} : vector<32x32xf32>, vector<32x20xf32>, vector<32x20xf32> -> vector<32x20xf32>
    %93 = arith.addf %89, %92 : vector<32x20xf32>
    %94 = vector.extract_strided_slice %82 {offsets = [96, 0], sizes = [32, 32], strides = [1, 1]} : vector<128x32xf32> to vector<32x32xf32>
    %c96 = arith.constant 96 : index
    %c0_59 = arith.constant 0 : index
    %95 = vector.load %arg9[%c96, %c0_59] : memref<128x20xf32, #tpu.memory_space<vmem>>, vector<32x20xf32>
    %cst_60 = arith.constant dense<0.000000e+00> : vector<32x20xf32>
    %96 = tpu.matmul %94, %95, %cst_60 {dimension_numbers = #tpu.dot_dimension_numbers<[1], [0], [0], [1], [0, 0, 1, 1], [], []>} : vector<32x32xf32>, vector<32x20xf32>, vector<32x20xf32> -> vector<32x20xf32>
    %97 = arith.addf %93, %96 : vector<32x20xf32>
    %c0_61 = arith.constant 0 : index
    %c0_62 = arith.constant 0 : index
    %98 = vector.load %arg10[%c0_61, %c0_62] : memref<1x20xf32, #tpu.memory_space<vmem>>, vector<1x20xf32>
    %99 = vector.broadcast %98 : vector<1x20xf32> to vector<32x20xf32>
    %100 = arith.addf %97, %99 : vector<32x20xf32>
    %cst_63 = arith.constant 0.000000e+00 : f32
    %101 = vector.broadcast %cst_63 : f32 to vector<32x20xf32>
    %102 = arith.maximumf %100, %101 : vector<32x20xf32>
    %c0_64 = arith.constant 0 : index
    %c0_65 = arith.constant 0 : index
    %103 = vector.load %arg11[%c0_64, %c0_65] : memref<20x128xf32, #tpu.memory_space<vmem>>, vector<20x128xf32>
    %cst_66 = arith.constant dense<0.000000e+00> : vector<32x128xf32>
    %104 = tpu.matmul %102, %103, %cst_66 {dimension_numbers = #tpu.dot_dimension_numbers<[1], [0], [0], [1], [0, 0, 1, 1], [], []>} : vector<32x20xf32>, vector<20x128xf32>, vector<32x128xf32> -> vector<32x128xf32>
    %c0_67 = arith.constant 0 : index
    %c0_68 = arith.constant 0 : index
    %105 = vector.load %arg12[%c0_67, %c0_68] : memref<1x128xf32, #tpu.memory_space<vmem>>, vector<1x128xf32>
    %106 = vector.broadcast %105 : vector<1x128xf32> to vector<32x128xf32>
    %107 = arith.addf %104, %106 : vector<32x128xf32>
    %c0_69 = arith.constant 0 : index
    %c0_70 = arith.constant 0 : index
    %108 = vector.load %arg13[%c0_69, %c0_70] : memref<32x128xf32, #tpu.memory_space<vmem>>, vector<32x128xf32>
    tpu.vector_store %arg13[%c0_69, %c0_70], %107 {strides = array<i32>} : memref<32x128xf32, #tpu.memory_space<vmem>>, vector<32x128xf32>,
    return
  }
  func.func @transform_0(%arg0: i32) -> (i32, i32, i32) {
    %c0_i32 = arith.constant 0 : i32
    %c0_i32_0 = arith.constant 0 : i32
    %c0_i32_1 = arith.constant 0 : i32
    return %c0_i32, %arg0, %c0_i32_0 : i32, i32, i32
  }
  func.func @transform_1(%arg0: i32) -> (i32, i32, i32) {
    %c0_i32 = arith.constant 0 : i32
    %c0_i32_0 = arith.constant 0 : i32
    %c0_i32_1 = arith.constant 0 : i32
    %c0_i32_2 = arith.constant 0 : i32
    return %c0_i32, %c0_i32_0, %c0_i32_1 : i32, i32, i32
  }
  func.func @transform_2(%arg0: i32) -> (i32, i32) {
    %c0_i32 = arith.constant 0 : i32
    %c0_i32_0 = arith.constant 0 : i32
    %c0_i32_1 = arith.constant 0 : i32
    return %c0_i32, %c0_i32_0 : i32, i32
  }
  func.func @transform_3(%arg0: i32) -> (i32, i32) {
    %c0_i32 = arith.constant 0 : i32
    %c0_i32_0 = arith.constant 0 : i32
    %c0_i32_1 = arith.constant 0 : i32
    return %c0_i32, %c0_i32_0 : i32, i32
  }
  func.func @transform_4(%arg0: i32) -> (i32, i32, i32) {
    %c0_i32 = arith.constant 0 : i32
    %c0_i32_0 = arith.constant 0 : i32
    %c0_i32_1 = arith.constant 0 : i32
    %c0_i32_2 = arith.constant 0 : i32
    return %c0_i32, %c0_i32_0, %c0_i32_1 : i32, i32, i32
  }
  func.func @transform_5(%arg0: i32) -> (i32, i32) {
    %c0_i32 = arith.constant 0 : i32
    %c0_i32_0 = arith.constant 0 : i32
    %c0_i32_1 = arith.constant 0 : i32
    return %c0_i32, %c0_i32_0 : i32, i32
  }
  func.func @transform_6(%arg0: i32) -> (i32, i32) {
    %c0_i32 = arith.constant 0 : i32
    %c0_i32_0 = arith.constant 0 : i32
    %c0_i32_1 = arith.constant 0 : i32
    return %c0_i32, %c0_i32_0 : i32, i32
  }
  func.func @transform_7(%arg0: i32) -> (i32, i32) {
    %c0_i32 = arith.constant 0 : i32
    %c0_i32_0 = arith.constant 0 : i32
    %c0_i32_1 = arith.constant 0 : i32
    return %c0_i32, %c0_i32_0 : i32, i32
  }
  func.func @transform_8(%arg0: i32) -> (i32, i32) {
    %c0_i32 = arith.constant 0 : i32
    %c0_i32_0 = arith.constant 0 : i32
    %c0_i32_1 = arith.constant 0 : i32
    return %c0_i32, %c0_i32_0 : i32, i32
  }
  func.func @transform_9(%arg0: i32) -> (i32, i32) {
    %c0_i32 = arith.constant 0 : i32
    %c0_i32_0 = arith.constant 0 : i32
    %c0_i32_1 = arith.constant 0 : i32
    return %c0_i32, %c0_i32_0 : i32, i32
  }
  func.func @transform_10(%arg0: i32) -> (i32, i32) {
    %c0_i32 = arith.constant 0 : i32
    %c0_i32_0 = arith.constant 0 : i32
    %c0_i32_1 = arith.constant 0 : i32
    return %c0_i32, %c0_i32_0 : i32, i32
  }
  func.func @transform_11(%arg0: i32) -> (i32, i32) {
    %c0_i32 = arith.constant 0 : i32
    %c0_i32_0 = arith.constant 0 : i32
    %c0_i32_1 = arith.constant 0 : i32
    return %c0_i32, %c0_i32_0 : i32, i32
  }
  func.func @transform_12(%arg0: i32) -> (i32, i32) {
    %c0_i32 = arith.constant 0 : i32
    %c0_i32_0 = arith.constant 0 : i32
    return %arg0, %c0_i32 : i32, i32
  }
}

</mosaic_0001>

<bundles_post_ra>
// kernel: _lambda_.1
= control target key start
LH: loop header
LB: loop body
LE: loop exit
PB: predicated region body
PF: predicated region fallthrough
CT: control target
= control target key end

     0   :  { %vm451_vm0 = vcmask 1043456   ;;  %vm162_vm1 = vcmask 228352   ;;  %vm10445_vm2 = vmmov 1   ;;  %v13727_v6 = vmov 0  ;;  %s13591_s1 = inlined_call_operand.vmem [shape: f32[5,28,128], index: 1, kind: input, shape index: {}]   ;;  %s13592_s0 = inlined_call_operand.vmem [shape: f32[28,32,28], index: 0, kind: input, shape index: {}]   ;;  %s13593_s3 = inlined_call_operand.vmem [shape: f32[128,60], index: 3, kind: input, shape index: {}]   ;;  %s13594_s2 = inlined_call_operand.vmem [shape: f32[1,128], index: 2, kind: input, shape index: {}]   ;;  %s13595_s4 = inlined_call_operand.vmem [shape: f32[5,60,64], index: 4, kind: input, shape index: {}]   ;;  %s13596_s6 = inlined_call_operand.vmem [shape: f32[64,32], index: 6, kind: input, shape index: {}]   ;;  %s13597_s7 = inlined_call_operand.vmem [shape: f32[64,32], index: 7, kind: input, shape index: {}]   ;;  %s13598_s5 = inlined_call_operand.vmem [shape: f32[1,64], index: 5, kind: input, shape index: {}]   ;;  %s13599_s8 = inlined_call_operand.vmem [shape: f32[128,20], index: 8, kind: input, shape index: {}]   ;;  %s13600_s10 = inlined_call_operand.vmem [shape: f32[20,128], index: 10, kind: input, shape index: {}]   ;;  %s13601_s9 = inlined_call_operand.vmem [shape: f32[1,20], index: 9, kind: input, shape index: {}]   ;;  %s13602_s11 = inlined_call_operand.vmem [shape: f32[1,128], index: 11, kind: input, shape index: {}]   ;;  %s13603_s12 = inlined_call_operand.vmem [shape: f32[32,128], index: 12, kind: output, shape index: {}]  }
   0x1   :  { %v153_v0 = vld [vmem:[%s13591_s1] sm:$0xff]  ;;  %v154_v1 = vld [vmem:[%s13591_s1 + $0x8] sm:$0xff]  ;;  %v155_v2 = vld [vmem:[%s13591_s1 + $0x10] sm:$0xff]  ;;  %vm4224_vm4 = vcmask 490496   ;;  %vm5695_vm5 = vcmask 523264   ;;  %vm6082_vm6 = vcmask 261120  }
   0x2   :  { %v9569_v3 = vpack.c.bf16 %v154_v1, %v153_v0  ;;  %v156_v4 = vld [vmem:[%s13591_s1 + $0x18] sm:$0xf]  ;;  %v41_v5 = vld [vmem:[%s13592_s0] sm:$0xff]  ;;  %vm10528_vm3 = vmpackc.low %vm451_vm0, %vm10445_vm2  ;;  %vm6512_vm7 = vcmask 162816  }
   0x3   :  { %v13728_v6 = vsel %vm10528_vm3, 4294967295, %v13727_v6  ;;  %v9573_v7 = vpack.c.bf16 %v156_v4, %v155_v2  ;;  %8387 = vmatprep.mubr.msk.f32.mxu0 %vm162_vm1, %v41_v5  ;;  %v6819_v8 = vld [vmem:[%s13591_s1 + $0x40] sm:$0xff]  ;;  %v6820_v9 = vld [vmem:[%s13591_s1 + $0x48] sm:$0xff]  ;;  %v43_v13 = vld [vmem:[%s13592_s0 + $0x10] sm:$0xff] }
   0x4   :  { %13729 = vst [vmem:[#allocation2_spill] sm:$0xff] %v13728_v6  ;;  %9570 = vmatprep.subr.bf16.mxu0 %v9569_v3  ;;  %v45_v10 = vld [vmem:[%s13592_s0 + $0x20] sm:$0xff]  ;;  %v9579_v11 = vpack.c.bf16 %v6820_v9, %v6819_v8  ;;  %v42_v12 = vld [vmem:[%s13592_s0 + $0x8] sm:$0xff]  ;;  %v44_v14 = vld [vmem:[%s13592_s0 + $0x18] sm:$0xff] }
   0x5   :  { %9572 = vmatpush3.bf16.msra.mxu0 %v9569_v3  ;;  %8235 = vmatprep.mubr.msk.f32.mxu1 %vm162_vm1, %v45_v10  ;;  %v10563_v15 = vld [vmem:[%s13592_s0 + $0x28] sm:$0xff]  ;;  %v10568_v16 = vld [vmem:[%s13592_s0 + $0x30] sm:$0xff]  ;;  %v6822_v18 = vld [vmem:[%s13591_s1 + $0x58] sm:$0xf] }
   0x6   :  { %9575 = vmatprep.subr.msk.bf16.mxu0 %vm10528_vm3, %v9573_v7  ;;  %13730 = vst [vmem:[#allocation3_spill] sm:$0xff] %v10563_v15  ;;  %13731 = vst [vmem:[#allocation4_spill] sm:$0xff] %v10568_v16  ;;  %v6821_v17 = vld [vmem:[%s13591_s1 + $0x50] sm:$0xff]  ;;  %v10583_v19 = vld [vmem:[%s13592_s0 + $0x38] sm:$0xff] }
   0x7   :  { %13732 = vst [vmem:[#allocation5_spill] sm:$0xff] %v10583_v19  ;;  %v9583_v20 = vpack.c.bf16 %v6822_v18, %v6821_v17  ;;  %v10588_v21 = vld [vmem:[%s13592_s0 + $0x40] sm:$0xff]  ;;  %v10599_v22 = vld [vmem:[%s13592_s0 + $0x48] sm:$0xff]  ;;  %v10606_v23 = vld [vmem:[%s13592_s0 + $0x50] sm:$0xff] }
   0x8   :  { %v10615_v24 = vld [vmem:[%s13592_s0 + $0x58] sm:$0xff]  ;;  %v10620_v25 = vld [vmem:[%s13592_s0 + $0x60] sm:$0xff]  ;;  %v10629_v26 = vld [vmem:[%s13592_s0 + $0x68] sm:$0xff] }
   0x9   :  { %9578 = vmatpush3.bf16.msk.msra.mxu0 %vm10528_vm3, %v9573_v7  ;;  %v10634_v27 = vld [vmem:[%s13592_s0 + $0x70] sm:$0xff]  ;;  %v10643_v28 = vld [vmem:[%s13592_s0 + $0x78] sm:$0xff]  ;;  %v10648_v29 = vld [vmem:[%s13592_s0 + $0x80] sm:$0xff] }
   0xa   :  { %9580 = vmatprep.subr.bf16.mxu0 %v9579_v11  ;;  %v10657_v30 = vld [vmem:[%s13592_s0 + $0x88] sm:$0xff]  ;;  %v10662_v31 = vld [vmem:[%s13592_s0 + $0x90] sm:$0xff]  ;;  %v10671_v32 = vld [vmem:[%s13592_s0 + $0x98] sm:$0xff] }
   0xb   :  { %v10676_v33 = vld [vmem:[%s13592_s0 + $0xa0] sm:$0xff]  ;;  %v10685_v34 = vld [vmem:[%s13592_s0 + $0xa8] sm:$0xff]  ;;  %v10690_v35 = vld [vmem:[%s13592_s0 + $0xb0] sm:$0xff] }
   0xc   :  { %8388 = vmatmul.mubr.msk.f32.vlgmr.msra.gmra.mrb[0].mxu0 %vm162_vm1, %v42_v12  ;;  %v10699_v36 = vld [vmem:[%s13592_s0 + $0xb8] sm:$0xff]  ;;  %v10704_v37 = vld [vmem:[%s13592_s0 + $0xc0] sm:$0xff]  ;;  %v10713_v38 = vld [vmem:[%s13592_s0 + $0xc8] sm:$0xff] }
   0xd   :  { %9582 = vmatpush3.bf16.msra.mxu0 %v9579_v11  ;;  %8390 = vmatprep.mubr.msk.f32.mxu0 %vm162_vm1, %v43_v13  ;;  %v10718_v39 = vld [vmem:[%s13592_s0 + $0xd0] sm:$0xff]  ;;  %v10727_v40 = vld [vmem:[%s13592_s0 + $0xd8] sm:$0xff]  ;;  %v10732_v41 = vld [vmem:[%s13592_s0 + $0xe0] sm:$0xff] }
   0xe   :  { %9585 = vmatprep.subr.msk.bf16.mxu0 %vm10528_vm3, %v9583_v20  ;;  %v10741_v42 = vld [vmem:[%s13592_s0 + $0xe8] sm:$0xff]  ;;  %v10746_v43 = vld [vmem:[%s13592_s0 + $0xf0] sm:$0xff]  ;;  %v10755_v44 = vld [vmem:[%s13592_s0 + $0xf8] sm:$0xff] }
   0xf   :  { %13733 = vst [vmem:[#allocation6_spill] sm:$0xff] %v10755_v44  ;;  %v10760_v45 = vld [vmem:[%s13592_s0 + $0x100] sm:$0xff]  ;;  %v10769_v46 = vld [vmem:[%s13592_s0 + $0x108] sm:$0xff]  ;;  %v10774_v47 = vld [vmem:[%s13592_s0 + $0x110] sm:$0xff] }
  0x10   :  { %8391 = vmatmul.mubr.msk.f32.gmra.mrb[2].mxu0 %vm162_vm1, %v44_v14  ;;  %13734 = vst [vmem:[#allocation7_spill] sm:$0xff] %v10760_v45  ;;  %13735 = vst [vmem:[#allocation8_spill] sm:$0xff] %v10769_v46  ;;  %v6920_v48 = vld [vmem:[%s13591_s1 + $0x60] sm:$0xff]  ;;  %v6921_v49 = vld [vmem:[%s13591_s1 + $0x68] sm:$0xff] }
  0x11   :  { %8393 = vmatprep.mubr.msk.f32.mxu0 %vm162_vm1, %v45_v10  ;;  %9588 = vmatpush3.bf16.msk.msra.mxu0 %vm10528_vm3, %v9583_v20  ;;  %13736 = vst [vmem:[#allocation9_spill] sm:$0xff] %v10774_v47  ;;  %v10789_v50 = vld [vmem:[%s13592_s0 + $0x118] sm:$0xff]  ;;  %v10791_v51 = vpack.c.bf16 %v6921_v49, %v6920_v48  ;;  %v10796_v52 = vld [vmem:[%s13592_s0 + $0x120] sm:$0xff]  ;;  %v10806_v53 = vld [vmem:[%s13592_s0 + $0x128] sm:$0xff] }
  0x12   :  { %13737 = vst [vmem:[#allocation10_spill] sm:$0xff] %v10789_v50  ;;  %13738 = vst [vmem:[#allocation11_spill] sm:$0xff] %v10796_v52  ;;  %v10811_v54 = vld [vmem:[%s13592_s0 + $0x130] sm:$0xff]  ;;  %v10820_v55 = vld [vmem:[%s13592_s0 + $0x138] sm:$0xff] }
  0x13   :  { %9590 = vmatprep.subr.bf16.mxu0 %v10791_v51  ;;  %13739 = vst [vmem:[#allocation12_spill] sm:$0xff] %v10806_v53  ;;  %13740 = vst [vmem:[#allocation13_spill] sm:$0xff] %v10811_v54  ;;  %v10825_v56 = vld [vmem:[%s13592_s0 + $0x140] sm:$0xff]  ;;  %v10834_v57 = vld [vmem:[%s13592_s0 + $0x148] sm:$0xff] }
  0x14   :  { %8394 = vmatmul.mubr.msk.f32.gmra.mrb[4].mxu0 %vm162_vm1, %v10563_v15  ;;  %13741 = vst [vmem:[#allocation14_spill] sm:$0xff] %v10820_v55  ;;  %13742 = vst [vmem:[#allocation15_spill] sm:$0xff] %v10825_v56  ;;  %v10839_v58 = vld [vmem:[%s13592_s0 + $0x150] sm:$0xff]  ;;  %v10848_v59 = vld [vmem:[%s13592_s0 + $0x158] sm:$0xff] }
  0x15   :  { %8396 = vmatprep.mubr.msk.f32.mxu0 %vm162_vm1, %v10568_v16  ;;  %13743 = vst [vmem:[#allocation16_spill] sm:$0xff] %v10839_v58  ;;  %v10853_v60 = vld [vmem:[%s13592_s0 + $0x160] sm:$0xff]  ;;  %v10862_v61 = vld [vmem:[%s13592_s0 + $0x168] sm:$0xff]  ;;  %v10867_v62 = vld [vmem:[%s13592_s0 + $0x170] sm:$0xff] }
  0x16   :  { %13744 = vst [vmem:[#allocation17_spill] sm:$0xff] %v10853_v60  ;;  %v10876_v63 = vld [vmem:[%s13592_s0 + $0x178] sm:$0xff]  ;;  %v10881_v0 = vld [vmem:[%s13592_s0 + $0x180] sm:$0xff]  ;;  %v10890_v1 = vld [vmem:[%s13592_s0 + $0x188] sm:$0xff] }
  0x17   :  { %13745 = vst [vmem:[#allocation18_spill] sm:$0xff] %v10881_v0  ;;  %13746 = vst [vmem:[#allocation19_spill] sm:$0xff] %v10890_v1  ;;  %v10895_v2 = vld [vmem:[%s13592_s0 + $0x190] sm:$0xff]  ;;  %v10904_v3 = vld [vmem:[%s13592_s0 + $0x198] sm:$0xff] }
  0x18   :  { %8397 = vmatmul.mubr.msk.f32.gmra.mrb[6].mxu0 %vm162_vm1, %v10583_v19  ;;  %13747 = vst [vmem:[#allocation20_spill] sm:$0xff] %v10895_v2  ;;  %13748 = vst [vmem:[#allocation21_spill] sm:$0xff] %v10904_v3  ;;  %v10909_v4 = vld [vmem:[%s13592_s0 + $0x1a0] sm:$0xff]  ;;  %v10918_v5 = vld [vmem:[%s13592_s0 + $0x1a8] sm:$0xff] }
  0x19   :  { %8399 = vmatprep.mubr.msk.f32.mxu0 %vm162_vm1, %v10588_v21  ;;  %13749 = vst [vmem:[#allocation22_spill] sm:$0xff] %v10909_v4  ;;  %13750 = vst [vmem:[#allocation23_spill] sm:$0xff] %v10918_v5  ;;  %v10923_v7 = vld [vmem:[%s13592_s0 + $0x1b0] sm:$0xff]  ;;  %v10932_v8 = vld [vmem:[%s13592_s0 + $0x1b8] sm:$0xff] }
  0x1a   :  { %13751 = vst [vmem:[#allocation24_spill] sm:$0xff] %v10923_v7  ;;  %13752 = vst [vmem:[#allocation25_spill] sm:$0xff] %v10932_v8  ;;  %v10937_v9 = vld [vmem:[%s13592_s0 + $0x1c0] sm:$0xff]  ;;  %v10946_v10 = vld [vmem:[%s13592_s0 + $0x1c8] sm:$0xff] }
  0x1b   :  { %13753 = vst [vmem:[#allocation26_spill] sm:$0xff] %v10937_v9  ;;  %13754 = vst [vmem:[#allocation27_spill] sm:$0xff] %v10946_v10  ;;  %v10951_v11 = vld [vmem:[%s13592_s0 + $0x1d0] sm:$0xff]  ;;  %v10960_v12 = vld [vmem:[%s13592_s0 + $0x1d8] sm:$0xff] }
  0x1c   :  { %8400 = vmatmul.mubr.msk.f32.gmra.mrb[8].mxu0 %vm162_vm1, %v10599_v22  ;;  %13755 = vst [vmem:[#allocation28_spill] sm:$0xff] %v10951_v11  ;;  %13756 = vst [vmem:[#allocation29_spill] sm:$0xff] %v10960_v12  ;;  %v10965_v13 = vld [vmem:[%s13592_s0 + $0x1e0] sm:$0xff]  ;;  %v10974_v14 = vld [vmem:[%s13592_s0 + $0x1e8] sm:$0xff] }
  0x1d   :  { %8402 = vmatprep.mubr.msk.f32.mxu0 %vm162_vm1, %v10606_v23  ;;  %13757 = vst [vmem:[#allocation30_spill] sm:$0xff] %v10965_v13  ;;  %13758 = vst [vmem:[#allocation31_spill] sm:$0xff] %v10974_v14  ;;  %v10979_v17 = vld [vmem:[%s13592_s0 + $0x1f0] sm:$0xff]  ;;  %v10988_v18 = vld [vmem:[%s13592_s0 + $0x1f8] sm:$0xff] }
  0x1e   :  { %13759 = vst [vmem:[#allocation32_spill] sm:$0xff] %v10979_v17  ;;  %13760 = vst [vmem:[#allocation33_spill] sm:$0xff] %v10988_v18  ;;  %v10993_v20 = vld [vmem:[%s13592_s0 + $0x200] sm:$0xff]  ;;  %v11002_v48 = vld [vmem:[%s13592_s0 + $0x208] sm:$0xff] }
  0x1f   :  { %13761 = vst [vmem:[#allocation34_spill] sm:$0xff] %v10993_v20  ;;  %13762 = vst [vmem:[#allocation35_spill] sm:$0xff] %v11002_v48  ;;  %v11007_v49 = vld [vmem:[%s13592_s0 + $0x210] sm:$0xff]  ;;  %v11016_v19 = vld [vmem:[%s13592_s0 + $0x218] sm:$0xff] }
  0x20   :  { %8403 = vmatmul.mubr.msk.f32.gmra.mrb[10].mxu0 %vm162_vm1, %v10615_v24  ;;  %13763 = vst [vmem:[#allocation36_spill] sm:$0xff] %v11007_v49  ;;  %13764 = vst [vmem:[#allocation37_spill] sm:$0xff] %v11016_v19  ;;  %v11021_v16 = vld [vmem:[%s13592_s0 + $0x220] sm:$0xff]  ;;  %v11030_v15 = vld [vmem:[%s13592_s0 + $0x228] sm:$0xff] }
  0x21   :  { %8405 = vmatprep.mubr.msk.f32.mxu0 %vm162_vm1, %v10620_v25  ;;  %13765 = vst [vmem:[#allocation38_spill] sm:$0xff] %v11021_v16  ;;  %13766 = vst [vmem:[#allocation39_spill] sm:$0xff] %v11030_v15 }
  0x24   :  { %8406 = vmatmul.mubr.msk.f32.gmra.mrb[12].mxu0 %vm162_vm1, %v10629_v26 }
  0x25   :  { %8408 = vmatprep.mubr.msk.f32.mxu0 %vm162_vm1, %v10634_v27 }
  0x28   :  { %8409 = vmatmul.mubr.msk.f32.gmra.mrb[14].mxu0 %vm162_vm1, %v10643_v28 }
  0x29   :  { %8411 = vmatprep.mubr.msk.f32.mxu0 %vm162_vm1, %v10648_v29 }
  0x2c   :  { %8412 = vmatmul.mubr.msk.f32.gmra.mrb[16].mxu0 %vm162_vm1, %v10657_v30 }
  0x2d   :  { %8414 = vmatprep.mubr.msk.f32.mxu0 %vm162_vm1, %v10662_v31 }
  0x30   :  { %8415 = vmatmul.mubr.msk.f32.gmra.mrb[18].mxu0 %vm162_vm1, %v10671_v32 }
  0x31   :  { %8417 = vmatprep.mubr.msk.f32.mxu0 %vm162_vm1, %v10676_v33 }
  0x34   :  { %8418 = vmatmul.mubr.msk.f32.gmra.mrb[20].mxu0 %vm162_vm1, %v10685_v34 }
  0x35   :  { %8420 = vmatprep.mubr.msk.f32.mxu0 %vm162_vm1, %v10690_v35 }
  0x38   :  { %8421 = vmatmul.mubr.msk.f32.gmra.mrb[22].mxu0 %vm162_vm1, %v10699_v36 }
  0x39   :  { %8423 = vmatprep.mubr.msk.f32.mxu0 %vm162_vm1, %v10704_v37 }
  0x3c   :  { %8424 = vmatmul.mubr.msk.f32.gmra.mrb[24].mxu0 %vm162_vm1, %v10713_v38 }
  0x3d   :  { %8426 = vmatprep.mubr.msk.f32.mxu0 %vm162_vm1, %v10718_v39 }
  0x40   :  { %8427 = vmatmul.mubr.msk.f32.gmra.mrb[26].mxu0 %vm162_vm1, %v10727_v40 }
  0x41   :  { %8429 = vmatprep.mubr.msk.f32.mxu0 %vm162_vm1, %v10732_v41 }
  0x44   :  { %8430 = vmatmul.mubr.msk.f32.gmra.mrb[28].mxu0 %vm162_vm1, %v10741_v42 }
  0x45   :  { %8432 = vmatprep.mubr.msk.f32.mxu0 %vm162_vm1, %v10746_v43 }
  0x48   :  { %8433 = vmatmul.mubr.msk.f32.gmra.mrb[30].mxu0 %vm162_vm1, %v10755_v44 }
  0x49   :  { %8435 = vmatprep.mubr.msk.f32.mxu0 %vm162_vm1, %v10760_v45 }
  0x4c   :  { %8436 = vmatmul.mubr.msk.f32.gmra.mrb[32].mxu0 %vm162_vm1, %v10769_v46 }
  0x4d   :  { %8438 = vmatprep.mubr.msk.f32.mxu0 %vm162_vm1, %v10774_v47 }
  0x50   :  { %8439 = vmatmul.mubr.msk.f32.gmra.mrb[34].mxu0 %vm162_vm1, %v10789_v50 }
  0x51   :  { %8441 = vmatprep.mubr.msk.f32.mxu0 %vm162_vm1, %v10796_v52 }
  0x54   :  { %8442 = vmatmul.mubr.msk.f32.gmra.mrb[36].mxu0 %vm162_vm1, %v10806_v53 }
  0x55   :  { %8444 = vmatprep.mubr.msk.f32.mxu0 %vm162_vm1, %v10811_v54 }
  0x58   :  { %8445 = vmatmul.mubr.msk.f32.gmra.mrb[38].mxu0 %vm162_vm1, %v10820_v55 }
  0x59   :  { %8447 = vmatprep.mubr.msk.f32.mxu0 %vm162_vm1, %v10825_v56 }
  0x5c   :  { %8448 = vmatmul.mubr.msk.f32.gmra.mrb[40].mxu0 %vm162_vm1, %v10834_v57 }
  0x5d   :  { %8450 = vmatprep.mubr.msk.f32.mxu0 %vm162_vm1, %v10839_v58 }
  0x60   :  { %8451 = vmatmul.mubr.msk.f32.gmra.mrb[42].mxu0 %vm162_vm1, %v10848_v59 }
  0x61   :  { %8453 = vmatprep.mubr.msk.f32.mxu0 %vm162_vm1, %v10853_v60 }
  0x64   :  { %8454 = vmatmul.mubr.msk.f32.gmra.mrb[44].mxu0 %vm162_vm1, %v10862_v61 }
  0x65   :  { %8456 = vmatprep.mubr.msk.f32.mxu0 %vm162_vm1, %v10867_v62 }
  0x68   :  { %8457 = vmatmul.mubr.msk.f32.gmra.mrb[46].mxu0 %vm162_vm1, %v10876_v63 }
  0x69   :  { %8459 = vmatprep.mubr.msk.f32.mxu0 %vm162_vm1, %v10881_v0 }
  0x6c   :  { %8460 = vmatmul.mubr.msk.f32.gmra.mrb[48].mxu0 %vm162_vm1, %v10890_v1 }
  0x6d   :  { %8462 = vmatprep.mubr.msk.f32.mxu0 %vm162_vm1, %v10895_v2 }
  0x70   :  { %8463 = vmatmul.mubr.msk.f32.gmra.mrb[50].mxu0 %vm162_vm1, %v10904_v3 }
  0x71   :  { %8465 = vmatprep.mubr.msk.f32.mxu0 %vm162_vm1, %v10909_v4 }
  0x74   :  { %8466 = vmatmul.mubr.msk.f32.gmra.mrb[52].mxu0 %vm162_vm1, %v10918_v5 }
  0x75   :  { %8468 = vmatprep.mubr.msk.f32.mxu0 %vm162_vm1, %v10923_v7 }
  0x78   :  { %8469 = vmatmul.mubr.msk.f32.gmra.mrb[54].mxu0 %vm162_vm1, %v10932_v8 }
  0x79   :  { %8471 = vmatprep.mubr.msk.f32.mxu0 %vm162_vm1, %v10937_v9 }
  0x7c   :  { %8472 = vmatmul.mubr.msk.f32.gmra.mrb[56].mxu0 %vm162_vm1, %v10946_v10 }
  0x7d   :  { %8474 = vmatprep.mubr.msk.f32.mxu0 %vm162_vm1, %v10951_v11 }
  0x80   :  { %8475 = vmatmul.mubr.msk.f32.gmra.mrb[58].mxu0 %vm162_vm1, %v10960_v12 }
  0x81   :  { %8477 = vmatprep.mubr.msk.f32.mxu0 %vm162_vm1, %v10965_v13 }
  0x84   :  { %8478 = vmatmul.mubr.msk.f32.gmra.mrb[60].mxu0 %vm162_vm1, %v10974_v14 }
  0x85   :  { %8480 = vmatprep.mubr.msk.f32.mxu0 %vm162_vm1, %v10979_v17 }
  0x88   :  { %8481 = vmatmul.mubr.msk.f32.gmra.mrb[62].mxu0 %vm162_vm1, %v10988_v18 }
  0x89   :  { %8483 = vmatprep.mubr.msk.f32.mxu0 %vm162_vm1, %v10993_v20 }
  0x8c   :  { %8484 = vmatmul.mubr.msk.f32.gmra.mrb[64].mxu0 %vm162_vm1, %v11002_v48  ;;  %v6923_v48 = vld [vmem:[%s13591_s1 + $0x78] sm:$0xf] }
  0x8d   :  { %8486 = vmatprep.mubr.msk.f32.mxu0 %vm162_vm1, %v11007_v49  ;;  %v11035_v49 = vld [vmem:[%s13592_s0 + $0x230] sm:$0xff] }
  0x8e   :  { %13767 = vst [vmem:[#allocation40_spill] sm:$0xff] %v11035_v49 }
  0x90   :  { %8487 = vmatmul.mubr.msk.f32.gmra.mrb[66].mxu0 %vm162_vm1, %v11016_v19  ;;  %v11049_v19 = vld [vmem:[%s13592_s0 + $0x240] sm:$0xff] }
  0x91   :  { %8489 = vmatprep.mubr.msk.f32.mxu0 %vm162_vm1, %v11021_v16  ;;  %v11044_v16 = vld [vmem:[%s13592_s0 + $0x238] sm:$0xff]  ;;  %13769 = vst [vmem:[#allocation42_spill] sm:$0xff] %v11049_v19 }
  0x92   :  { %13768 = vst [vmem:[#allocation41_spill] sm:$0xff] %v11044_v16 }
  0x94   :  { %8490 = vmatmul.mubr.msk.f32.gmra.mrb[68].mxu0 %vm162_vm1, %v11030_v15  ;;  %v11063_v15 = vld [vmem:[%s13592_s0 + $0x250] sm:$0xff] }
  0x95   :  { %8492 = vmatprep.mubr.msk.f32.mxu0 %vm162_vm1, %v11035_v49  ;;  %v11058_v49 = vld [vmem:[%s13592_s0 + $0x248] sm:$0xff]  ;;  %13771 = vst [vmem:[#allocation44_spill] sm:$0xff] %v11063_v15 }
  0x96   :  { %13770 = vst [vmem:[#allocation43_spill] sm:$0xff] %v11058_v49 }
  0x98   :  { %8493 = vmatmul.mubr.msk.f32.gmra.mrb[70].mxu0 %vm162_vm1, %v11044_v16  ;;  %v11077_v16 = vld [vmem:[%s13592_s0 + $0x260] sm:$0xff] }
  0x99   :  { %8495 = vmatprep.mubr.msk.f32.mxu0 %vm162_vm1, %v11049_v19  ;;  %v11072_v19 = vld [vmem:[%s13592_s0 + $0x258] sm:$0xff]  ;;  %13773 = vst [vmem:[#allocation46_spill] sm:$0xff] %v11077_v16 }
  0x9a   :  { %13772 = vst [vmem:[#allocation45_spill] sm:$0xff] %v11072_v19 }
  0x9c   :  { %8496 = vmatmul.mubr.msk.f32.gmra.mrb[72].mxu0 %vm162_vm1, %v11058_v49  ;;  %v11091_v49 = vld [vmem:[%s13592_s0 + $0x270] sm:$0xff] }
  0x9d   :  { %8498 = vmatprep.mubr.msk.f32.mxu0 %vm162_vm1, %v11063_v15  ;;  %v11086_v15 = vld [vmem:[%s13592_s0 + $0x268] sm:$0xff]  ;;  %13775 = vst [vmem:[#allocation48_spill] sm:$0xff] %v11091_v49  ;;  %v13847_v6 = vld [vmem:[#allocation44_spill] sm:$0xff] }
  0x9e   :  { %13774 = vst [vmem:[#allocation47_spill] sm:$0xff] %v11086_v15 }
  0xa0   :  { %8499 = vmatmul.mubr.msk.f32.gmra.mrb[74].mxu0 %vm162_vm1, %v11072_v19  ;;  %v11105_v19 = vld [vmem:[%s13592_s0 + $0x280] sm:$0xff] }
  0xa1   :  { %8501 = vmatprep.mubr.msk.f32.mxu0 %vm162_vm1, %v11077_v16  ;;  %v11100_v16 = vld [vmem:[%s13592_s0 + $0x278] sm:$0xff]  ;;  %13777 = vst [vmem:[#allocation50_spill] sm:$0xff] %v11105_v19 }
  0xa2   :  { %13776 = vst [vmem:[#allocation49_spill] sm:$0xff] %v11100_v16 }
  0xa4   :  { %8502 = vmatmul.mubr.msk.f32.gmra.mrb[76].mxu0 %vm162_vm1, %v11086_v15  ;;  %v11119_v15 = vld [vmem:[%s13592_s0 + $0x290] sm:$0xff] }
  0xa5   :  { %8504 = vmatprep.mubr.msk.f32.mxu0 %vm162_vm1, %v11091_v49  ;;  %v11114_v49 = vld [vmem:[%s13592_s0 + $0x288] sm:$0xff]  ;;  %13779 = vst [vmem:[#allocation52_spill] sm:$0xff] %v11119_v15 }
  0xa6   :  { %13778 = vst [vmem:[#allocation51_spill] sm:$0xff] %v11114_v49 }
  0xa8   :  { %8505 = vmatmul.mubr.msk.f32.gmra.mrb[78].mxu0 %vm162_vm1, %v11100_v16  ;;  %v11133_v16 = vld [vmem:[%s13592_s0 + $0x2a0] sm:$0xff] }
  0xa9   :  { %8507 = vmatprep.mubr.msk.f32.mxu0 %vm162_vm1, %v11105_v19  ;;  %v11128_v19 = vld [vmem:[%s13592_s0 + $0x298] sm:$0xff]  ;;  %13781 = vst [vmem:[#allocation54_spill] sm:$0xff] %v11133_v16 }
  0xaa   :  { %13780 = vst [vmem:[#allocation53_spill] sm:$0xff] %v11128_v19 }
  0xac   :  { %8508 = vmatmul.mubr.msk.f32.gmra.mrb[80].mxu0 %vm162_vm1, %v11114_v49  ;;  %v11147_v49 = vld [vmem:[%s13592_s0 + $0x2b0] sm:$0xff] }
  0xad   :  { %8510 = vmatprep.mubr.msk.f32.mxu0 %vm162_vm1, %v11119_v15  ;;  %v11142_v15 = vld [vmem:[%s13592_s0 + $0x2a8] sm:$0xff]  ;;  %13783 = vst [vmem:[#allocation56_spill] sm:$0xff] %v11147_v49 }
  0xae   :  { %13782 = vst [vmem:[#allocation55_spill] sm:$0xff] %v11142_v15 }
  0xb0   :  { %8511 = vmatmul.mubr.msk.f32.gmra.mrb[82].mxu0 %vm162_vm1, %v11128_v19  ;;  %v11161_v19 = vld [vmem:[%s13592_s0 + $0x2c0] sm:$0xff] }
  0xb1   :  { %8513 = vmatprep.mubr.msk.f32.mxu0 %vm162_vm1, %v11133_v16  ;;  %v11156_v16 = vld [vmem:[%s13592_s0 + $0x2b8] sm:$0xff]  ;;  %13785 = vst [vmem:[#allocation58_spill] sm:$0xff] %v11161_v19 }
  0xb2   :  { %13784 = vst [vmem:[#allocation57_spill] sm:$0xff] %v11156_v16 }
  0xb4   :  { %8514 = vmatmul.mubr.msk.f32.gmra.mrb[84].mxu0 %vm162_vm1, %v11142_v15  ;;  %v11175_v15 = vld [vmem:[%s13592_s0 + $0x2d0] sm:$0xff] }
  0xb5   :  { %8516 = vmatprep.mubr.msk.f32.mxu0 %vm162_vm1, %v11147_v49  ;;  %v11170_v49 = vld [vmem:[%s13592_s0 + $0x2c8] sm:$0xff]  ;;  %13787 = vst [vmem:[#allocation60_spill] sm:$0xff] %v11175_v15 }
  0xb6   :  { %13786 = vst [vmem:[#allocation59_spill] sm:$0xff] %v11170_v49 }
  0xb8   :  { %8517 = vmatmul.mubr.msk.f32.gmra.mrb[86].mxu0 %vm162_vm1, %v11156_v16  ;;  %v11189_v16 = vld [vmem:[%s13592_s0 + $0x2e0] sm:$0xff] }
  0xb9   :  { %8519 = vmatprep.mubr.msk.f32.mxu0 %vm162_vm1, %v11161_v19  ;;  %v11184_v19 = vld [vmem:[%s13592_s0 + $0x2d8] sm:$0xff]  ;;  %13789 = vst [vmem:[#allocation62_spill] sm:$0xff] %v11189_v16 }
  0xba   :  { %13788 = vst [vmem:[#allocation61_spill] sm:$0xff] %v11184_v19 }
  0xbc   :  { %8520 = vmatmul.mubr.msk.f32.gmra.mrb[88].mxu0 %vm162_vm1, %v11170_v49  ;;  %v11203_v49 = vld [vmem:[%s13592_s0 + $0x2f0] sm:$0xff] }
  0xbd   :  { %8522 = vmatprep.mubr.msk.f32.mxu0 %vm162_vm1, %v11175_v15  ;;  %v11198_v15 = vld [vmem:[%s13592_s0 + $0x2e8] sm:$0xff]  ;;  %13791 = vst [vmem:[#allocation64_spill] sm:$0xff] %v11203_v49 }
  0xbe   :  { %13790 = vst [vmem:[#allocation63_spill] sm:$0xff] %v11198_v15 }
  0xc0   :  { %8523 = vmatmul.mubr.msk.f32.gmra.mrb[90].mxu0 %vm162_vm1, %v11184_v19  ;;  %v6922_v19 = vld [vmem:[%s13591_s1 + $0x70] sm:$0xff] }
  0xc1   :  { %8525 = vmatprep.mubr.msk.f32.mxu0 %vm162_vm1, %v11189_v16  ;;  %v11212_v16 = vld [vmem:[%s13592_s0 + $0x2f8] sm:$0xff] }
  0xc2   :  { %13792 = vst [vmem:[#allocation65_spill] sm:$0xff] %v11212_v16 }
  0xc4   :  { %8526 = vmatmul.mubr.msk.f32.gmra.mrb[92].mxu0 %vm162_vm1, %v11198_v15 }
  0xc5   :  { %8528 = vmatprep.mubr.msk.f32.mxu0 %vm162_vm1, %v11203_v49  ;;  %v9593_v49 = vpack.c.bf16 %v6923_v48, %v6922_v19  ;;  %v7021_v19 = vld [vmem:[%s13591_s1 + $0x80] sm:$0xff] }
  0xc8   :  { %8529 = vmatmul.mubr.msk.f32.gmra.mrb[94].mxu0 %vm162_vm1, %v11212_v16 }
  0xc9   :  { %8539 = vmatprep.mubr.msk.f32.mxu0 %vm162_vm1, %v10588_v21 }
  0xcc   :  { %8540 = vmatmul.mubr.msk.f32.vlgmr.msra.gmra.mrb[0].mxu0 %vm162_vm1, %v10599_v22 }
  0xcd   :  { %9592 = vmatpush3.bf16.msra.mxu0 %v10791_v51  ;;  %8542 = vmatprep.mubr.msk.f32.mxu0 %vm162_vm1, %v10606_v23  ;;  %v7022_v51 = vld [vmem:[%s13591_s1 + $0x88] sm:$0xff] }
  0xce   :  { %9595 = vmatprep.subr.msk.bf16.mxu0 %vm10528_vm3, %v9593_v49  ;;  %v11303_v48 = vpack.c.bf16 %v7022_v51, %v7021_v19  ;;  %v13794_v19 = vld [vmem:[#allocation36_spill] sm:$0xff]  ;;  %v13795_v51 = vld [vmem:[#allocation37_spill] sm:$0xff] }
  0xd0   :  { %8543 = vmatmul.mubr.msk.f32.gmra.mrb[2].mxu0 %vm162_vm1, %v10615_v24 }
  0xd1   :  { %8545 = vmatprep.mubr.msk.f32.mxu0 %vm162_vm1, %v10620_v25  ;;  %9598 = vmatpush3.bf16.msk.msra.mxu0 %vm10528_vm3, %v9593_v49  ;;  %v13793_v49 = vld [vmem:[#allocation35_spill] sm:$0xff] }
  0xd2   :  { %9600 = vmatprep.subr.bf16.mxu0 %v11303_v48 }
  0xd4   :  { %8546 = vmatmul.mubr.msk.f32.gmra.mrb[4].mxu0 %vm162_vm1, %v10629_v26 }
  0xd5   :  { %8548 = vmatprep.mubr.msk.f32.mxu0 %vm162_vm1, %v10634_v27 }
  0xd8   :  { %8549 = vmatmul.mubr.msk.f32.gmra.mrb[6].mxu0 %vm162_vm1, %v10643_v28 }
  0xd9   :  { %8551 = vmatprep.mubr.msk.f32.mxu0 %vm162_vm1, %v10648_v29 }
  0xdc   :  { %8552 = vmatmul.mubr.msk.f32.gmra.mrb[8].mxu0 %vm162_vm1, %v10657_v30 }
  0xdd   :  { %8554 = vmatprep.mubr.msk.f32.mxu0 %vm162_vm1, %v10662_v31 }
  0xe0   :  { %8555 = vmatmul.mubr.msk.f32.gmra.mrb[10].mxu0 %vm162_vm1, %v10671_v32 }
  0xe1   :  { %8557 = vmatprep.mubr.msk.f32.mxu0 %vm162_vm1, %v10676_v33 }
  0xe4   :  { %8558 = vmatmul.mubr.msk.f32.gmra.mrb[12].mxu0 %vm162_vm1, %v10685_v34 }
  0xe5   :  { %8560 = vmatprep.mubr.msk.f32.mxu0 %vm162_vm1, %v10690_v35 }
  0xe8   :  { %8561 = vmatmul.mubr.msk.f32.gmra.mrb[14].mxu0 %vm162_vm1, %v10699_v36 }
  0xe9   :  { %8563 = vmatprep.mubr.msk.f32.mxu0 %vm162_vm1, %v10704_v37 }
  0xec   :  { %8564 = vmatmul.mubr.msk.f32.gmra.mrb[16].mxu0 %vm162_vm1, %v10713_v38 }
  0xed   :  { %8566 = vmatprep.mubr.msk.f32.mxu0 %vm162_vm1, %v10718_v39 }
  0xf0   :  { %8567 = vmatmul.mubr.msk.f32.gmra.mrb[18].mxu0 %vm162_vm1, %v10727_v40 }
  0xf1   :  { %8569 = vmatprep.mubr.msk.f32.mxu0 %vm162_vm1, %v10732_v41 }
  0xf4   :  { %8570 = vmatmul.mubr.msk.f32.gmra.mrb[20].mxu0 %vm162_vm1, %v10741_v42 }
  0xf5   :  { %8572 = vmatprep.mubr.msk.f32.mxu0 %vm162_vm1, %v10746_v43 }
  0xf8   :  { %8573 = vmatmul.mubr.msk.f32.gmra.mrb[22].mxu0 %vm162_vm1, %v10755_v44 }
  0xf9   :  { %8575 = vmatprep.mubr.msk.f32.mxu0 %vm162_vm1, %v10760_v45 }
  0xfc   :  { %8576 = vmatmul.mubr.msk.f32.gmra.mrb[24].mxu0 %vm162_vm1, %v10769_v46 }
  0xfd   :  { %8578 = vmatprep.mubr.msk.f32.mxu0 %vm162_vm1, %v10774_v47 }
 0x100   :  { %8579 = vmatmul.mubr.msk.f32.gmra.mrb[26].mxu0 %vm162_vm1, %v10789_v50 }
 0x101   :  { %8581 = vmatprep.mubr.msk.f32.mxu0 %vm162_vm1, %v10796_v52 }
 0x104   :  { %8582 = vmatmul.mubr.msk.f32.gmra.mrb[28].mxu0 %vm162_vm1, %v10806_v53 }
 0x105   :  { %8584 = vmatprep.mubr.msk.f32.mxu0 %vm162_vm1, %v10811_v54 }
 0x108   :  { %8585 = vmatmul.mubr.msk.f32.gmra.mrb[30].mxu0 %vm162_vm1, %v10820_v55 }
 0x109   :  { %8587 = vmatprep.mubr.msk.f32.mxu0 %vm162_vm1, %v10825_v56 }
 0x10c   :  { %8588 = vmatmul.mubr.msk.f32.gmra.mrb[32].mxu0 %vm162_vm1, %v10834_v57 }
 0x10d   :  { %8590 = vmatprep.mubr.msk.f32.mxu0 %vm162_vm1, %v10839_v58 }
 0x110   :  { %8591 = vmatmul.mubr.msk.f32.gmra.mrb[34].mxu0 %vm162_vm1, %v10848_v59 }
 0x111   :  { %8593 = vmatprep.mubr.msk.f32.mxu0 %vm162_vm1, %v10853_v60 }
 0x114   :  { %8594 = vmatmul.mubr.msk.f32.gmra.mrb[36].mxu0 %vm162_vm1, %v10862_v61 }
 0x115   :  { %8596 = vmatprep.mubr.msk.f32.mxu0 %vm162_vm1, %v10867_v62 }
 0x118   :  { %8597 = vmatmul.mubr.msk.f32.gmra.mrb[38].mxu0 %vm162_vm1, %v10876_v63 }
 0x119   :  { %8599 = vmatprep.mubr.msk.f32.mxu0 %vm162_vm1, %v10881_v0 }
 0x11c   :  { %8600 = vmatmul.mubr.msk.f32.gmra.mrb[40].mxu0 %vm162_vm1, %v10890_v1 }
 0x11d   :  { %8602 = vmatprep.mubr.msk.f32.mxu0 %vm162_vm1, %v10895_v2 }
 0x120   :  { %8603 = vmatmul.mubr.msk.f32.gmra.mrb[42].mxu0 %vm162_vm1, %v10904_v3 }
 0x121   :  { %8605 = vmatprep.mubr.msk.f32.mxu0 %vm162_vm1, %v10909_v4 }
 0x124   :  { %8606 = vmatmul.mubr.msk.f32.gmra.mrb[44].mxu0 %vm162_vm1, %v10918_v5 }
 0x125   :  { %8608 = vmatprep.mubr.msk.f32.mxu0 %vm162_vm1, %v10923_v7 }
 0x128   :  { %8609 = vmatmul.mubr.msk.f32.gmra.mrb[46].mxu0 %vm162_vm1, %v10932_v8 }
 0x129   :  { %8611 = vmatprep.mubr.msk.f32.mxu0 %vm162_vm1, %v10937_v9 }
 0x12c   :  { %8612 = vmatmul.mubr.msk.f32.gmra.mrb[48].mxu0 %vm162_vm1, %v10946_v10 }
 0x12d   :  { %8614 = vmatprep.mubr.msk.f32.mxu0 %vm162_vm1, %v10951_v11 }
 0x130   :  { %8615 = vmatmul.mubr.msk.f32.gmra.mrb[50].mxu0 %vm162_vm1, %v10960_v12 }
 0x131   :  { %8617 = vmatprep.mubr.msk.f32.mxu0 %vm162_vm1, %v10965_v13  ;;  %v13796_v13 = vld [vmem:[#allocation38_spill] sm:$0xff] }
 0x134   :  { %8618 = vmatmul.mubr.msk.f32.gmra.mrb[52].mxu0 %vm162_vm1, %v10974_v14  ;;  %v13797_v14 = vld [vmem:[#allocation39_spill] sm:$0xff] }
 0x135   :  { %8620 = vmatprep.mubr.msk.f32.mxu0 %vm162_vm1, %v10979_v17  ;;  %v13798_v17 = vld [vmem:[#allocation40_spill] sm:$0xff] }
 0x138   :  { %8621 = vmatmul.mubr.msk.f32.gmra.mrb[54].mxu0 %vm162_vm1, %v10988_v18  ;;  %v13799_v18 = vld [vmem:[#allocation41_spill] sm:$0xff] }
 0x139   :  { %8623 = vmatprep.mubr.msk.f32.mxu0 %vm162_vm1, %v10993_v20  ;;  %v13800_v20 = vld [vmem:[#allocation42_spill] sm:$0xff] }
 0x13c   :  { %8624 = vmatmul.mubr.msk.f32.gmra.mrb[56].mxu0 %vm162_vm1, %v13793_v49  ;;  %v13801_v49 = vld [vmem:[#allocation43_spill] sm:$0xff] }
 0x13d   :  { %8626 = vmatprep.mubr.msk.f32.mxu0 %vm162_vm1, %v13794_v19  ;;  %v13802_v19 = vld [vmem:[#allocation44_spill] sm:$0xff] }
 0x140   :  { %8627 = vmatmul.mubr.msk.f32.gmra.mrb[58].mxu0 %vm162_vm1, %v13795_v51  ;;  %v13803_v51 = vld [vmem:[#allocation45_spill] sm:$0xff] }
 0x141   :  { %8629 = vmatprep.mubr.msk.f32.mxu0 %vm162_vm1, %v13796_v13  ;;  %v13804_v13 = vld [vmem:[#allocation46_spill] sm:$0xff] }
 0x144   :  { %8630 = vmatmul.mubr.msk.f32.gmra.mrb[60].mxu0 %vm162_vm1, %v13797_v14  ;;  %v13805_v14 = vld [vmem:[#allocation47_spill] sm:$0xff] }
 0x145   :  { %8632 = vmatprep.mubr.msk.f32.mxu0 %vm162_vm1, %v13798_v17  ;;  %v13806_v17 = vld [vmem:[#allocation48_spill] sm:$0xff] }
 0x148   :  { %8633 = vmatmul.mubr.msk.f32.gmra.mrb[62].mxu0 %vm162_vm1, %v13799_v18  ;;  %v13807_v18 = vld [vmem:[#allocation49_spill] sm:$0xff] }
 0x149   :  { %8635 = vmatprep.mubr.msk.f32.mxu0 %vm162_vm1, %v13800_v20  ;;  %v13808_v20 = vld [vmem:[#allocation50_spill] sm:$0xff] }
 0x14c   :  { %8636 = vmatmul.mubr.msk.f32.gmra.mrb[64].mxu0 %vm162_vm1, %v13801_v49  ;;  %v13809_v49 = vld [vmem:[#allocation51_spill] sm:$0xff] }
 0x14d   :  { %8638 = vmatprep.mubr.msk.f32.mxu0 %vm162_vm1, %v13802_v19  ;;  %v13810_v19 = vld [vmem:[#allocation52_spill] sm:$0xff] }
 0x150   :  { %8639 = vmatmul.mubr.msk.f32.gmra.mrb[66].mxu0 %vm162_vm1, %v13803_v51  ;;  %v13811_v51 = vld [vmem:[#allocation53_spill] sm:$0xff] }
 0x151   :  { %8641 = vmatprep.mubr.msk.f32.mxu0 %vm162_vm1, %v13804_v13  ;;  %v13812_v13 = vld [vmem:[#allocation54_spill] sm:$0xff] }
 0x154   :  { %8642 = vmatmul.mubr.msk.f32.gmra.mrb[68].mxu0 %vm162_vm1, %v13805_v14  ;;  %v13813_v14 = vld [vmem:[#allocation55_spill] sm:$0xff] }
 0x155   :  { %8644 = vmatprep.mubr.msk.f32.mxu0 %vm162_vm1, %v13806_v17  ;;  %v13814_v17 = vld [vmem:[#allocation56_spill] sm:$0xff] }
 0x158   :  { %8645 = vmatmul.mubr.msk.f32.gmra.mrb[70].mxu0 %vm162_vm1, %v13807_v18  ;;  %v13815_v18 = vld [vmem:[#allocation57_spill] sm:$0xff] }
 0x159   :  { %8647 = vmatprep.mubr.msk.f32.mxu0 %vm162_vm1, %v13808_v20  ;;  %v13816_v20 = vld [vmem:[#allocation58_spill] sm:$0xff] }
 0x15c   :  { %8648 = vmatmul.mubr.msk.f32.gmra.mrb[72].mxu0 %vm162_vm1, %v13809_v49  ;;  %v13817_v49 = vld [vmem:[#allocation59_spill] sm:$0xff] }
 0x15d   :  { %8650 = vmatprep.mubr.msk.f32.mxu0 %vm162_vm1, %v13810_v19  ;;  %v13818_v19 = vld [vmem:[#allocation60_spill] sm:$0xff] }
 0x160   :  { %8651 = vmatmul.mubr.msk.f32.gmra.mrb[74].mxu0 %vm162_vm1, %v13811_v51  ;;  %v13819_v51 = vld [vmem:[#allocation61_spill] sm:$0xff] }
 0x161   :  { %8653 = vmatprep.mubr.msk.f32.mxu0 %vm162_vm1, %v13812_v13  ;;  %v13820_v13 = vld [vmem:[#allocation62_spill] sm:$0xff] }
 0x164   :  { %8654 = vmatmul.mubr.msk.f32.gmra.mrb[76].mxu0 %vm162_vm1, %v13813_v14 }
 0x165   :  { %8656 = vmatprep.mubr.msk.f32.mxu0 %vm162_vm1, %v13814_v17  ;;  %v13821_v17 = vld [vmem:[#allocation64_spill] sm:$0xff] }
 0x168   :  { %8657 = vmatmul.mubr.msk.f32.gmra.mrb[78].mxu0 %vm162_vm1, %v13815_v18 }
 0x169   :  { %8659 = vmatprep.mubr.msk.f32.mxu0 %vm162_vm1, %v13816_v20  ;;  %v11413_v20 = vld [vmem:[%s13592_s0 + $0x300] sm:$0xff] }
 0x16a   :  { %13822 = vst [vmem:[#allocation55_spill] sm:$0xff] %v11413_v20 }
 0x16c   :  { %8660 = vmatmul.mubr.msk.f32.gmra.mrb[80].mxu0 %vm162_vm1, %v13817_v49 }
 0x16d   :  { %8662 = vmatprep.mubr.msk.f32.mxu0 %vm162_vm1, %v13818_v19 }
 0x170   :  { %8663 = vmatmul.mubr.msk.f32.gmra.mrb[82].mxu0 %vm162_vm1, %v13819_v51 }
 0x171   :  { %8665 = vmatprep.mubr.msk.f32.mxu0 %vm162_vm1, %v13820_v13  ;;  %v11422_v13 = vld [vmem:[%s13592_s0 + $0x308] sm:$0xff] }
 0x172   :  { %13823 = vst [vmem:[#allocation57_spill] sm:$0xff] %v11422_v13 }
 0x174   :  { %8666 = vmatmul.mubr.msk.f32.gmra.mrb[84].mxu0 %vm162_vm1, %v11198_v15  ;;  %v7024_v15 = vld [vmem:[%s13591_s1 + $0x98] sm:$0xf] }
 0x175   :  { %8668 = vmatprep.mubr.msk.f32.mxu0 %vm162_vm1, %v13821_v17  ;;  %v11427_v17 = vld [vmem:[%s13592_s0 + $0x310] sm:$0xff] }
 0x176   :  { %13824 = vst [vmem:[#allocation59_spill] sm:$0xff] %v11427_v17 }
 0x178   :  { %8669 = vmatmul.mubr.msk.f32.gmra.mrb[86].mxu0 %vm162_vm1, %v11212_v16  ;;  %v11441_v16 = vld [vmem:[%s13592_s0 + $0x320] sm:$0xff] }
 0x179   :  { %8671 = vmatprep.mubr.msk.f32.mxu0 %vm162_vm1, %v11413_v20  ;;  %v11436_v20 = vld [vmem:[%s13592_s0 + $0x318] sm:$0xff]  ;;  %13826 = vst [vmem:[#allocation61_spill] sm:$0xff] %v11441_v16 }
 0x17a   :  { %13825 = vst [vmem:[#allocation60_spill] sm:$0xff] %v11436_v20 }
 0x17c   :  { %8672 = vmatmul.mubr.msk.f32.gmra.mrb[88].mxu0 %vm162_vm1, %v11422_v13  ;;  %v11455_v13 = vld [vmem:[%s13592_s0 + $0x330] sm:$0xff] }
 0x17d   :  { %8674 = vmatprep.mubr.msk.f32.mxu0 %vm162_vm1, %v11427_v17  ;;  %v11450_v17 = vld [vmem:[%s13592_s0 + $0x328] sm:$0xff]  ;;  %13828 = vst [vmem:[#allocation67_spill] sm:$0xff] %v11455_v13 }
 0x17e   :  { %13827 = vst [vmem:[#allocation66_spill] sm:$0xff] %v11450_v17 }
 0x180   :  { %8675 = vmatmul.mubr.msk.f32.gmra.mrb[90].mxu0 %vm162_vm1, %v11436_v20  ;;  %v7023_v20 = vld [vmem:[%s13591_s1 + $0x90] sm:$0xff] }
 0x181   :  { %8677 = vmatprep.mubr.msk.f32.mxu0 %vm162_vm1, %v11441_v16  ;;  %v11464_v16 = vld [vmem:[%s13592_s0 + $0x338] sm:$0xff] }
 0x182   :  { %13829 = vst [vmem:[#allocation68_spill] sm:$0xff] %v11464_v16 }
 0x184   :  { %8678 = vmatmul.mubr.msk.f32.gmra.mrb[92].mxu0 %vm162_vm1, %v11450_v17 }
 0x185   :  { %8680 = vmatprep.mubr.msk.f32.mxu0 %vm162_vm1, %v11455_v13  ;;  %v9603_v13 = vpack.c.bf16 %v7024_v15, %v7023_v20  ;;  %v6621_v15 = vld [vmem:[%s13591_s1 + $0x20] sm:$0xff] }
 0x188   :  { %8681 = vmatmul.mubr.msk.f32.gmra.mrb[94].mxu0 %vm162_vm1, %v11464_v16  ;;  %v6624_v16 = vld [vmem:[%s13591_s1 + $0x38] sm:$0xf] }
 0x189   :  { %8691 = vmatprep.mubr.msk.f32.mxu0 %vm162_vm1, %v10620_v25 }
 0x18c   :  { %8692 = vmatmul.mubr.msk.f32.vlgmr.msra.gmra.mrb[0].mxu0 %vm162_vm1, %v10629_v26 }
 0x18d   :  { %9602 = vmatpush3.bf16.msra.mxu0 %v11303_v48  ;;  %8694 = vmatprep.mubr.msk.f32.mxu0 %vm162_vm1, %v10634_v27  ;;  %v6623_v48 = vld [vmem:[%s13591_s1 + $0x30] sm:$0xff] }
 0x18e   :  { %9605 = vmatprep.subr.msk.bf16.mxu0 %vm10528_vm3, %v9603_v13  ;;  %v9563_v17 = vpack.c.bf16 %v6624_v16, %v6623_v48  ;;  %v13832_v16 = vld [vmem:[#allocation5_spill] sm:$0xff]  ;;  %v13843_v48 = vld [vmem:[#allocation40_spill] sm:$0xff] }
 0x190   :  { %8695 = vmatmul.mubr.msk.f32.gmra.mrb[2].mxu0 %vm162_vm1, %v10643_v28 }
 0x191   :  { %8697 = vmatprep.mubr.msk.f32.mxu0 %vm162_vm1, %v10648_v29  ;;  %9608 = vmatpush3.bf16.msk.msra.mxu0 %vm10528_vm3, %v9603_v13  ;;  %v6622_v13 = vld [vmem:[%s13591_s1 + $0x28] sm:$0xff] }
 0x192   :  { %v9559_v20 = vpack.c.bf16 %v6622_v13, %v6621_v15  ;;  %v13830_v15 = vld [vmem:[#allocation3_spill] sm:$0xff]  ;;  %v13831_v13 = vld [vmem:[#allocation4_spill] sm:$0xff] }
 0x194   :  { %8698 = vmatmul.mubr.msk.f32.gmra.mrb[4].mxu0 %vm162_vm1, %v10657_v30  ;;  %9560 = vmatprep.subr.bf16.mxu1 %v9559_v20 }
 0x195   :  { %8700 = vmatprep.mubr.msk.f32.mxu0 %vm162_vm1, %v10662_v31  ;;  %9562 = vmatpush3.bf16.msra.mxu1 %v9559_v20  ;;  %v13842_v20 = vld [vmem:[#allocation39_spill] sm:$0xff] }
 0x196   :  { %9565 = vmatprep.subr.msk.bf16.mxu1 %vm10528_vm3, %v9563_v17 }
 0x198   :  { %8701 = vmatmul.mubr.msk.f32.gmra.mrb[6].mxu0 %vm162_vm1, %v10671_v32 }
 0x199   :  { %8703 = vmatprep.mubr.msk.f32.mxu0 %vm162_vm1, %v10676_v33  ;;  %9568 = vmatpush3.bf16.msk.msra.mxu1 %vm10528_vm3, %v9563_v17  ;;  %v13841_v17 = vld [vmem:[#allocation38_spill] sm:$0xff] }
 0x19c   :  { %8704 = vmatmul.mubr.msk.f32.gmra.mrb[8].mxu0 %vm162_vm1, %v10685_v34  ;;  %8236 = vmatmul.mubr.msk.f32.vlgmr.msra.gmra.mrb[0].mxu1 %vm162_vm1, %v13830_v15  ;;  %v13844_v15 = vld [vmem:[#allocation41_spill] sm:$0xff] }
 0x19d   :  { %8706 = vmatprep.mubr.msk.f32.mxu0 %vm162_vm1, %v10690_v35  ;;  %8238 = vmatprep.mubr.msk.f32.mxu1 %vm162_vm1, %v13831_v13  ;;  %v13845_v13 = vld [vmem:[#allocation42_spill] sm:$0xff] }
 0x1a0   :  { %8707 = vmatmul.mubr.msk.f32.gmra.mrb[10].mxu0 %vm162_vm1, %v10699_v36  ;;  %8239 = vmatmul.mubr.msk.f32.gmra.mrb[2].mxu1 %vm162_vm1, %v13832_v16  ;;  %v13846_v16 = vld [vmem:[#allocation43_spill] sm:$0xff] }
 0x1a1   :  { %8709 = vmatprep.mubr.msk.f32.mxu0 %vm162_vm1, %v10704_v37  ;;  %8241 = vmatprep.mubr.msk.f32.mxu1 %vm162_vm1, %v10588_v21  ;;  %v13833_v21 = vld [vmem:[#allocation30_spill] sm:$0xff] }
 0x1a4   :  { %8710 = vmatmul.mubr.msk.f32.gmra.mrb[12].mxu0 %vm162_vm1, %v10713_v38  ;;  %8242 = vmatmul.mubr.msk.f32.gmra.mrb[4].mxu1 %vm162_vm1, %v10599_v22  ;;  %v13834_v22 = vld [vmem:[#allocation31_spill] sm:$0xff] }
 0x1a5   :  { %8712 = vmatprep.mubr.msk.f32.mxu0 %vm162_vm1, %v10718_v39  ;;  %8244 = vmatprep.mubr.msk.f32.mxu1 %vm162_vm1, %v10606_v23  ;;  %v13835_v23 = vld [vmem:[#allocation32_spill] sm:$0xff] }
 0x1a8   :  { %8713 = vmatmul.mubr.msk.f32.gmra.mrb[14].mxu0 %vm162_vm1, %v10727_v40  ;;  %8245 = vmatmul.mubr.msk.f32.gmra.mrb[6].mxu1 %vm162_vm1, %v10615_v24  ;;  %v13836_v24 = vld [vmem:[#allocation33_spill] sm:$0xff] }
 0x1a9   :  { %8715 = vmatprep.mubr.msk.f32.mxu0 %vm162_vm1, %v10732_v41  ;;  %8247 = vmatprep.mubr.msk.f32.mxu1 %vm162_vm1, %v10620_v25  ;;  %v13837_v25 = vld [vmem:[#allocation34_spill] sm:$0xff] }
 0x1ac   :  { %8716 = vmatmul.mubr.msk.f32.gmra.mrb[16].mxu0 %vm162_vm1, %v10741_v42  ;;  %8248 = vmatmul.mubr.msk.f32.gmra.mrb[8].mxu1 %vm162_vm1, %v10629_v26  ;;  %v13838_v26 = vld [vmem:[#allocation35_spill] sm:$0xff] }
 0x1ad   :  { %8718 = vmatprep.mubr.msk.f32.mxu0 %vm162_vm1, %v10746_v43  ;;  %8250 = vmatprep.mubr.msk.f32.mxu1 %vm162_vm1, %v10634_v27  ;;  %v13839_v27 = vld [vmem:[#allocation36_spill] sm:$0xff] }
 0x1b0   :  { %8719 = vmatmul.mubr.msk.f32.gmra.mrb[18].mxu0 %vm162_vm1, %v10755_v44  ;;  %8251 = vmatmul.mubr.msk.f32.gmra.mrb[10].mxu1 %vm162_vm1, %v10643_v28  ;;  %v13840_v28 = vld [vmem:[#allocation37_spill] sm:$0xff] }
 0x1b1   :  { %8721 = vmatprep.mubr.msk.f32.mxu0 %vm162_vm1, %v10760_v45  ;;  %8253 = vmatprep.mubr.msk.f32.mxu1 %vm162_vm1, %v10648_v29 }
 0x1b4   :  { %8722 = vmatmul.mubr.msk.f32.gmra.mrb[20].mxu0 %vm162_vm1, %v10769_v46  ;;  %8254 = vmatmul.mubr.msk.f32.gmra.mrb[12].mxu1 %vm162_vm1, %v10657_v30 }
 0x1b5   :  { %8724 = vmatprep.mubr.msk.f32.mxu0 %vm162_vm1, %v10774_v47  ;;  %8256 = vmatprep.mubr.msk.f32.mxu1 %vm162_vm1, %v10662_v31 }
 0x1b8   :  { %8725 = vmatmul.mubr.msk.f32.gmra.mrb[22].mxu0 %vm162_vm1, %v10789_v50  ;;  %8257 = vmatmul.mubr.msk.f32.gmra.mrb[14].mxu1 %vm162_vm1, %v10671_v32 }
 0x1b9   :  { %8727 = vmatprep.mubr.msk.f32.mxu0 %vm162_vm1, %v10796_v52  ;;  %8259 = vmatprep.mubr.msk.f32.mxu1 %vm162_vm1, %v10676_v33 }
 0x1bc   :  { %8728 = vmatmul.mubr.msk.f32.gmra.mrb[24].mxu0 %vm162_vm1, %v10806_v53  ;;  %8260 = vmatmul.mubr.msk.f32.gmra.mrb[16].mxu1 %vm162_vm1, %v10685_v34 }
 0x1bd   :  { %8730 = vmatprep.mubr.msk.f32.mxu0 %vm162_vm1, %v10811_v54  ;;  %8262 = vmatprep.mubr.msk.f32.mxu1 %vm162_vm1, %v10690_v35 }
 0x1c0   :  { %8731 = vmatmul.mubr.msk.f32.gmra.mrb[26].mxu0 %vm162_vm1, %v10820_v55  ;;  %8263 = vmatmul.mubr.msk.f32.gmra.mrb[18].mxu1 %vm162_vm1, %v10699_v36 }
 0x1c1   :  { %8733 = vmatprep.mubr.msk.f32.mxu0 %vm162_vm1, %v10825_v56  ;;  %8265 = vmatprep.mubr.msk.f32.mxu1 %vm162_vm1, %v10704_v37 }
 0x1c4   :  { %8734 = vmatmul.mubr.msk.f32.gmra.mrb[28].mxu0 %vm162_vm1, %v10834_v57  ;;  %8266 = vmatmul.mubr.msk.f32.gmra.mrb[20].mxu1 %vm162_vm1, %v10713_v38 }
 0x1c5   :  { %8736 = vmatprep.mubr.msk.f32.mxu0 %vm162_vm1, %v10839_v58  ;;  %8268 = vmatprep.mubr.msk.f32.mxu1 %vm162_vm1, %v10718_v39 }
 0x1c8   :  { %8737 = vmatmul.mubr.msk.f32.gmra.mrb[30].mxu0 %vm162_vm1, %v10848_v59  ;;  %8269 = vmatmul.mubr.msk.f32.gmra.mrb[22].mxu1 %vm162_vm1, %v10727_v40 }
 0x1c9   :  { %8739 = vmatprep.mubr.msk.f32.mxu0 %vm162_vm1, %v10853_v60  ;;  %8271 = vmatprep.mubr.msk.f32.mxu1 %vm162_vm1, %v10732_v41 }
 0x1cc   :  { %8740 = vmatmul.mubr.msk.f32.gmra.mrb[32].mxu0 %vm162_vm1, %v10862_v61  ;;  %8272 = vmatmul.mubr.msk.f32.gmra.mrb[24].mxu1 %vm162_vm1, %v10741_v42 }
 0x1cd   :  { %8742 = vmatprep.mubr.msk.f32.mxu0 %vm162_vm1, %v10867_v62  ;;  %8274 = vmatprep.mubr.msk.f32.mxu1 %vm162_vm1, %v10746_v43 }
 0x1d0   :  { %8743 = vmatmul.mubr.msk.f32.gmra.mrb[34].mxu0 %vm162_vm1, %v10876_v63  ;;  %8275 = vmatmul.mubr.msk.f32.gmra.mrb[26].mxu1 %vm162_vm1, %v10755_v44  ;;  %v13848_v44 = vld [vmem:[#allocation45_spill] sm:$0xff] }
 0x1d1   :  { %8745 = vmatprep.mubr.msk.f32.mxu0 %vm162_vm1, %v10881_v0  ;;  %8277 = vmatprep.mubr.msk.f32.mxu1 %vm162_vm1, %v10760_v45  ;;  %v13849_v45 = vld [vmem:[#allocation46_spill] sm:$0xff] }
 0x1d4   :  { %8746 = vmatmul.mubr.msk.f32.gmra.mrb[36].mxu0 %vm162_vm1, %v10890_v1  ;;  %8278 = vmatmul.mubr.msk.f32.gmra.mrb[28].mxu1 %vm162_vm1, %v10769_v46  ;;  %v13850_v46 = vld [vmem:[#allocation47_spill] sm:$0xff] }
 0x1d5   :  { %8748 = vmatprep.mubr.msk.f32.mxu0 %vm162_vm1, %v10895_v2  ;;  %8280 = vmatprep.mubr.msk.f32.mxu1 %vm162_vm1, %v10774_v47  ;;  %v13851_v47 = vld [vmem:[#allocation48_spill] sm:$0xff] }
 0x1d8   :  { %8749 = vmatmul.mubr.msk.f32.gmra.mrb[38].mxu0 %vm162_vm1, %v10904_v3  ;;  %8281 = vmatmul.mubr.msk.f32.gmra.mrb[30].mxu1 %vm162_vm1, %v10789_v50  ;;  %v13852_v50 = vld [vmem:[#allocation49_spill] sm:$0xff] }
 0x1d9   :  { %8751 = vmatprep.mubr.msk.f32.mxu0 %vm162_vm1, %v10909_v4  ;;  %8283 = vmatprep.mubr.msk.f32.mxu1 %vm162_vm1, %v10796_v52  ;;  %v13853_v52 = vld [vmem:[#allocation50_spill] sm:$0xff] }
 0x1dc   :  { %8752 = vmatmul.mubr.msk.f32.gmra.mrb[40].mxu0 %vm162_vm1, %v10918_v5  ;;  %8284 = vmatmul.mubr.msk.f32.gmra.mrb[32].mxu1 %vm162_vm1, %v10806_v53  ;;  %v13854_v53 = vld [vmem:[#allocation51_spill] sm:$0xff] }
 0x1dd   :  { %8754 = vmatprep.mubr.msk.f32.mxu0 %vm162_vm1, %v10923_v7  ;;  %8286 = vmatprep.mubr.msk.f32.mxu1 %vm162_vm1, %v10811_v54  ;;  %v13855_v54 = vld [vmem:[#allocation52_spill] sm:$0xff] }
 0x1e0   :  { %8755 = vmatmul.mubr.msk.f32.gmra.mrb[42].mxu0 %vm162_vm1, %v10932_v8  ;;  %8287 = vmatmul.mubr.msk.f32.gmra.mrb[34].mxu1 %vm162_vm1, %v10820_v55  ;;  %v13856_v55 = vld [vmem:[#allocation53_spill] sm:$0xff] }
 0x1e1   :  { %8757 = vmatprep.mubr.msk.f32.mxu0 %vm162_vm1, %v10937_v9  ;;  %8289 = vmatprep.mubr.msk.f32.mxu1 %vm162_vm1, %v10825_v56  ;;  %v13857_v56 = vld [vmem:[#allocation54_spill] sm:$0xff] }
 0x1e4   :  { %8758 = vmatmul.mubr.msk.f32.gmra.mrb[44].mxu0 %vm162_vm1, %v10946_v10  ;;  %8290 = vmatmul.mubr.msk.f32.gmra.mrb[36].mxu1 %vm162_vm1, %v10834_v57 }
 0x1e5   :  { %8760 = vmatprep.mubr.msk.f32.mxu0 %vm162_vm1, %v10951_v11  ;;  %8292 = vmatprep.mubr.msk.f32.mxu1 %vm162_vm1, %v10839_v58  ;;  %v13858_v58 = vld [vmem:[#allocation56_spill] sm:$0xff] }
 0x1e8   :  { %8761 = vmatmul.mubr.msk.f32.gmra.mrb[46].mxu0 %vm162_vm1, %v10960_v12  ;;  %8293 = vmatmul.mubr.msk.f32.gmra.mrb[38].mxu1 %vm162_vm1, %v10848_v59 }
 0x1e9   :  { %8763 = vmatprep.mubr.msk.f32.mxu0 %vm162_vm1, %v13833_v21  ;;  %8295 = vmatprep.mubr.msk.f32.mxu1 %vm162_vm1, %v10853_v60  ;;  %v13859_v60 = vld [vmem:[#allocation58_spill] sm:$0xff] }
 0x1ec   :  { %8764 = vmatmul.mubr.msk.f32.gmra.mrb[48].mxu0 %vm162_vm1, %v13834_v22  ;;  %8296 = vmatmul.mubr.msk.f32.gmra.mrb[40].mxu1 %vm162_vm1, %v10862_v61 }
 0x1ed   :  { %8766 = vmatprep.mubr.msk.f32.mxu0 %vm162_vm1, %v13835_v23  ;;  %8298 = vmatprep.mubr.msk.f32.mxu1 %vm162_vm1, %v10867_v62 }
 0x1f0   :  { %8767 = vmatmul.mubr.msk.f32.gmra.mrb[50].mxu0 %vm162_vm1, %v13836_v24  ;;  %8299 = vmatmul.mubr.msk.f32.gmra.mrb[42].mxu1 %vm162_vm1, %v10876_v63 }
 0x1f1   :  { %8769 = vmatprep.mubr.msk.f32.mxu0 %vm162_vm1, %v13837_v25  ;;  %8301 = vmatprep.mubr.msk.f32.mxu1 %vm162_vm1, %v10881_v0  ;;  %v13860_v0 = vld [vmem:[#allocation62_spill] sm:$0xff] }
 0x1f4   :  { %8770 = vmatmul.mubr.msk.f32.gmra.mrb[52].mxu0 %vm162_vm1, %v13838_v26  ;;  %8302 = vmatmul.mubr.msk.f32.gmra.mrb[44].mxu1 %vm162_vm1, %v10890_v1  ;;  %v13861_v1 = vld [vmem:[#allocation63_spill] sm:$0xff] }
 0x1f5   :  { %8772 = vmatprep.mubr.msk.f32.mxu0 %vm162_vm1, %v13839_v27  ;;  %8304 = vmatprep.mubr.msk.f32.mxu1 %vm162_vm1, %v10895_v2  ;;  %v13862_v2 = vld [vmem:[#allocation64_spill] sm:$0xff] }
 0x1f8   :  { %8773 = vmatmul.mubr.msk.f32.gmra.mrb[54].mxu0 %vm162_vm1, %v13840_v28  ;;  %8305 = vmatmul.mubr.msk.f32.gmra.mrb[46].mxu1 %vm162_vm1, %v10904_v3  ;;  %v13863_v3 = vld [vmem:[#allocation65_spill] sm:$0xff] }
 0x1f9   :  { %8775 = vmatprep.mubr.msk.f32.mxu0 %vm162_vm1, %v13841_v17  ;;  %8307 = vmatprep.mubr.msk.f32.mxu1 %vm162_vm1, %v10909_v4  ;;  %v13864_v4 = vld [vmem:[#allocation55_spill] sm:$0xff] }
 0x1fc   :  { %8776 = vmatmul.mubr.msk.f32.gmra.mrb[56].mxu0 %vm162_vm1, %v13842_v20  ;;  %8308 = vmatmul.mubr.msk.f32.gmra.mrb[48].mxu1 %vm162_vm1, %v10918_v5  ;;  %v13865_v5 = vld [vmem:[#allocation57_spill] sm:$0xff] }
 0x1fd   :  { %8778 = vmatprep.mubr.msk.f32.mxu0 %vm162_vm1, %v13843_v48  ;;  %8310 = vmatprep.mubr.msk.f32.mxu1 %vm162_vm1, %v10923_v7  ;;  %v13866_v7 = vld [vmem:[#allocation59_spill] sm:$0xff] }
 0x200   :  { %8779 = vmatmul.mubr.msk.f32.gmra.mrb[58].mxu0 %vm162_vm1, %v13844_v15  ;;  %8311 = vmatmul.mubr.msk.f32.gmra.mrb[50].mxu1 %vm162_vm1, %v10932_v8  ;;  %v13867_v8 = vld [vmem:[#allocation60_spill] sm:$0xff] }
 0x201   :  { %8781 = vmatprep.mubr.msk.f32.mxu0 %vm162_vm1, %v13845_v13  ;;  %8313 = vmatprep.mubr.msk.f32.mxu1 %vm162_vm1, %v10937_v9  ;;  %v13868_v9 = vld [vmem:[#allocation61_spill] sm:$0xff] }
 0x204   :  { %8782 = vmatmul.mubr.msk.f32.gmra.mrb[60].mxu0 %vm162_vm1, %v13846_v16  ;;  %8314 = vmatmul.mubr.msk.f32.gmra.mrb[52].mxu1 %vm162_vm1, %v10946_v10  ;;  %v13869_v10 = vld [vmem:[#allocation66_spill] sm:$0xff] }
 0x205   :  { %8784 = vmatprep.mubr.msk.f32.mxu0 %vm162_vm1, %v13847_v6  ;;  %8316 = vmatprep.mubr.msk.f32.mxu1 %vm162_vm1, %v10951_v11  ;;  %v13870_v11 = vld [vmem:[#allocation67_spill] sm:$0xff] }
 0x208   :  { %8785 = vmatmul.mubr.msk.f32.gmra.mrb[62].mxu0 %vm162_vm1, %v13848_v44  ;;  %8317 = vmatmul.mubr.msk.f32.gmra.mrb[54].mxu1 %vm162_vm1, %v10960_v12  ;;  %v11796_v12 = vld [vmem:[%s13592_s0 + $0x340] sm:$0xff] }
 0x209   :  { %8787 = vmatprep.mubr.msk.f32.mxu0 %vm162_vm1, %v13849_v45  ;;  %8319 = vmatprep.mubr.msk.f32.mxu1 %vm162_vm1, %v13833_v21  ;;  %13871 = vst [vmem:[#allocation3_spill] sm:$0xff] %v11796_v12 }
 0x20c   :  { %8788 = vmatmul.mubr.msk.f32.gmra.mrb[64].mxu0 %vm162_vm1, %v13850_v46  ;;  %8320 = vmatmul.mubr.msk.f32.gmra.mrb[56].mxu1 %vm162_vm1, %v13834_v22 }
 0x20d   :  { %8790 = vmatprep.mubr.msk.f32.mxu0 %vm162_vm1, %v13851_v47  ;;  %8322 = vmatprep.mubr.msk.f32.mxu1 %vm162_vm1, %v13835_v23 }
 0x210   :  { %8791 = vmatmul.mubr.msk.f32.gmra.mrb[66].mxu0 %vm162_vm1, %v13852_v50  ;;  %8323 = vmatmul.mubr.msk.f32.gmra.mrb[58].mxu1 %vm162_vm1, %v13836_v24 }
 0x211   :  { %8793 = vmatprep.mubr.msk.f32.mxu0 %vm162_vm1, %v13853_v52  ;;  %8325 = vmatprep.mubr.msk.f32.mxu1 %vm162_vm1, %v13837_v25 }
 0x214   :  { %8794 = vmatmul.mubr.msk.f32.gmra.mrb[68].mxu0 %vm162_vm1, %v13854_v53  ;;  %8326 = vmatmul.mubr.msk.f32.gmra.mrb[60].mxu1 %vm162_vm1, %v13838_v26 }
 0x215   :  { %8796 = vmatprep.mubr.msk.f32.mxu0 %vm162_vm1, %v13855_v54  ;;  %8328 = vmatprep.mubr.msk.f32.mxu1 %vm162_vm1, %v13839_v27 }
 0x218   :  { %8797 = vmatmul.mubr.msk.f32.gmra.mrb[70].mxu0 %vm162_vm1, %v13856_v55  ;;  %8329 = vmatmul.mubr.msk.f32.gmra.mrb[62].mxu1 %vm162_vm1, %v13840_v28 }
 0x219   :  { %8799 = vmatprep.mubr.msk.f32.mxu0 %vm162_vm1, %v13857_v56  ;;  %8331 = vmatprep.mubr.msk.f32.mxu1 %vm162_vm1, %v13841_v17 }
 0x21c   :  { %8800 = vmatmul.mubr.msk.f32.gmra.mrb[72].mxu0 %vm162_vm1, %v13813_v14  ;;  %8332 = vmatmul.mubr.msk.f32.gmra.mrb[64].mxu1 %vm162_vm1, %v13842_v20 }
 0x21d   :  { %8802 = vmatprep.mubr.msk.f32.mxu0 %vm162_vm1, %v13858_v58  ;;  %8334 = vmatprep.mubr.msk.f32.mxu1 %vm162_vm1, %v13843_v48 }
 0x220   :  { %8803 = vmatmul.mubr.msk.f32.gmra.mrb[74].mxu0 %vm162_vm1, %v13815_v18  ;;  %8335 = vmatmul.mubr.msk.f32.gmra.mrb[66].mxu1 %vm162_vm1, %v13844_v15 }
 0x221   :  { %8805 = vmatprep.mubr.msk.f32.mxu0 %vm162_vm1, %v13859_v60  ;;  %8337 = vmatprep.mubr.msk.f32.mxu1 %vm162_vm1, %v13845_v13 }
 0x224   :  { %8806 = vmatmul.mubr.msk.f32.gmra.mrb[76].mxu0 %vm162_vm1, %v13817_v49  ;;  %8338 = vmatmul.mubr.msk.f32.gmra.mrb[68].mxu1 %vm162_vm1, %v13846_v16 }
 0x225   :  { %8808 = vmatprep.mubr.msk.f32.mxu0 %vm162_vm1, %v13818_v19  ;;  %8340 = vmatprep.mubr.msk.f32.mxu1 %vm162_vm1, %v13847_v6 }
 0x228   :  { %8809 = vmatmul.mubr.msk.f32.gmra.mrb[78].mxu0 %vm162_vm1, %v13819_v51  ;;  %8341 = vmatmul.mubr.msk.f32.gmra.mrb[70].mxu1 %vm162_vm1, %v13848_v44 }
 0x229   :  { %8811 = vmatprep.mubr.msk.f32.mxu0 %vm162_vm1, %v13860_v0  ;;  %8343 = vmatprep.mubr.msk.f32.mxu1 %vm162_vm1, %v13849_v45 }
 0x22c   :  { %8812 = vmatmul.mubr.msk.f32.gmra.mrb[80].mxu0 %vm162_vm1, %v13861_v1  ;;  %8344 = vmatmul.mubr.msk.f32.gmra.mrb[72].mxu1 %vm162_vm1, %v13850_v46 }
 0x22d   :  { %8814 = vmatprep.mubr.msk.f32.mxu0 %vm162_vm1, %v13862_v2  ;;  %8346 = vmatprep.mubr.msk.f32.mxu1 %vm162_vm1, %v13851_v47 }
 0x230   :  { %8815 = vmatmul.mubr.msk.f32.gmra.mrb[82].mxu0 %vm162_vm1, %v13863_v3  ;;  %8347 = vmatmul.mubr.msk.f32.gmra.mrb[74].mxu1 %vm162_vm1, %v13852_v50 }
 0x231   :  { %8817 = vmatprep.mubr.msk.f32.mxu0 %vm162_vm1, %v13864_v4  ;;  %8349 = vmatprep.mubr.msk.f32.mxu1 %vm162_vm1, %v13853_v52 }
 0x234   :  { %8818 = vmatmul.mubr.msk.f32.gmra.mrb[84].mxu0 %vm162_vm1, %v13865_v5  ;;  %8350 = vmatmul.mubr.msk.f32.gmra.mrb[76].mxu1 %vm162_vm1, %v13854_v53 }
 0x235   :  { %8820 = vmatprep.mubr.msk.f32.mxu0 %vm162_vm1, %v13866_v7  ;;  %8352 = vmatprep.mubr.msk.f32.mxu1 %vm162_vm1, %v13855_v54 }
 0x238   :  { %8821 = vmatmul.mubr.msk.f32.gmra.mrb[86].mxu0 %vm162_vm1, %v13867_v8  ;;  %8353 = vmatmul.mubr.msk.f32.gmra.mrb[78].mxu1 %vm162_vm1, %v13856_v55 }
 0x239   :  { %8823 = vmatprep.mubr.msk.f32.mxu0 %vm162_vm1, %v13868_v9  ;;  %v13872_v9 = vld [vmem:[#allocation68_spill] sm:$0xff]  ;;  %8355 = vmatprep.mubr.msk.f32.mxu1 %vm162_vm1, %v13857_v56 }
 0x23c   :  { %8824 = vmatmul.mubr.msk.f32.gmra.mrb[88].mxu0 %vm162_vm1, %v13869_v10  ;;  %v11814_v10 = vld [vmem:[%s13592_s0 + $0x350] sm:$0xff]  ;;  %8356 = vmatmul.mubr.msk.f32.gmra.mrb[80].mxu1 %vm162_vm1, %v13813_v14 }
 0x23d   :  { %8826 = vmatprep.mubr.msk.f32.mxu0 %vm162_vm1, %v13870_v11  ;;  %v11809_v11 = vld [vmem:[%s13592_s0 + $0x348] sm:$0xff]  ;;  %8358 = vmatprep.mubr.msk.f32.mxu1 %vm162_vm1, %v13858_v58 }
 0x240   :  { %8827 = vmatmul.mubr.msk.f32.gmra.mrb[90].mxu0 %vm162_vm1, %v13872_v9  ;;  %8359 = vmatmul.mubr.msk.f32.gmra.mrb[82].mxu1 %vm162_vm1, %v13815_v18 }
 0x241   :  { %8829 = vmatprep.mubr.msk.f32.mxu0 %vm162_vm1, %v11796_v12  ;;  %v11827_v12 = vld [vmem:[%s13592_s0 + $0x358] sm:$0xff]  ;;  %8361 = vmatprep.mubr.msk.f32.mxu1 %vm162_vm1, %v13859_v60 }
 0x244   :  { %8830 = vmatmul.mubr.msk.f32.gmra.mrb[92].mxu0 %vm162_vm1, %v11809_v11  ;;  %8362 = vmatmul.mubr.msk.f32.gmra.mrb[84].mxu1 %vm162_vm1, %v13817_v49 }
 0x245   :  { %8832 = vmatprep.mubr.msk.f32.mxu0 %vm162_vm1, %v11814_v10  ;;  %8364 = vmatprep.mubr.msk.f32.mxu1 %vm162_vm1, %v13818_v19 }
 0x248   :  { %8833 = vmatmul.mubr.msk.f32.gmra.mrb[94].mxu0 %vm162_vm1, %v11827_v12  ;;  %8365 = vmatmul.mubr.msk.f32.gmra.mrb[86].mxu1 %vm162_vm1, %v13819_v51 }
 0x249   :  { %8843 = vmatprep.mubr.msk.f32.mxu0 %vm162_vm1, %v10648_v29  ;;  %v13873_v29 = vld [vmem:[#allocation6_spill] sm:$0xff]  ;;  %8367 = vmatprep.mubr.msk.f32.mxu1 %vm162_vm1, %v13860_v0 }
 0x24c   :  { %8844 = vmatmul.mubr.msk.f32.vlgmr.msra.gmra.mrb[0].mxu0 %vm162_vm1, %v10657_v30  ;;  %v13874_v30 = vld [vmem:[#allocation7_spill] sm:$0xff]  ;;  %8368 = vmatmul.mubr.msk.f32.gmra.mrb[88].mxu1 %vm162_vm1, %v13861_v1 }
 0x24d   :  { %8846 = vmatprep.mubr.msk.f32.mxu0 %vm162_vm1, %v10662_v31  ;;  %v13875_v31 = vld [vmem:[#allocation8_spill] sm:$0xff]  ;;  %8370 = vmatprep.mubr.msk.f32.mxu1 %vm162_vm1, %v13862_v2 }
 0x250   :  { %8847 = vmatmul.mubr.msk.f32.gmra.mrb[2].mxu0 %vm162_vm1, %v10671_v32  ;;  %v13876_v32 = vld [vmem:[#allocation9_spill] sm:$0xff]  ;;  %8371 = vmatmul.mubr.msk.f32.gmra.mrb[90].mxu1 %vm162_vm1, %v13863_v3 }
 0x251   :  { %8849 = vmatprep.mubr.msk.f32.mxu0 %vm162_vm1, %v10676_v33  ;;  %v13877_v33 = vld [vmem:[#allocation10_spill] sm:$0xff]  ;;  %8373 = vmatprep.mubr.msk.f32.mxu1 %vm162_vm1, %v13864_v4 }
 0x254   :  { %8850 = vmatmul.mubr.msk.f32.gmra.mrb[4].mxu0 %vm162_vm1, %v10685_v34  ;;  %v13878_v34 = vld [vmem:[#allocation11_spill] sm:$0xff]  ;;  %8374 = vmatmul.mubr.msk.f32.gmra.mrb[92].mxu1 %vm162_vm1, %v13865_v5 }
 0x255   :  { %8852 = vmatprep.mubr.msk.f32.mxu0 %vm162_vm1, %v10690_v35  ;;  %v13879_v35 = vld [vmem:[#allocation12_spill] sm:$0xff]  ;;  %8376 = vmatprep.mubr.msk.f32.mxu1 %vm162_vm1, %v13866_v7 }
 0x258   :  { %8853 = vmatmul.mubr.msk.f32.gmra.mrb[6].mxu0 %vm162_vm1, %v10699_v36  ;;  %v13880_v36 = vld [vmem:[#allocation13_spill] sm:$0xff]  ;;  %8377 = vmatmul.mubr.msk.f32.gmra.mrb[94].mxu1 %vm162_vm1, %v13867_v8 }
 0x259   :  { %8855 = vmatprep.mubr.msk.f32.mxu0 %vm162_vm1, %v10704_v37  ;;  %v13881_v37 = vld [vmem:[#allocation14_spill] sm:$0xff] }
 0x25c   :  { %8856 = vmatmul.mubr.msk.f32.gmra.mrb[8].mxu0 %vm162_vm1, %v10713_v38  ;;  %v13882_v38 = vld [vmem:[#allocation15_spill] sm:$0xff] }
 0x25d   :  { %8858 = vmatprep.mubr.msk.f32.mxu0 %vm162_vm1, %v10718_v39  ;;  %v13883_v39 = vld [vmem:[#allocation16_spill] sm:$0xff] }
 0x260   :  { %8859 = vmatmul.mubr.msk.f32.gmra.mrb[10].mxu0 %vm162_vm1, %v10727_v40  ;;  %v13884_v40 = vld [vmem:[#allocation17_spill] sm:$0xff] }
 0x261   :  { %8861 = vmatprep.mubr.msk.f32.mxu0 %vm162_vm1, %v10732_v41  ;;  %v13885_v41 = vld [vmem:[#allocation18_spill] sm:$0xff] }
 0x264   :  { %8862 = vmatmul.mubr.msk.f32.gmra.mrb[12].mxu0 %vm162_vm1, %v10741_v42  ;;  %v13886_v42 = vld [vmem:[#allocation19_spill] sm:$0xff] }
 0x265   :  { %8864 = vmatprep.mubr.msk.f32.mxu0 %vm162_vm1, %v10746_v43  ;;  %v13887_v43 = vld [vmem:[#allocation20_spill] sm:$0xff] }
 0x268   :  { %8865 = vmatmul.mubr.msk.f32.gmra.mrb[14].mxu0 %vm162_vm1, %v13873_v29  ;;  %v13893_v29 = vld [vmem:[#allocation26_spill] sm:$0xff] }
 0x269   :  { %8867 = vmatprep.mubr.msk.f32.mxu0 %vm162_vm1, %v13874_v30  ;;  %v13894_v30 = vld [vmem:[#allocation27_spill] sm:$0xff] }
 0x26c   :  { %8868 = vmatmul.mubr.msk.f32.gmra.mrb[16].mxu0 %vm162_vm1, %v13875_v31  ;;  %v13895_v31 = vld [vmem:[#allocation28_spill] sm:$0xff] }
 0x26d   :  { %8870 = vmatprep.mubr.msk.f32.mxu0 %vm162_vm1, %v13876_v32 }
 0x26f   :  { %v11983_v32 = vpop.f32.mrb[0].mxu1 }
 0x270   :  { %8871 = vmatmul.mubr.msk.f32.gmra.mrb[18].mxu0 %vm162_vm1, %v13877_v33  ;;  %v11985_v33 = vpop.f32.mrb[1].mxu1 }
 0x271   :  { %8873 = vmatprep.mubr.msk.f32.mxu0 %vm162_vm1, %v13878_v34  ;;  %v13896_v34 = vld [vmem:[#allocation29_spill] sm:$0xff] }
 0x274   :  { %8874 = vmatmul.mubr.msk.f32.gmra.mrb[20].mxu0 %vm162_vm1, %v13879_v35  ;;  %v11991_v35 = vpop.f32.mrb[2].mxu1 }
 0x275   :  { %8876 = vmatprep.mubr.msk.f32.mxu0 %vm162_vm1, %v13880_v36  ;;  %v11993_v36 = vpop.f32.mrb[3].mxu1 }
 0x278   :  { %8877 = vmatmul.mubr.msk.f32.gmra.mrb[22].mxu0 %vm162_vm1, %v13881_v37  ;;  %v11999_v37 = vpop.f32.mrb[4].mxu1 }
 0x279   :  { %8879 = vmatprep.mubr.msk.f32.mxu0 %vm162_vm1, %v13882_v38  ;;  %v12001_v38 = vpop.f32.mrb[5].mxu1 }
 0x27c   :  { %8880 = vmatmul.mubr.msk.f32.gmra.mrb[24].mxu0 %vm162_vm1, %v10834_v57  ;;  %v13888_v57 = vld [vmem:[#allocation21_spill] sm:$0xff] }
 0x27d   :  { %8882 = vmatprep.mubr.msk.f32.mxu0 %vm162_vm1, %v13883_v39 }
 0x280   :  { %8883 = vmatmul.mubr.msk.f32.gmra.mrb[26].mxu0 %vm162_vm1, %v10848_v59  ;;  %v13889_v59 = vld [vmem:[#allocation22_spill] sm:$0xff] }
 0x281   :  { %8885 = vmatprep.mubr.msk.f32.mxu0 %vm162_vm1, %v13884_v40 }
 0x284   :  { %8886 = vmatmul.mubr.msk.f32.gmra.mrb[28].mxu0 %vm162_vm1, %v10862_v61  ;;  %v13890_v61 = vld [vmem:[#allocation23_spill] sm:$0xff] }
 0x285   :  { %8888 = vmatprep.mubr.msk.f32.mxu0 %vm162_vm1, %v10867_v62  ;;  %v13891_v62 = vld [vmem:[#allocation24_spill] sm:$0xff] }
 0x288   :  { %8889 = vmatmul.mubr.msk.f32.gmra.mrb[30].mxu0 %vm162_vm1, %v10876_v63  ;;  %v13892_v63 = vld [vmem:[#allocation25_spill] sm:$0xff] }
 0x289   :  { %8891 = vmatprep.mubr.msk.f32.mxu0 %vm162_vm1, %v13885_v41 }
 0x28c   :  { %8892 = vmatmul.mubr.msk.f32.gmra.mrb[32].mxu0 %vm162_vm1, %v13886_v42 }
 0x28d   :  { %8894 = vmatprep.mubr.msk.f32.mxu0 %vm162_vm1, %v13887_v43 }
 0x290   :  { %8895 = vmatmul.mubr.msk.f32.gmra.mrb[34].mxu0 %vm162_vm1, %v13888_v57 }
 0x291   :  { %8897 = vmatprep.mubr.msk.f32.mxu0 %vm162_vm1, %v13889_v59 }
 0x294   :  { %8898 = vmatmul.mubr.msk.f32.gmra.mrb[36].mxu0 %vm162_vm1, %v13890_v61 }
 0x295   :  { %8900 = vmatprep.mubr.msk.f32.mxu0 %vm162_vm1, %v13891_v62 }
 0x298   :  { %8901 = vmatmul.mubr.msk.f32.gmra.mrb[38].mxu0 %vm162_vm1, %v13892_v63 }
 0x299   :  { %8903 = vmatprep.mubr.msk.f32.mxu0 %vm162_vm1, %v13893_v29  ;;  %v3844_v29 = vld [vmem:[%s13593_s3 + $0x30] sm:$0xff] }
 0x29c   :  { %8904 = vmatmul.mubr.msk.f32.gmra.mrb[40].mxu0 %vm162_vm1, %v13894_v30  ;;  %v13898_v30 = vld [vmem:[#allocation66_spill] sm:$0xff] }
 0x29d   :  { %8906 = vmatprep.mubr.msk.f32.mxu0 %vm162_vm1, %v13895_v31 }
 0x2a0   :  { %8907 = vmatmul.mubr.msk.f32.gmra.mrb[42].mxu0 %vm162_vm1, %v13896_v34 }
 0x2a1   :  { %8909 = vmatprep.mubr.msk.f32.mxu0 %vm162_vm1, %v13833_v21  ;;  %v12007_v21 = vpop.f32.mrb[6].mxu1 }
 0x2a2   :  { %v12009_v39 = vpop.f32.mrb[7].mxu1 }
 0x2a4   :  { %8910 = vmatmul.mubr.msk.f32.gmra.mrb[44].mxu0 %vm162_vm1, %v13834_v22  ;;  %v3838_v22 = vld [vmem:[%s13593_s3] sm:$0xff] }
 0x2a5   :  { %8912 = vmatprep.mubr.msk.f32.mxu0 %vm162_vm1, %v13835_v23  ;;  %v3839_v23 = vld [vmem:[%s13593_s3 + $0x8] sm:$0xff] }
 0x2a8   :  { %8913 = vmatmul.mubr.msk.f32.gmra.mrb[46].mxu0 %vm162_vm1, %v13836_v24  ;;  %v9609_v24 = vpack.c.bf16 %v3839_v23, %v3838_v22  ;;  %v13900_v23 = vld [vmem:[#allocation3_spill] sm:$0xff] }
 0x2a9   :  { %8915 = vmatprep.mubr.msk.f32.mxu0 %vm162_vm1, %v13837_v25  ;;  %v12021_v25 = vpop.f32.mrb[8].mxu1 }
 0x2aa   :  { %9610 = vmatprep.subr.bf16.mxu1 %v9609_v24  ;;  %v12023_v40 = vpop.f32.mrb[9].mxu1 }
 0x2ab   :  { %9612 = vmatpush3.bf16.msra.mxu1 %v9609_v24 }
 0x2ac   :  { %8916 = vmatmul.mubr.msk.f32.gmra.mrb[48].mxu0 %vm162_vm1, %v13838_v26  ;;  %v12029_v26 = vpop.f32.mrb[10].mxu1 }
 0x2ad   :  { %8918 = vmatprep.mubr.msk.f32.mxu0 %vm162_vm1, %v13839_v27  ;;  %v12031_v41 = vpop.f32.mrb[11].mxu1 }
 0x2ae   :  { %v12037_v27 = vpop.f32.mrb[12].mxu1 }
 0x2af   :  { %v12039_v42 = vpop.f32.mrb[13].mxu1 }
 0x2b0   :  { %8919 = vmatmul.mubr.msk.f32.gmra.mrb[50].mxu0 %vm162_vm1, %v13840_v28  ;;  %v12045_v28 = vpop.f32.mrb[14].mxu1 }
 0x2b1   :  { %8921 = vmatprep.mubr.msk.f32.mxu0 %vm162_vm1, %v13841_v17  ;;  %v12047_v17 = vpop.f32.mrb[15].mxu1 }
 0x2b4   :  { %8922 = vmatmul.mubr.msk.f32.gmra.mrb[52].mxu0 %vm162_vm1, %v13842_v20  ;;  %v12053_v20 = vpop.f32.mrb[16].mxu1 }
 0x2b5   :  { %8924 = vmatprep.mubr.msk.f32.mxu0 %vm162_vm1, %v13843_v48  ;;  %v12055_v48 = vpop.f32.mrb[17].mxu1 }
 0x2b8   :  { %8925 = vmatmul.mubr.msk.f32.gmra.mrb[54].mxu0 %vm162_vm1, %v13844_v15  ;;  %v12061_v15 = vpop.f32.mrb[18].mxu1 }
 0x2b9   :  { %8927 = vmatprep.mubr.msk.f32.mxu0 %vm162_vm1, %v13845_v13  ;;  %v3840_v13 = vld [vmem:[%s13593_s3 + $0x10] sm:$0xff] }
 0x2bc   :  { %8928 = vmatmul.mubr.msk.f32.gmra.mrb[56].mxu0 %vm162_vm1, %v13846_v16  ;;  %v12069_v16 = vpop.f32.mrb[19].mxu1 }
 0x2bd   :  { %8930 = vmatprep.mubr.msk.f32.mxu0 %vm162_vm1, %v13847_v6  ;;  %v3841_v6 = vld [vmem:[%s13593_s3 + $0x18] sm:$0xff] }
 0x2be   :  { %v9613_v43 = vpack.c.bf16 %v3841_v6, %v3840_v13  ;;  %v149_v6 = vld [vmem:[%s13592_s0 + $0x360] sm:$0xff] }
 0x2c0   :  { %8931 = vmatmul.mubr.msk.f32.gmra.mrb[58].mxu0 %vm162_vm1, %v13848_v44  ;;  %9614 = vmatprep.subr.bf16.mxu1 %v9613_v43  ;;  %v12075_v44 = vpop.f32.mrb[20].mxu1 }
 0x2c1   :  { %8933 = vmatprep.mubr.msk.f32.mxu0 %vm162_vm1, %v13849_v45  ;;  %9616 = vmatpush3.bf16.msra.mxu1 %v9613_v43  ;;  %v12077_v45 = vpop.f32.mrb[21].mxu1 }
 0x2c2   :  { %v12083_v57 = vpop.f32.mrb[22].mxu1 }
 0x2c3   :  { %v12085_v59 = vpop.f32.mrb[23].mxu1 }
 0x2c4   :  { %8934 = vmatmul.mubr.msk.f32.gmra.mrb[60].mxu0 %vm162_vm1, %v13850_v46  ;;  %v12091_v46 = vpop.f32.mrb[24].mxu1 }
 0x2c5   :  { %8936 = vmatprep.mubr.msk.f32.mxu0 %vm162_vm1, %v13851_v47  ;;  %v12093_v47 = vpop.f32.mrb[25].mxu1 }
 0x2c8   :  { %8937 = vmatmul.mubr.msk.f32.gmra.mrb[62].mxu0 %vm162_vm1, %v13852_v50  ;;  %v12099_v50 = vpop.f32.mrb[26].mxu1 }
 0x2c9   :  { %8939 = vmatprep.mubr.msk.f32.mxu0 %vm162_vm1, %v13853_v52  ;;  %v12101_v52 = vpop.f32.mrb[27].mxu1 }
 0x2cc   :  { %8940 = vmatmul.mubr.msk.f32.gmra.mrb[64].mxu0 %vm162_vm1, %v13854_v53  ;;  %v12107_v53 = vpop.f32.mrb[28].mxu1 }
 0x2cd   :  { %8942 = vmatprep.mubr.msk.f32.mxu0 %vm162_vm1, %v13855_v54  ;;  %v12109_v54 = vpop.f32.mrb[29].mxu1 }
 0x2d0   :  { %8943 = vmatmul.mubr.msk.f32.gmra.mrb[66].mxu0 %vm162_vm1, %v13856_v55  ;;  %v12115_v55 = vpop.f32.mrb[30].mxu1 }
 0x2d1   :  { %8945 = vmatprep.mubr.msk.f32.mxu0 %vm162_vm1, %v13857_v56  ;;  %v12117_v56 = vpop.f32.mrb[31].mxu1 }
 0x2d4   :  { %8946 = vmatmul.mubr.msk.f32.gmra.mrb[68].mxu0 %vm162_vm1, %v13813_v14  ;;  %v3843_v14 = vld [vmem:[%s13593_s3 + $0x28] sm:$0xff] }
 0x2d5   :  { %8948 = vmatprep.mubr.msk.f32.mxu0 %vm162_vm1, %v13858_v58  ;;  %v3842_v58 = vld [vmem:[%s13593_s3 + $0x20] sm:$0xff] }
 0x2d8   :  { %8949 = vmatmul.mubr.msk.f32.gmra.mrb[70].mxu0 %vm162_vm1, %v13815_v18  ;;  %v9617_v18 = vpack.c.bf16 %v3843_v14, %v3842_v58 }
 0x2d9   :  { %8951 = vmatprep.mubr.msk.f32.mxu0 %vm162_vm1, %v13859_v60  ;;  %v12129_v60 = vpop.f32.mrb[32].mxu1 }
 0x2da   :  { %v12131_v61 = vpop.f32.mrb[33].mxu1  ;;  %9618 = vmatprep.subr.bf16.mxu1 %v9617_v18 }
 0x2db   :  { %9620 = vmatpush3.bf16.msra.mxu1 %v9617_v18 }
 0x2dc   :  { %8952 = vmatmul.mubr.msk.f32.gmra.mrb[72].mxu0 %vm162_vm1, %v13817_v49  ;;  %v12137_v49 = vpop.f32.mrb[34].mxu1 }
 0x2dd   :  { %8954 = vmatprep.mubr.msk.f32.mxu0 %vm162_vm1, %v13818_v19  ;;  %v12139_v19 = vpop.f32.mrb[35].mxu1 }
 0x2de   :  { %v12145_v62 = vpop.f32.mrb[36].mxu1 }
 0x2df   :  { %v12147_v63 = vpop.f32.mrb[37].mxu1 }
 0x2e0   :  { %8955 = vmatmul.mubr.msk.f32.gmra.mrb[74].mxu0 %vm162_vm1, %v13819_v51 }
 0x2e1   :  { %8957 = vmatprep.mubr.msk.f32.mxu0 %vm162_vm1, %v13860_v0  ;;  %v12153_v0 = vpop.f32.mrb[38].mxu1 }
 0x2e2   :  { %v12155_v51 = vpop.f32.mrb[39].mxu1 }
 0x2e4   :  { %8958 = vmatmul.mubr.msk.f32.gmra.mrb[76].mxu0 %vm162_vm1, %v13861_v1  ;;  %v12161_v1 = vpop.f32.mrb[40].mxu1 }
 0x2e5   :  { %8960 = vmatprep.mubr.msk.f32.mxu0 %vm162_vm1, %v13862_v2  ;;  %v12163_v2 = vpop.f32.mrb[41].mxu1 }
 0x2e8   :  { %8961 = vmatmul.mubr.msk.f32.gmra.mrb[78].mxu0 %vm162_vm1, %v13863_v3  ;;  %v13897_v3 = vld [vmem:[#allocation61_spill] sm:$0xff] }
 0x2e9   :  { %8963 = vmatprep.mubr.msk.f32.mxu0 %vm162_vm1, %v13864_v4  ;;  %v12169_v4 = vpop.f32.mrb[42].mxu1 }
 0x2ec   :  { %8964 = vmatmul.mubr.msk.f32.gmra.mrb[80].mxu0 %vm162_vm1, %v13865_v5  ;;  %v3845_v5 = vld [vmem:[%s13593_s3 + $0x38] sm:$0xff] }
 0x2ed   :  { %8966 = vmatprep.mubr.msk.f32.mxu0 %vm162_vm1, %v13866_v7  ;;  %v12177_v7 = vpop.f32.mrb[43].mxu1  ;;  %v9621_v31 = vpack.c.bf16 %v3845_v5, %v3844_v29 }
 0x2ee   :  { %v12183_v34 = vpop.f32.mrb[44].mxu1 }
 0x2ef   :  { %9622 = vmatprep.subr.bf16.mxu1 %v9621_v31  ;;  %v12185_v22 = vpop.f32.mrb[45].mxu1 }
 0x2f0   :  { %8967 = vmatmul.mubr.msk.f32.gmra.mrb[82].mxu0 %vm162_vm1, %v13867_v8  ;;  %v13899_v8 = vld [vmem:[#allocation67_spill] sm:$0xff]  ;;  %9624 = vmatpush3.bf16.msra.mxu1 %v9621_v31  ;;  %v12191_v24 = vpop.f32.mrb[46].mxu1 }
 0x2f1   :  { %8969 = vmatprep.mubr.msk.f32.mxu0 %vm162_vm1, %v13897_v3  ;;  %v12193_v13 = vpop.f32.mrb[47].mxu1  ;;  %v3847_v31 = vld [vmem:[%s13593_s3 + $0x48] sm:$0xff] }
 0x2f2   :  { %v12202_v43 = vpop.f32.mrb[48].mxu1 }
 0x2f4   :  { %8970 = vmatmul.mubr.msk.f32.gmra.mrb[84].mxu0 %vm162_vm1, %v13898_v30  ;;  %v3846_v30 = vld [vmem:[%s13593_s3 + $0x40] sm:$0xff] }
 0x2f5   :  { %8972 = vmatprep.mubr.msk.f32.mxu0 %vm162_vm1, %v13899_v8  ;;  %v9625_v8 = vpack.c.bf16 %v3847_v31, %v3846_v30  ;;  %v3848_v30 = vld [vmem:[%s13593_s3 + $0x50] sm:$0xff]  ;;  %v3849_v31 = vld [vmem:[%s13593_s3 + $0x58] sm:$0xff] }
 0x2f7   :  { %9626 = vmatprep.subr.bf16.mxu1 %v9625_v8 }
 0x2f8   :  { %8973 = vmatmul.mubr.msk.f32.gmra.mrb[86].mxu0 %vm162_vm1, %v13872_v9  ;;  %v12204_v9 = vpop.f32.mrb[49].mxu1  ;;  %9628 = vmatpush3.bf16.msra.mxu1 %v9625_v8  ;;  %v9629_v8 = vpack.c.bf16 %v3849_v31, %v3848_v30 }
 0x2f9   :  { %8975 = vmatprep.mubr.msk.f32.mxu0 %vm162_vm1, %v13900_v23  ;;  %v12215_v58 = vpop.f32.mrb[50].mxu1 }
 0x2fa   :  { %13901 = vst [vmem:[#allocation4_spill] sm:$0xff] %v12215_v58  ;;  %v12217_v14 = vpop.f32.mrb[51].mxu1  ;;  %9630 = vmatprep.subr.bf16.mxu1 %v9629_v8 }
 0x2fb   :  { %13902 = vst [vmem:[#allocation5_spill] sm:$0xff] %v12217_v14  ;;  %v12224_v18 = vpop.f32.mrb[52].mxu1 }
 0x2fc   :  { %8976 = vmatmul.mubr.msk.f32.gmra.mrb[88].mxu0 %vm162_vm1, %v11809_v11  ;;  %v150_v11 = vld [vmem:[%s13592_s0 + $0x368] sm:$0xff]  ;;  %13903 = vst [vmem:[#allocation30_spill] sm:$0xff] %v12224_v18  ;;  %v12226_v3 = vpop.f32.mrb[53].mxu1  ;;  %9632 = vmatpush3.bf16.msra.mxu1 %v9629_v8  ;;  %v3852_v8 = vld [vmem:[%s13593_s3 + $0x70] sm:$0xff] }
 0x2fd   :  { %8978 = vmatprep.mubr.msk.f32.mxu0 %vm162_vm1, %v11814_v10  ;;  %v151_v10 = vld [vmem:[%s13592_s0 + $0x370] sm:$0xff]  ;;  %13904 = vst [vmem:[#allocation31_spill] sm:$0xff] %v12226_v3  ;;  %v12229_v29 = vpop.f32.mrb[54].mxu1 }
 0x2fe   :  { %13905 = vst [vmem:[#allocation32_spill] sm:$0xff] %v12229_v29  ;;  %v12231_v5 = vpop.f32.mrb[55].mxu1 }
 0x2ff   :  { %13906 = vst [vmem:[#allocation33_spill] sm:$0xff] %v12231_v5  ;;  %v12239_v23 = vpop.f32.mrb[56].mxu1 }
 0x300   :  { %8979 = vmatmul.mubr.msk.f32.gmra.mrb[90].mxu0 %vm162_vm1, %v11827_v12  ;;  %v152_v12 = vld [vmem:[%s13592_s0 + $0x378] sm:$0xff]  ;;  %13907 = vst [vmem:[#allocation34_spill] sm:$0xff] %v12239_v23 }
 0x301   :  { %8981 = vmatprep.mubr.msk.f32.mxu0 %vm162_vm1, %v149_v6  ;;  %v12241_v6 = vpop.f32.mrb[57].mxu1 }
 0x302   :  { %13908 = vst [vmem:[#allocation35_spill] sm:$0xff] %v12241_v6 }
 0x304   :  { %8982 = vmatmul.mubr.msk.f32.gmra.mrb[92].mxu0 %vm162_vm1, %v150_v11  ;;  %v12243_v11 = vpop.f32.mrb[58].mxu1 }
 0x305   :  { %8984 = vmatprep.mubr.msk.f32.mxu0 %vm162_vm1, %v151_v10  ;;  %13909 = vst [vmem:[#allocation36_spill] sm:$0xff] %v12243_v11  ;;  %v12245_v10 = vpop.f32.mrb[59].mxu1 }
 0x306   :  { %13910 = vst [vmem:[#allocation37_spill] sm:$0xff] %v12245_v10 }
 0x308   :  { %8985 = vmatmul.mubr.msk.f32.gmra.mrb[94].mxu0 %vm162_vm1, %v152_v12  ;;  %v12247_v12 = vpop.f32.mrb[60].mxu1 }
 0x309   :  { %13911 = vst [vmem:[#allocation38_spill] sm:$0xff] %v12247_v12  ;;  %v12249_v5 = vpop.f32.mrb[61].mxu1 }
 0x30a   :  { %13912 = vst [vmem:[#allocation39_spill] sm:$0xff] %v12249_v5  ;;  %v12251_v29 = vpop.f32.mrb[62].mxu1  ;;  %v3850_v5 = vld [vmem:[%s13593_s3 + $0x60] sm:$0xff] }
 0x30b   :  { %13913 = vst [vmem:[#allocation40_spill] sm:$0xff] %v12251_v29  ;;  %v12259_v6 = vpop.f32.mrb[63].mxu1  ;;  %v3851_v29 = vld [vmem:[%s13593_s3 + $0x68] sm:$0xff] }
 0x30c   :  { %13914 = vst [vmem:[#allocation41_spill] sm:$0xff] %v12259_v6  ;;  %v12261_v10 = vpop.f32.mrb[64].mxu1  ;;  %v9633_v23 = vpack.c.bf16 %v3851_v29, %v3850_v5 }
 0x30d   :  { %13915 = vst [vmem:[#allocation42_spill] sm:$0xff] %v12261_v10  ;;  %v12269_v11 = vpop.f32.mrb[65].mxu1  ;;  %v3853_v10 = vld [vmem:[%s13593_s3 + $0x78] sm:$0xff] }
 0x30e   :  { %13916 = vst [vmem:[#allocation43_spill] sm:$0xff] %v12269_v11  ;;  %9634 = vmatprep.subr.bf16.mxu1 %v9633_v23  ;;  %v12273_v31 = vpop.f32.mrb[66].mxu1  ;;  %v9637_v29 = vpack.c.bf16 %v3853_v10, %v3852_v8 }
 0x30f   :  { %9636 = vmatpush3.bf16.msra.mxu1 %v9633_v23  ;;  %13917 = vst [vmem:[#allocation44_spill] sm:$0xff] %v12273_v31  ;;  %v12281_v11 = vpop.f32.mrb[67].mxu1 }
 0x310   :  { %13918 = vst [vmem:[#allocation45_spill] sm:$0xff] %v12281_v11  ;;  %9638 = vmatprep.subr.bf16.mxu1 %v9637_v29  ;;  %v12285_v23 = vpop.f32.mrb[68].mxu1 }
 0x311   :  { %13919 = vst [vmem:[#allocation46_spill] sm:$0xff] %v12285_v23  ;;  %v12292_v31 = vpop.f32.mrb[69].mxu1 }
 0x312   :  { %13920 = vst [vmem:[#allocation47_spill] sm:$0xff] %v12292_v31  ;;  %v12298_v8 = vpop.f32.mrb[70].mxu1 }
 0x313   :  { %9640 = vmatpush3.bf16.msra.mxu1 %v9637_v29  ;;  %v12302_v14 = vpop.f32.mrb[71].mxu1 }
 0x314   :  { %13921 = vst [vmem:[#allocation48_spill] sm:$0xff] %v12302_v14 }
 0x31f   :  { %v8845_v12 = vpop.f32.mrb[0].mxu0 }
 0x320   :  { %v9799_v3 = vadd.f32 %v8845_v12, %v11983_v32  ;;  %v2968_v6 = vpop.f32.mrb[1].mxu0 }
 0x321   :  { %v9800_v30 = vadd.f32 %v2968_v6, %v11985_v33  ;;  %v12290_v6 = vld [vmem:[%s13594_s2] ss:$0 sm:$0xff]  ;;  %s10446_s2 = smov 127  }
 0x323   :  { %v8848_v18 = vpop.f32.mrb[2].mxu0  ;;  %v3550_v29 = vadd.f32 %v9800_v30, %v12290_v6 }
 0x324   :  { %v9801_v32 = vadd.f32 %v8848_v18, %v11991_v35  ;;  %v2978_v5 = vpop.f32.mrb[3].mxu0  ;;  %v3551_v18 = vadd.f32 %v9799_v3, %v12290_v6 }
 0x325   :  { %v9802_v33 = vadd.f32 %v2978_v5, %v11993_v36 }
 0x326   :  { %v3553_v3 = vadd.f32 %v9801_v32, %v12290_v6 }
 0x327   :  { %v8851_v12 = vpop.f32.mrb[4].mxu0  ;;  %v3552_v30 = vadd.f32 %v9802_v33, %v12290_v6 }
 0x328   :  { %v9803_v11 = vadd.f32 %v8851_v12, %v11999_v37  ;;  %v2988_v10 = vpop.f32.mrb[5].mxu0 }
 0x329   :  { %v9804_v35 = vadd.f32 %v2988_v10, %v12001_v38 }
 0x32a   :  { %v3555_v36 = vadd.f32 %v9803_v11, %v12290_v6 }
 0x32b   :  { %v3554_v5 = vadd.f32 %v9804_v35, %v12290_v6  ;;  %v8854_v23 = vpop.f32.mrb[6].mxu0 }
 0x32c   :  { %v9805_v31 = vadd.f32 %v8854_v23, %v12007_v21  ;;  %v2998_v58 = vpop.f32.mrb[7].mxu0  ;;  %v12305_v37 = vmax.f32 %v3551_v18, %v3555_v36  ;;  %v12316_v21 = vpop.f32.mrb[72].mxu1 }
 0x32d   :  { %v9806_v38 = vadd.f32 %v2998_v58, %v12009_v39  ;;  %v12308_v12 = vmax.f32 %v3550_v29, %v3554_v5  ;;  %v12321_v18 = vpop.f32.mrb[73].mxu1 }
 0x32e   :  { %v3557_v11 = vadd.f32 %v9805_v31, %v12290_v6  ;;  %v12329_v29 = vpop.f32.mrb[74].mxu1 }
 0x32f   :  { %v3556_v10 = vadd.f32 %v9806_v38, %v12290_v6  ;;  %v8857_v35 = vpop.f32.mrb[8].mxu0  ;;  %v10325_v14 = vpack.i.bf16 %v12305_v37, %v12308_v12 }
 0x330   :  { %v12318_v23 = vmax.f32 %v3553_v3, %v3557_v11  ;;  %v9807_v39 = vadd.f32 %v8857_v35, %v12021_v25  ;;  %v3008_v58 = vpop.f32.mrb[9].mxu0  ;;  %v12332_v25 = vpop.f32.mrb[75].mxu1 }
 0x331   :  { %v12323_v32 = vmax.f32 %v3552_v30, %v3556_v10  ;;  %v9808_v31 = vadd.f32 %v3008_v58, %v12023_v40  ;;  %10326 = vrot.lane.b32.xlu0 %v10325_v14, %s10446_s2  ;;  %13922 = vst [vmem:[#allocation49_spill] sm:$0xff] %v12332_v25  ;;  %v12336_v40 = vpop.f32.mrb[76].mxu1 }
 0x332   :  { %13923 = vst [vmem:[#allocation50_spill] sm:$0xff] %v12336_v40  ;;  %v12339_v10 = vpop.f32.mrb[77].mxu1  ;;  %v3559_v58 = vadd.f32 %v9807_v39, %v12290_v6 }
 0x333   :  { %v8860_v33 = vpop.f32.mrb[10].mxu0  ;;  %v10330_v36 = vpack.i.bf16 %v12318_v23, %v12323_v32 }
 0x334   :  { %v9809_v5 = vadd.f32 %v8860_v33, %v12029_v26  ;;  %v3018_v38 = vpop.f32.mrb[11].mxu0  ;;  %v3558_v33 = vadd.f32 %v9808_v31, %v12290_v6 }
 0x335   :  { %v9810_v3 = vadd.f32 %v3018_v38, %v12031_v41  ;;  %10331 = vrot.lane.b32.xlu0 %v10330_v36, %s10446_s2  ;;  %v12346_v36 = vpop.f32.mrb[78].mxu1 }
 0x336   :  { %13924 = vst [vmem:[#allocation51_spill] sm:$0xff] %v12346_v36  ;;  %v3561_v39 = vadd.f32 %v9809_v5, %v12290_v6 }
 0x337   :  { %v8863_v11 = vpop.f32.mrb[12].mxu0 }
 0x338   :  { %v9811_v14 = vadd.f32 %v8863_v11, %v12037_v27  ;;  %v3028_v30 = vpop.f32.mrb[13].mxu0  ;;  %v12351_v11 = vpop.f32.mrb[79].mxu1 }
 0x339   :  { %v9812_v35 = vadd.f32 %v3028_v30, %v12039_v42 }
 0x33a   :  { %v3563_v26 = vadd.f32 %v9811_v14, %v12290_v6  ;;  %v3560_v14 = vadd.f32 %v9810_v3, %v12290_v6 }
 0x33b   :  { %v3562_v41 = vadd.f32 %v9812_v35, %v12290_v6  ;;  %v8866_v38 = vpop.f32.mrb[14].mxu0 }
 0x33c   :  { %v9813_v40 = vadd.f32 %v8866_v38, %v12045_v28  ;;  %v3038_v25 = vpop.f32.mrb[15].mxu0  ;;  %v12349_v27 = vmax.f32 %v3559_v58, %v3563_v26  ;;  %v12362_v58 = vpop.f32.mrb[80].mxu1 }
 0x33d   :  { %v9814_v42 = vadd.f32 %v3038_v25, %v12047_v17  ;;  %v12354_v30 = vmax.f32 %v3558_v33, %v3562_v41  ;;  %v12367_v33 = vpop.f32.mrb[81].mxu1 }
 0x33e   :  { %v3565_v31 = vadd.f32 %v9813_v40, %v12290_v6  ;;  %v12375_v38 = vpop.f32.mrb[82].mxu1 }
 0x33f   :  { %v3564_v35 = vadd.f32 %v9814_v42, %v12290_v6  ;;  %v8869_v36 = vpop.f32.mrb[16].mxu0  ;;  %v10335_v28 = vpack.i.bf16 %v12349_v27, %v12354_v30  ;;  %13925 = vst [vmem:[#allocation52_spill] sm:$0xff] %v12375_v38 }
 0x340   :  { %v12364_v26 = vmax.f32 %v3561_v39, %v3565_v31  ;;  %v9815_v17 = vadd.f32 %v8869_v36, %v12053_v20  ;;  %v3048_v25 = vpop.f32.mrb[17].mxu0  ;;  %v12378_v31 = vpop.f32.mrb[83].mxu1 }
 0x341   :  { %v12369_v5 = vmax.f32 %v3560_v14, %v3564_v35  ;;  %v9816_v40 = vadd.f32 %v3048_v25, %v12055_v48  ;;  %10336 = vrot.lane.b32.xlu1 %v10335_v28, %s10446_s2  ;;  %13926 = vst [vmem:[#allocation53_spill] sm:$0xff] %v12378_v31  ;;  %v12382_v14 = vpop.f32.mrb[84].mxu1 }
 0x342   :  { %13927 = vst [vmem:[#allocation54_spill] sm:$0xff] %v12382_v14  ;;  %v12385_v28 = vpop.f32.mrb[85].mxu1  ;;  %v3567_v38 = vadd.f32 %v9815_v17, %v12290_v6 }
 0x343   :  { %v8872_v3 = vpop.f32.mrb[18].mxu0  ;;  %v10340_v41 = vpack.i.bf16 %v12364_v26, %v12369_v5  ;;  %13928 = vst [vmem:[#allocation56_spill] sm:$0xff] %v12385_v28 }
 0x344   :  { %v9817_v42 = vadd.f32 %v8872_v3, %v12061_v15  ;;  %v3058_v39 = vpop.f32.mrb[19].mxu0  ;;  %v3566_v3 = vadd.f32 %v9816_v40, %v12290_v6 }
 0x345   :  { %v9818_v20 = vadd.f32 %v3058_v39, %v12069_v16  ;;  %10341 = vrot.lane.b32.xlu1 %v10340_v41, %s10446_s2  ;;  %v12392_v41 = vpop.f32.mrb[86].mxu1 }
 0x346   :  { %v12397_v14 = vpop.f32.mrb[87].mxu1  ;;  %v3569_v17 = vadd.f32 %v9817_v42, %v12290_v6 }
 0x347   :  { %v8875_v36 = vpop.f32.mrb[20].mxu0 }
 0x348   :  { %v9819_v48 = vadd.f32 %v8875_v36, %v12075_v44  ;;  %v3068_v35 = vpop.f32.mrb[21].mxu0 }
 0x349   :  { %v9820_v25 = vadd.f32 %v3068_v35, %v12077_v45 }
 0x34a   :  { %v3571_v15 = vadd.f32 %v9819_v48, %v12290_v6  ;;  %v3568_v48 = vadd.f32 %v9818_v20, %v12290_v6 }
 0x34b   :  { %v3570_v16 = vadd.f32 %v9820_v25, %v12290_v6  ;;  %v8878_v39 = vpop.f32.mrb[22].mxu0 }
 0x34c   :  { %v12394_v31 = vmax.f32 %v3567_v38, %v3571_v15  ;;  %v9821_v44 = vadd.f32 %v8878_v39, %v12083_v57  ;;  %v3078_v36 = vpop.f32.mrb[23].mxu0  ;;  %v12408_v57 = vpop.f32.mrb[88].mxu1 }
 0x34d   :  { %v12399_v28 = vmax.f32 %v3566_v3, %v3570_v16  ;;  %v9822_v45 = vadd.f32 %v3078_v36, %v12085_v59  ;;  %v12413_v59 = vpop.f32.mrb[89].mxu1 }
 0x34e   :  { %v3573_v40 = vadd.f32 %v9821_v44, %v12290_v6  ;;  %v12421_v36 = vpop.f32.mrb[90].mxu1 }
 0x34f   :  { %v3572_v35 = vadd.f32 %v9822_v45, %v12290_v6  ;;  %v8881_v25 = vpop.f32.mrb[24].mxu0  ;;  %v10345_v38 = vpack.i.bf16 %v12394_v31, %v12399_v28  ;;  %13929 = vst [vmem:[#allocation58_spill] sm:$0xff] %v12421_v36 }
 0x350   :  { %v12410_v15 = vmax.f32 %v3569_v17, %v3573_v40  ;;  %v9823_v3 = vadd.f32 %v8881_v25, %v12091_v46  ;;  %v3088_v16 = vpop.f32.mrb[25].mxu0  ;;  %v12424_v40 = vpop.f32.mrb[91].mxu1 }
 0x351   :  { %v12415_v42 = vmax.f32 %v3568_v48, %v3572_v35  ;;  %v9824_v39 = vadd.f32 %v3088_v16, %v12093_v47  ;;  %10346 = vrot.lane.b32.xlu0 %v10345_v38, %s10446_s2  ;;  %13930 = vst [vmem:[#allocation62_spill] sm:$0xff] %v12424_v40  ;;  %v12428_v35 = vpop.f32.mrb[92].mxu1 }
 0x352   :  { %13931 = vst [vmem:[#allocation63_spill] sm:$0xff] %v12428_v35  ;;  %v12431_v38 = vpop.f32.mrb[93].mxu1  ;;  %v3575_v36 = vadd.f32 %v9823_v3, %v12290_v6 }
 0x353   :  { %v8884_v20 = vpop.f32.mrb[26].mxu0  ;;  %v10350_v44 = vpack.i.bf16 %v12410_v15, %v12415_v42  ;;  %13932 = vst [vmem:[#allocation64_spill] sm:$0xff] %v12431_v38 }
 0x354   :  { %v9825_v45 = vadd.f32 %v8884_v20, %v12099_v50  ;;  %v3098_v17 = vpop.f32.mrb[27].mxu0  ;;  %v3574_v20 = vadd.f32 %v9824_v39, %v12290_v6 }
 0x355   :  { %v9826_v46 = vadd.f32 %v3098_v17, %v12101_v52  ;;  %10351 = vrot.lane.b32.xlu1 %v10350_v44, %s10446_s2  ;;  %v12438_v44 = vpop.f32.mrb[94].mxu1 }
 0x356   :  { %v12443_v35 = vpop.f32.mrb[95].mxu1  ;;  %v3577_v3 = vadd.f32 %v9825_v45, %v12290_v6 }
 0x357   :  { %v8887_v48 = vpop.f32.mrb[28].mxu0 }
 0x358   :  { %v9827_v47 = vadd.f32 %v8887_v48, %v12107_v53  ;;  %v3108_v25 = vpop.f32.mrb[29].mxu0 }
 0x359   :  { %v9828_v16 = vadd.f32 %v3108_v25, %v12109_v54 }
 0x35a   :  { %v3579_v50 = vadd.f32 %v9827_v47, %v12290_v6  ;;  %v3576_v47 = vadd.f32 %v9826_v46, %v12290_v6 }
 0x35b   :  { %v3578_v52 = vadd.f32 %v9828_v16, %v12290_v6  ;;  %v8890_v17 = vpop.f32.mrb[30].mxu0 }
 0x35c   :  { %v12440_v40 = vmax.f32 %v3575_v36, %v3579_v50  ;;  %v9829_v53 = vadd.f32 %v8890_v17, %v12115_v55  ;;  %v3118_v48 = vpop.f32.mrb[31].mxu0 }
 0x35d   :  { %v12445_v38 = vmax.f32 %v3574_v20, %v3578_v52  ;;  %v9830_v54 = vadd.f32 %v3118_v48, %v12117_v56 }
 0x35e   :  { %v3581_v39 = vadd.f32 %v9829_v53, %v12290_v6 }
 0x35f   :  { %v3580_v25 = vadd.f32 %v9830_v54, %v12290_v6  ;;  %v8893_v16 = vpop.f32.mrb[32].mxu0  ;;  %v10355_v36 = vpack.i.bf16 %v12440_v40, %v12445_v38 }
 0x360   :  { %v12454_v55 = vmax.f32 %v3577_v3, %v3581_v39  ;;  %v9831_v50 = vadd.f32 %v8893_v16, %v12129_v60  ;;  %v3128_v20 = vpop.f32.mrb[33].mxu0 }
 0x361   :  { %v12457_v52 = vmax.f32 %v3576_v47, %v3580_v25  ;;  %v9832_v56 = vadd.f32 %v3128_v20, %v12131_v61  ;;  %10356 = vrot.lane.b32.xlu0 %v10355_v36, %s10446_s2 }
 0x362   :  { %v3583_v61 = vadd.f32 %v9831_v50, %v12290_v6 }
 0x363   :  { %v8896_v45 = vpop.f32.mrb[34].mxu0  ;;  %v10360_v46 = vpack.i.bf16 %v12454_v55, %v12457_v52  ;;  %v3582_v25 = vadd.f32 %v9832_v56, %v12290_v6 }
 0x364   :  { %v9833_v17 = vadd.f32 %v8896_v45, %v12137_v49  ;;  %v3138_v53 = vpop.f32.mrb[35].mxu0 }
 0x365   :  { %v9834_v48 = vadd.f32 %v3138_v53, %v12139_v19  ;;  %10361 = vrot.lane.b32.xlu1 %v10360_v46, %s10446_s2 }
 0x367   :  { %v8899_v54 = vpop.f32.mrb[36].mxu0  ;;  %v3584_v46 = vadd.f32 %v9834_v48, %v12290_v6 }
 0x368   :  { %v9835_v60 = vadd.f32 %v8899_v54, %v12145_v62  ;;  %v3148_v3 = vpop.f32.mrb[37].mxu0 }
 0x369   :  { %v9836_v39 = vadd.f32 %v3148_v3, %v12147_v63  ;;  %v3585_v63 = vadd.f32 %v9833_v17, %v12290_v6 }
 0x36a   :  { %v3587_v47 = vadd.f32 %v9835_v60, %v12290_v6 }
 0x36b   :  { %v3586_v16 = vadd.f32 %v9836_v39, %v12290_v6  ;;  %v8902_v49 = vpop.f32.mrb[38].mxu0 }
 0x36c   :  { %v12472_v36 = vmax.f32 %v3583_v61, %v3587_v47  ;;  %v9837_v19 = vadd.f32 %v8902_v49, %v12153_v0  ;;  %v3158_v20 = vpop.f32.mrb[39].mxu0 }
 0x36d   :  { %v12475_v45 = vmax.f32 %v3582_v25, %v3586_v16  ;;  %v9838_v62 = vadd.f32 %v3158_v20, %v12155_v51 }
 0x36e   :  { %v3589_v50 = vadd.f32 %v9837_v19, %v12290_v6 }
 0x36f   :  { %v3588_v56 = vadd.f32 %v9838_v62, %v12290_v6  ;;  %v8905_v53 = vpop.f32.mrb[40].mxu0  ;;  %v10365_v54 = vpack.i.bf16 %v12472_v36, %v12475_v45 }
 0x370   :  { %v12484_v60 = vmax.f32 %v3585_v63, %v3589_v50  ;;  %v9839_v0 = vadd.f32 %v8905_v53, %v12161_v1  ;;  %v3168_v3 = vpop.f32.mrb[41].mxu0 }
 0x371   :  { %v12487_v39 = vmax.f32 %v3584_v46, %v3588_v56  ;;  %v9840_v51 = vadd.f32 %v3168_v3, %v12163_v2  ;;  %10366 = vrot.lane.b32.xlu0 %v10365_v54, %s10446_s2 }
 0x372   :  { %v3591_v2 = vadd.f32 %v9839_v0, %v12290_v6 }
 0x373   :  { %v8908_v17 = vpop.f32.mrb[42].mxu0  ;;  %v10370_v48 = vpack.i.bf16 %v12484_v60, %v12487_v39  ;;  %v3590_v62 = vadd.f32 %v9840_v51, %v12290_v6 }
 0x374   :  { %v9841_v61 = vadd.f32 %v8908_v17, %v12169_v4  ;;  %v3178_v47 = vpop.f32.mrb[43].mxu0 }
 0x375   :  { %v9842_v25 = vadd.f32 %v3178_v47, %v12177_v7  ;;  %10371 = vrot.lane.b32.xlu1 %v10370_v48, %s10446_s2 }
 0x377   :  { %v8911_v16 = vpop.f32.mrb[44].mxu0  ;;  %v3592_v54 = vadd.f32 %v9842_v25, %v12290_v6 }
 0x378   :  { %v9843_v1 = vadd.f32 %v8911_v16, %v12183_v34  ;;  %v3188_v49 = vpop.f32.mrb[45].mxu0  ;;  %v13933_v16 = vld [vmem:[#allocation4_spill] sm:$0xff] }
 0x379   :  { %v9844_v19 = vadd.f32 %v3188_v49, %v12185_v22  ;;  %v3593_v22 = vadd.f32 %v9841_v61, %v12290_v6 }
 0x37a   :  { %v3595_v20 = vadd.f32 %v9843_v1, %v12290_v6 }
 0x37b   :  { %v3594_v63 = vadd.f32 %v9844_v19, %v12290_v6  ;;  %v8914_v4 = vpop.f32.mrb[46].mxu0  ;;  %v13934_v19 = vld [vmem:[#allocation5_spill] sm:$0xff] }
 0x37c   :  { %v12502_v50 = vmax.f32 %v3591_v2, %v3595_v20  ;;  %v9845_v7 = vadd.f32 %v8914_v4, %v12191_v24  ;;  %v3198_v46 = vpop.f32.mrb[47].mxu0  ;;  %v13936_v4 = vld [vmem:[#allocation31_spill] sm:$0xff] }
 0x37d   :  { %v12505_v56 = vmax.f32 %v3590_v62, %v3594_v63  ;;  %v9846_v34 = vadd.f32 %v3198_v46, %v12193_v13 }
 0x37e   :  { %v3597_v53 = vadd.f32 %v9845_v7, %v12290_v6 }
 0x37f   :  { %v3596_v0 = vadd.f32 %v9846_v34, %v12290_v6  ;;  %v8917_v3 = vpop.f32.mrb[48].mxu0  ;;  %v10375_v51 = vpack.i.bf16 %v12502_v50, %v12505_v56 }
 0x380   :  { %v12514_v17 = vmax.f32 %v3593_v22, %v3597_v53  ;;  %v9847_v24 = vadd.f32 %v8917_v3, %v12202_v43  ;;  %v3208_v48 = vpop.f32.mrb[49].mxu0  ;;  %v13935_v43 = vld [vmem:[#allocation30_spill] sm:$0xff] }
 0x381   :  { %v12517_v47 = vmax.f32 %v3592_v54, %v3596_v0  ;;  %v9848_v13 = vadd.f32 %v3208_v48, %v12204_v9  ;;  %10376 = vrot.lane.b32.xlu0 %v10375_v51, %s10446_s2  ;;  %v13937_v0 = vld [vmem:[#allocation32_spill] sm:$0xff] }
 0x382   :  { %v3599_v9 = vadd.f32 %v9847_v24, %v12290_v6 }
 0x383   :  { %v8920_v61 = vpop.f32.mrb[50].mxu0  ;;  %v10380_v25 = vpack.i.bf16 %v12514_v17, %v12517_v47  ;;  %v3598_v34 = vadd.f32 %v9848_v13, %v12290_v6 }
 0x384   :  { %v9849_v1 = vadd.f32 %v8920_v61, %v13933_v16  ;;  %v3218_v49 = vpop.f32.mrb[51].mxu0  ;;  %v13938_v61 = vld [vmem:[#allocation33_spill] sm:$0xff] }
 0x385   :  { %v9850_v2 = vadd.f32 %v3218_v49, %v13934_v19  ;;  %10381 = vrot.lane.b32.xlu1 %v10380_v25, %s10446_s2 }
 0x386   :  { %v3601_v16 = vadd.f32 %v9849_v1, %v12290_v6 }
 0x387   :  { %v8923_v20 = vpop.f32.mrb[52].mxu0  ;;  %v3600_v49 = vadd.f32 %v9850_v2, %v12290_v6 }
 0x388   :  { %v9851_v62 = vadd.f32 %v8923_v20, %v13935_v43  ;;  %v3228_v63 = vpop.f32.mrb[53].mxu0 }
 0x389   :  { %v9852_v7 = vadd.f32 %v3228_v63, %v13936_v4 }
 0x38a   :  { %v3603_v46 = vadd.f32 %v9851_v62, %v12290_v6  ;;  %v13939_v62 = vld [vmem:[#allocation34_spill] sm:$0xff] }
 0x38b   :  { %v3602_v22 = vadd.f32 %v9852_v7, %v12290_v6  ;;  %v8926_v53 = vpop.f32.mrb[54].mxu0 }
 0x38c   :  { %v12532_v54 = vmax.f32 %v3599_v9, %v3603_v46  ;;  %v9853_v3 = vadd.f32 %v8926_v53, %v13937_v0  ;;  %v3238_v51 = vpop.f32.mrb[55].mxu0  ;;  %v13941_v9 = vld [vmem:[#allocation35_spill] sm:$0xff]  ;;  %v13943_v0 = vld [vmem:[#allocation37_spill] sm:$0xff] }
 0x38d   :  { %v12535_v48 = vmax.f32 %v3598_v34, %v3602_v22  ;;  %v9854_v25 = vadd.f32 %v3238_v51, %v13938_v61  ;;  %v13942_v34 = vld [vmem:[#allocation36_spill] sm:$0xff]  ;;  %v13944_v61 = vld [vmem:[#allocation38_spill] sm:$0xff] }
 0x38e   :  { %v3605_v24 = vadd.f32 %v9853_v3, %v12290_v6 }
 0x38f   :  { %v3604_v13 = vadd.f32 %v9854_v25, %v12290_v6  ;;  %v8929_v19 = vpop.f32.mrb[56].mxu0  ;;  %v10385_v20 = vpack.i.bf16 %v12532_v54, %v12535_v48 }
 0x390   :  { %v12544_v43 = vmax.f32 %v3601_v16, %v3605_v24  ;;  %v9855_v63 = vadd.f32 %v8929_v19, %v13939_v62  ;;  %v3248_v4 = vpop.f32.mrb[57].mxu0  ;;  %v13945_v24 = vld [vmem:[#allocation39_spill] sm:$0xff] }
 0x391   :  { %v12547_v7 = vmax.f32 %v3600_v49, %v3604_v13  ;;  %v9856_v46 = vadd.f32 %v3248_v4, %v13941_v9  ;;  %10386 = vrot.lane.b32.xlu0 %v10385_v20, %s10446_s2 }
 0x392   :  { %v3607_v13 = vadd.f32 %v9855_v63, %v12290_v6 }
 0x393   :  { %13940 = vst [vmem:[#allocation65_spill] sm:$0xff] %v12547_v7  ;;  %v8932_v1 = vpop.f32.mrb[58].mxu0  ;;  %v10390_v2 = vpack.i.bf16 %v12544_v43, %v12547_v7  ;;  %v3606_v20 = vadd.f32 %v9856_v46, %v12290_v6 }
 0x394   :  { %v9857_v22 = vadd.f32 %v8932_v1, %v13942_v34  ;;  %v3258_v53 = vpop.f32.mrb[59].mxu0  ;;  %v13947_v1 = vld [vmem:[#allocation40_spill] sm:$0xff] }
 0x395   :  { %v9858_v3 = vadd.f32 %v3258_v53, %v13943_v0  ;;  %10391 = vrot.lane.b32.xlu1 %v10390_v2, %s10446_s2  ;;  %v13949_v0 = vld [vmem:[#allocation41_spill] sm:$0xff] }
 0x397   :  { %v8935_v51 = vpop.f32.mrb[60].mxu0 }
 0x398   :  { %v9859_v25 = vadd.f32 %v8935_v51, %v13944_v61  ;;  %v3268_v16 = vpop.f32.mrb[61].mxu0  ;;  %v3609_v61 = vadd.f32 %v9857_v22, %v12290_v6 }
 0x399   :  { %v9860_v49 = vadd.f32 %v3268_v16, %v13945_v24 }
 0x39a   :  { %v3611_v19 = vadd.f32 %v9859_v25, %v12290_v6  ;;  %v3608_v25 = vadd.f32 %v9858_v3, %v12290_v6 }
 0x39b   :  { %v3610_v62 = vadd.f32 %v9860_v49, %v12290_v6  ;;  %v8938_v4 = vpop.f32.mrb[62].mxu0 }
 0x39c   :  { %v12562_v9 = vmax.f32 %v3607_v13, %v3611_v19  ;;  %v9861_v34 = vadd.f32 %v8938_v4, %v13947_v1  ;;  %v3278_v2 = vpop.f32.mrb[63].mxu0  ;;  %v13951_v13 = vld [vmem:[#allocation42_spill] sm:$0xff]  ;;  %v13953_v4 = vld [vmem:[#allocation43_spill] sm:$0xff] }
 0x39d   :  { %v12565_v53 = vmax.f32 %v3606_v20, %v3610_v62  ;;  %v9862_v51 = vadd.f32 %v3278_v2, %v13949_v0 }
 0x39e   :  { %13946 = vst [vmem:[#allocation55_spill] sm:$0xff] %v12562_v9  ;;  %v3613_v63 = vadd.f32 %v9861_v34, %v12290_v6 }
 0x39f   :  { %13948 = vst [vmem:[#allocation57_spill] sm:$0xff] %v12565_v53  ;;  %v3612_v46 = vadd.f32 %v9862_v51, %v12290_v6  ;;  %v8941_v16 = vpop.f32.mrb[64].mxu0  ;;  %v10395_v24 = vpack.i.bf16 %v12562_v9, %v12565_v53  ;;  %v13954_v51 = vld [vmem:[#allocation44_spill] sm:$0xff] }
 0x3a0   :  { %v12574_v49 = vmax.f32 %v3609_v61, %v3613_v63  ;;  %v9863_v19 = vadd.f32 %v8941_v16, %v13951_v13  ;;  %v3288_v20 = vpop.f32.mrb[65].mxu0  ;;  %v13955_v63 = vld [vmem:[#allocation45_spill] sm:$0xff] }
 0x3a1   :  { %v12577_v62 = vmax.f32 %v3608_v25, %v3612_v46  ;;  %v9864_v1 = vadd.f32 %v3288_v20, %v13953_v4  ;;  %10396 = vrot.lane.b32.xlu0 %v10395_v24, %s10446_s2  ;;  %v13956_v4 = vld [vmem:[#allocation46_spill] sm:$0xff] }
 0x3a2   :  { %13950 = vst [vmem:[#allocation59_spill] sm:$0xff] %v12574_v49 }
 0x3a3   :  { %13952 = vst [vmem:[#allocation60_spill] sm:$0xff] %v12577_v62  ;;  %v10327_v22 = vpop.permute.xlu0 %10326  ;;  %v8944_v34 = vpop.f32.mrb[66].mxu0  ;;  %v10400_v3 = vpack.i.bf16 %v12574_v49, %v12577_v62 }
 0x3a4   :  { %v10329_v2 = vunpack.i.h.bf16 %v10327_v22  ;;  %v10328_v0 = vunpack.i.l.bf16 %v10327_v22  ;;  %v9865_v53 = vadd.f32 %v8944_v34, %v13954_v51  ;;  %v3298_v61 = vpop.f32.mrb[67].mxu0  ;;  %v13957_v22 = vld [vmem:[#allocation47_spill] sm:$0xff]  ;;  %v3615_v34 = vadd.f32 %v9863_v19, %v12290_v6  ;;  %v13958_v19 = vld [vmem:[#allocation48_spill] sm:$0xff] }
 0x3a5   :  { %v9866_v9 = vadd.f32 %v3298_v61, %v13955_v63  ;;  %10401 = vrot.lane.b32.xlu1 %v10400_v3, %s10446_s2 }
 0x3a6   :  { %v3791_v25 = vmax.f32 %v12305_v37, %v10329_v2  ;;  %v3790_v46 = vmax.f32 %v12308_v12, %v10328_v0  ;;  %v3614_v12 = vadd.f32 %v9864_v1, %v12290_v6 }
 0x3a7   :  { %v10332_v16 = vpop.permute.xlu0 %10331  ;;  %v8947_v24 = vpop.f32.mrb[68].mxu0 }
 0x3a8   :  { %v10334_v13 = vunpack.i.h.bf16 %v10332_v16  ;;  %v10333_v20 = vunpack.i.l.bf16 %v10332_v16  ;;  %v9867_v7 = vadd.f32 %v8947_v24, %v13956_v4  ;;  %v3308_v62 = vpop.f32.mrb[69].mxu0  ;;  %9019 = vmatprep.mubr.f32.mxu1 %v3790_v46 }
 0x3a9   :  { %v9868_v49 = vadd.f32 %v3308_v62, %v13957_v22  ;;  %9020 = vmatmul.mubr.f32.vlgmr.msra.gmra.mrb[96].mxu1 %v3791_v25 }
 0x3aa   :  { %v3793_v51 = vmax.f32 %v12318_v23, %v10334_v13  ;;  %v3792_v3 = vmax.f32 %v12323_v32, %v10333_v20  ;;  %v3619_v37 = vadd.f32 %v9867_v7, %v12290_v6  ;;  %v3617_v23 = vadd.f32 %v9865_v53, %v12290_v6 }
 0x3ab   :  { %v3618_v2 = vadd.f32 %v9868_v49, %v12290_v6  ;;  %v8950_v0 = vpop.f32.mrb[70].mxu0  ;;  %v3616_v7 = vadd.f32 %v9866_v9, %v12290_v6 }
 0x3ac   :  { %v12596_v61 = vmax.f32 %v3615_v34, %v3619_v37  ;;  %v9869_v63 = vadd.f32 %v8950_v0, %v12298_v8  ;;  %v3318_v46 = vpop.f32.mrb[71].mxu0  ;;  %9022 = vmatprep.mubr.f32.mxu1 %v3792_v3 }
 0x3ad   :  { %v12599_v62 = vmax.f32 %v3614_v12, %v3618_v2  ;;  %v9870_v25 = vadd.f32 %v3318_v46, %v13958_v19  ;;  %9023 = vmatmul.mubr.f32.gmra.mrb[98].mxu1 %v3793_v51  ;;  %v13959_v12 = vld [vmem:[#allocation49_spill] sm:$0xff] }
 0x3ae   :  { %v3621_v32 = vadd.f32 %v9869_v63, %v12290_v6 }
 0x3af   :  { %v3620_v49 = vadd.f32 %v9870_v25, %v12290_v6  ;;  %v8953_v1 = vpop.f32.mrb[72].mxu0  ;;  %v10405_v16 = vpack.i.bf16 %v12596_v61, %v12599_v62  ;;  %v13960_v25 = vld [vmem:[#allocation50_spill] sm:$0xff] }
 0x3b0   :  { %v12608_v8 = vmax.f32 %v3617_v23, %v3621_v32  ;;  %v9871_v24 = vadd.f32 %v8953_v1, %v12316_v21  ;;  %v3328_v13 = vpop.f32.mrb[73].mxu0 }
 0x3b1   :  { %v12611_v20 = vmax.f32 %v3616_v7, %v3620_v49  ;;  %v9872_v4 = vadd.f32 %v3328_v13, %v12321_v18  ;;  %10406 = vrot.lane.b32.xlu0 %v10405_v16, %s10446_s2 }
 0x3b3   :  { %v10337_v53 = vpop.permute.xlu1 %10336  ;;  %v8956_v22 = vpop.f32.mrb[74].mxu0  ;;  %v10410_v9 = vpack.i.bf16 %v12608_v8, %v12611_v20 }
 0x3b4   :  { %v10339_v34 = vunpack.i.h.bf16 %v10337_v53  ;;  %v10338_v51 = vunpack.i.l.bf16 %v10337_v53  ;;  %v9873_v3 = vadd.f32 %v8956_v22, %v12329_v29  ;;  %v3338_v37 = vpop.f32.mrb[75].mxu0  ;;  %v3623_v29 = vadd.f32 %v9871_v24, %v12290_v6  ;;  %v13961_v22 = vld [vmem:[#allocation51_spill] sm:$0xff] }
 0x3b5   :  { %v9874_v2 = vadd.f32 %v3338_v37, %v13959_v12  ;;  %10411 = vrot.lane.b32.xlu1 %v10410_v9, %s10446_s2 }
 0x3b6   :  { %v3795_v21 = vmax.f32 %v12349_v27, %v10339_v34  ;;  %v3794_v18 = vmax.f32 %v12354_v30, %v10338_v51  ;;  %v3622_v30 = vadd.f32 %v9872_v4, %v12290_v6 }
 0x3b7   :  { %v10342_v0 = vpop.permute.xlu1 %10341  ;;  %v8959_v63 = vpop.f32.mrb[76].mxu0  ;;  %v3624_v4 = vadd.f32 %v9874_v2, %v12290_v6 }
 0x3b8   :  { %v10344_v46 = vunpack.i.h.bf16 %v10342_v0  ;;  %v10343_v19 = vunpack.i.l.bf16 %v10342_v0  ;;  %v9875_v23 = vadd.f32 %v8959_v63, %v13960_v25  ;;  %v3348_v32 = vpop.f32.mrb[77].mxu0  ;;  %9025 = vmatprep.mubr.f32.mxu1 %v3794_v18 }
 0x3b9   :  { %v9876_v7 = vadd.f32 %v3348_v32, %v12339_v10  ;;  %9026 = vmatmul.mubr.f32.gmra.mrb[100].mxu1 %v3795_v21 }
 0x3ba   :  { %v3797_v49 = vmax.f32 %v12364_v26, %v10344_v46  ;;  %v3796_v1 = vmax.f32 %v12369_v5, %v10343_v19  ;;  %v3627_v27 = vadd.f32 %v9875_v23, %v12290_v6  ;;  %v3625_v26 = vadd.f32 %v9873_v3, %v12290_v6  ;;  %v13962_v23 = vld [vmem:[#allocation52_spill] sm:$0xff] }
 0x3bb   :  { %v3626_v16 = vadd.f32 %v9876_v7, %v12290_v6  ;;  %v8962_v13 = vpop.f32.mrb[78].mxu0 }
 0x3bc   :  { %v12630_v53 = vmax.f32 %v3623_v29, %v3627_v27  ;;  %v9877_v9 = vadd.f32 %v8962_v13, %v13961_v22  ;;  %v3358_v34 = vpop.f32.mrb[79].mxu0  ;;  %9028 = vmatprep.mubr.f32.mxu1 %v3796_v1  ;;  %v13963_v29 = vld [vmem:[#allocation53_spill] sm:$0xff]  ;;  %v13964_v13 = vld [vmem:[#allocation54_spill] sm:$0xff] }
 0x3bd   :  { %v12633_v10 = vmax.f32 %v3622_v30, %v3626_v16  ;;  %v9878_v24 = vadd.f32 %v3358_v34, %v12351_v11  ;;  %9029 = vmatmul.mubr.f32.gmra.mrb[102].mxu1 %v3797_v49  ;;  %v13965_v34 = vld [vmem:[#allocation56_spill] sm:$0xff] }
 0x3be   :  { %v3629_v5 = vadd.f32 %v9877_v9, %v12290_v6 }
 0x3bf   :  { %v3628_v51 = vadd.f32 %v9878_v24, %v12290_v6  ;;  %v8965_v37 = vpop.f32.mrb[80].mxu0  ;;  %v10415_v12 = vpack.i.bf16 %v12630_v53, %v12633_v10 }
 0x3c0   :  { %v12642_v21 = vmax.f32 %v3625_v26, %v3629_v5  ;;  %v9879_v18 = vadd.f32 %v8965_v37, %v12362_v58  ;;  %v3368_v0 = vpop.f32.mrb[81].mxu0 }
 0x3c1   :  { %v12645_v63 = vmax.f32 %v3624_v4, %v3628_v51  ;;  %v9880_v11 = vadd.f32 %v3368_v0, %v12367_v33  ;;  %10416 = vrot.lane.b32.xlu0 %v10415_v12, %s10446_s2 }
 0x3c2   :  { %v3631_v26 = vadd.f32 %v9879_v18, %v12290_v6 }
 0x3c3   :  { %v10347_v3 = vpop.permute.xlu0 %10346  ;;  %v8968_v46 = vpop.f32.mrb[82].mxu0  ;;  %v10420_v2 = vpack.i.bf16 %v12642_v21, %v12645_v63 }
 0x3c4   :  { %v10349_v19 = vunpack.i.h.bf16 %v10347_v3  ;;  %v10348_v25 = vunpack.i.l.bf16 %v10347_v3  ;;  %v9881_v32 = vadd.f32 %v8968_v46, %v13962_v23  ;;  %v3378_v7 = vpop.f32.mrb[83].mxu0 }
 0x3c5   :  { %v9882_v49 = vadd.f32 %v3378_v7, %v13963_v29  ;;  %10421 = vrot.lane.b32.xlu1 %v10420_v2, %s10446_s2 }
 0x3c6   :  { %v3799_v58 = vmax.f32 %v12394_v31, %v10349_v19  ;;  %v3798_v33 = vmax.f32 %v12399_v28, %v10348_v25  ;;  %v3630_v28 = vadd.f32 %v9880_v11, %v12290_v6 }
 0x3c7   :  { %v10352_v1 = vpop.permute.xlu1 %10351  ;;  %v8971_v27 = vpop.f32.mrb[84].mxu0  ;;  %v3632_v11 = vadd.f32 %v9882_v49, %v12290_v6 }
 0x3c8   :  { %v10354_v30 = vunpack.i.h.bf16 %v10352_v1  ;;  %v10353_v16 = vunpack.i.l.bf16 %v10352_v1  ;;  %v9883_v22 = vadd.f32 %v8971_v27, %v13964_v13  ;;  %v3388_v9 = vpop.f32.mrb[85].mxu0  ;;  %9031 = vmatprep.mubr.f32.mxu1 %v3798_v33  ;;  %v13966_v27 = vld [vmem:[#allocation58_spill] sm:$0xff] }
 0x3c9   :  { %v9884_v24 = vadd.f32 %v3388_v9, %v13965_v34  ;;  %9032 = vmatmul.mubr.f32.gmra.mrb[104].mxu1 %v3799_v58  ;;  %v13967_v13 = vld [vmem:[#allocation62_spill] sm:$0xff] }
 0x3ca   :  { %v3801_v5 = vmax.f32 %v12410_v15, %v10354_v30  ;;  %v3800_v4 = vmax.f32 %v12415_v42, %v10353_v16  ;;  %v3635_v31 = vadd.f32 %v9883_v22, %v12290_v6  ;;  %v3633_v15 = vadd.f32 %v9881_v32, %v12290_v6 }
 0x3cb   :  { %v3634_v51 = vadd.f32 %v9884_v24, %v12290_v6  ;;  %v8974_v37 = vpop.f32.mrb[86].mxu0 }
 0x3cc   :  { %v12664_v12 = vmax.f32 %v3631_v26, %v3635_v31  ;;  %v9885_v0 = vadd.f32 %v8974_v37, %v12392_v41  ;;  %v3398_v3 = vpop.f32.mrb[87].mxu0  ;;  %9034 = vmatprep.mubr.f32.mxu1 %v3800_v4 }
 0x3cd   :  { %v12667_v46 = vmax.f32 %v3630_v28, %v3634_v51  ;;  %v9886_v18 = vadd.f32 %v3398_v3, %v12397_v14  ;;  %9035 = vmatmul.mubr.f32.gmra.mrb[106].mxu1 %v3801_v5  ;;  %v13968_v5 = vld [vmem:[#allocation63_spill] sm:$0xff]  ;;  %v13969_v28 = vld [vmem:[#allocation64_spill] sm:$0xff] }
 0x3ce   :  { %v3637_v42 = vadd.f32 %v9885_v0, %v12290_v6 }
 0x3cf   :  { %v3636_v2 = vadd.f32 %v9886_v18, %v12290_v6  ;;  %v8977_v19 = vpop.f32.mrb[88].mxu0  ;;  %v10425_v25 = vpack.i.bf16 %v12664_v12, %v12667_v46 }
 0x3d0   :  { %v12676_v41 = vmax.f32 %v3633_v15, %v3637_v42  ;;  %v9887_v23 = vadd.f32 %v8977_v19, %v12408_v57  ;;  %v3408_v7 = vpop.f32.mrb[89].mxu0 }
 0x3d1   :  { %v12679_v29 = vmax.f32 %v3632_v11, %v3636_v2  ;;  %v9888_v14 = vadd.f32 %v3408_v7, %v12413_v59  ;;  %10426 = vrot.lane.b32.xlu0 %v10425_v25, %s10446_s2  ;;  %v7124_v7 = vld [vmem:[%s13595_s4 + $0x48] sm:$0xff] }
 0x3d2   :  { %v3639_v37 = vadd.f32 %v9887_v23, %v12290_v6  ;;  %v7123_v23 = vld [vmem:[%s13595_s4 + $0x40] sm:$0xff] }
 0x3d3   :  { %v10357_v32 = vpop.permute.xlu0 %10356  ;;  %v8980_v58 = vpop.f32.mrb[90].mxu0  ;;  %v10430_v49 = vpack.i.bf16 %v12676_v41, %v12679_v29 }
 0x3d4   :  { %v10359_v33 = vunpack.i.h.bf16 %v10357_v32  ;;  %v10358_v1 = vunpack.i.l.bf16 %v10357_v32  ;;  %v9889_v30 = vadd.f32 %v8980_v58, %v13966_v27  ;;  %v3418_v16 = vpop.f32.mrb[91].mxu0  ;;  %v9641_v32 = vpack.c.bf16 %v7124_v7, %v7123_v23 }
 0x3d5   :  { %v9890_v22 = vadd.f32 %v3418_v16, %v13967_v13  ;;  %10431 = vrot.lane.b32.xlu1 %v10430_v49, %s10446_s2 }
 0x3d6   :  { %v3803_v57 = vmax.f32 %v12440_v40, %v10359_v33  ;;  %v3802_v59 = vmax.f32 %v12445_v38, %v10358_v1  ;;  %v3638_v38 = vadd.f32 %v9888_v14, %v12290_v6  ;;  %9642 = vmatprep.subr.bf16.mxu1 %v9641_v32 }
 0x3d7   :  { %v10362_v9 = vpop.permute.xlu1 %10361  ;;  %v8983_v34 = vpop.f32.mrb[92].mxu0  ;;  %9644 = vmatpush3.bf16.msra.mxu1 %v9641_v32  ;;  %v13973_v32 = vld [vmem:[#allocation57_spill] sm:$0xff] }
 0x3d8   :  { %v10364_v24 = vunpack.i.h.bf16 %v10362_v9  ;;  %v10363_v26 = vunpack.i.l.bf16 %v10362_v9  ;;  %v9891_v4 = vadd.f32 %v8983_v34, %v13968_v5  ;;  %v3428_v31 = vpop.f32.mrb[93].mxu0  ;;  %9037 = vmatprep.mubr.f32.mxu1 %v3802_v59 }
 0x3d9   :  { %v9892_v51 = vadd.f32 %v3428_v31, %v13969_v28  ;;  %9038 = vmatmul.mubr.f32.gmra.mrb[108].mxu1 %v3803_v57 }
 0x3da   :  { %v3805_v0 = vmax.f32 %v12454_v55, %v10364_v24  ;;  %v3804_v3 = vmax.f32 %v12457_v52, %v10363_v26  ;;  %v3643_v40 = vadd.f32 %v9891_v4, %v12290_v6  ;;  %v3641_v55 = vadd.f32 %v9889_v30, %v12290_v6 }
 0x3db   :  { %v3642_v18 = vadd.f32 %v9892_v51, %v12290_v6  ;;  %v8986_v15 = vpop.f32.mrb[94].mxu0 }
 0x3dc   :  { %v12698_v42 = vmax.f32 %v3639_v37, %v3643_v40  ;;  %v9893_v11 = vadd.f32 %v8986_v15, %v12438_v44  ;;  %v3438_v2 = vpop.f32.mrb[95].mxu0  ;;  %9040 = vmatprep.mubr.f32.mxu1 %v3804_v3  ;;  %v3640_v44 = vadd.f32 %v9890_v22, %v12290_v6 }
 0x3dd   :  { %v12701_v19 = vmax.f32 %v3638_v38, %v3642_v18  ;;  %v9894_v25 = vadd.f32 %v3438_v2, %v12443_v35  ;;  %9041 = vmatmul.mubr.f32.gmra.mrb[110].mxu1 %v3805_v0 }
 0x3de   :  { %v3645_v52 = vadd.f32 %v9893_v11, %v12290_v6 }
 0x3df   :  { %v3644_v14 = vadd.f32 %v9894_v25, %v12290_v6  ;;  %v10435_v35 = vpack.i.bf16 %v12698_v42, %v12701_v19  ;;  %v13970_v25 = vld [vmem:[#allocation65_spill] sm:$0xff] }
 0x3e0   :  { %v12716_v58 = vmax.f32 %v3641_v55, %v3645_v52  ;;  %v7129_v52 = vld [vmem:[%s13595_s4 + $0x70] sm:$0xff] }
 0x3e1   :  { %v12718_v49 = vmax.f32 %v3640_v44, %v3644_v14  ;;  %10436 = vrot.lane.b32.xlu0 %v10435_v35, %s10446_s2  ;;  %v13972_v14 = vld [vmem:[#allocation55_spill] sm:$0xff] }
 0x3e3   :  { %v10367_v33 = vpop.permute.xlu0 %10366  ;;  %v10440_v1 = vpack.i.bf16 %v12716_v58, %v12718_v49 }
 0x3e4   :  { %v10369_v27 = vunpack.i.h.bf16 %v10367_v33  ;;  %v10368_v30 = vunpack.i.l.bf16 %v10367_v33 }
 0x3e5   :  { %10441 = vrot.lane.b32.xlu1 %v10440_v1, %s10446_s2 }
 0x3e6   :  { %v3807_v6 = vmax.f32 %v12472_v36, %v10369_v27  ;;  %v3806_v16 = vmax.f32 %v12475_v45, %v10368_v30 }
 0x3e7   :  { %v10372_v13 = vpop.permute.xlu1 %10371 }
 0x3e8   :  { %v10374_v22 = vunpack.i.h.bf16 %v10372_v13  ;;  %v10373_v57 = vunpack.i.l.bf16 %v10372_v13  ;;  %9043 = vmatprep.mubr.f32.mxu1 %v3806_v16  ;;  %v13975_v13 = vld [vmem:[#allocation60_spill] sm:$0xff] }
 0x3e9   :  { %9044 = vmatmul.mubr.f32.gmra.mrb[112].mxu1 %v3807_v6  ;;  %v13974_v6 = vld [vmem:[#allocation59_spill] sm:$0xff] }
 0x3ea   :  { %v3809_v59 = vmax.f32 %v12484_v60, %v10374_v22  ;;  %v3808_v9 = vmax.f32 %v12487_v39, %v10373_v57  ;;  %v7125_v39 = vld [vmem:[%s13595_s4 + $0x50] sm:$0xff] }
 0x3ec   :  { %9046 = vmatprep.mubr.f32.mxu1 %v3808_v9 }
 0x3ed   :  { %9047 = vmatmul.mubr.f32.gmra.mrb[114].mxu1 %v3809_v59 }
 0x3f3   :  { %v10377_v34 = vpop.permute.xlu0 %10376 }
 0x3f4   :  { %v10379_v24 = vunpack.i.h.bf16 %v10377_v34  ;;  %v10378_v26 = vunpack.i.l.bf16 %v10377_v34 }
 0x3f6   :  { %v3811_v5 = vmax.f32 %v12502_v50, %v10379_v24  ;;  %v3810_v36 = vmax.f32 %v12505_v56, %v10378_v26  ;;  %v7126_v50 = vld [vmem:[%s13595_s4 + $0x58] sm:$0xff]  ;;  %v7127_v56 = vld [vmem:[%s13595_s4 + $0x60] sm:$0xff] }
 0x3f7   :  { %v10382_v4 = vpop.permute.xlu1 %10381  ;;  %v9645_v37 = vpack.c.bf16 %v7126_v50, %v7125_v39 }
 0x3f8   :  { %v10384_v45 = vunpack.i.h.bf16 %v10382_v4  ;;  %v10383_v31 = vunpack.i.l.bf16 %v10382_v4  ;;  %9049 = vmatprep.mubr.f32.mxu1 %v3810_v36 }
 0x3f9   :  { %9050 = vmatmul.mubr.f32.gmra.mrb[116].mxu1 %v3811_v5  ;;  %9646 = vmatprep.subr.bf16.mxu1 %v9645_v37 }
 0x3fa   :  { %v3813_v28 = vmax.f32 %v12514_v17, %v10384_v45  ;;  %v3812_v60 = vmax.f32 %v12517_v47, %v10383_v31  ;;  %v7128_v17 = vld [vmem:[%s13595_s4 + $0x68] sm:$0xff]  ;;  %9648 = vmatpush3.bf16.msra.mxu1 %v9645_v37 }
 0x3fb   :  { %v9649_v3 = vpack.c.bf16 %v7128_v17, %v7127_v56 }
 0x3fc   :  { %9052 = vmatprep.mubr.f32.mxu1 %v3812_v60 }
 0x3fd   :  { %9053 = vmatmul.mubr.f32.gmra.mrb[118].mxu1 %v3813_v28  ;;  %9650 = vmatprep.subr.bf16.mxu1 %v9649_v3 }
 0x3fe   :  { %9652 = vmatpush3.bf16.msra.mxu1 %v9649_v3 }
 0x403   :  { %v10387_v51 = vpop.permute.xlu0 %10386 }
 0x404   :  { %v10389_v47 = vunpack.i.h.bf16 %v10387_v51  ;;  %v10388_v0 = vunpack.i.l.bf16 %v10387_v51 }
 0x406   :  { %v3815_v40 = vmax.f32 %v12532_v54, %v10389_v47  ;;  %v3814_v38 = vmax.f32 %v12535_v48, %v10388_v0  ;;  %v7130_v54 = vld [vmem:[%s13595_s4 + $0x78] sm:$0xf] }
 0x407   :  { %v10392_v18 = vpop.permute.xlu1 %10391  ;;  %v9653_v48 = vpack.c.bf16 %v7130_v54, %v7129_v52 }
 0x408   :  { %v10394_v15 = vunpack.i.h.bf16 %v10392_v18  ;;  %v10393_v11 = vunpack.i.l.bf16 %v10392_v18  ;;  %9055 = vmatprep.mubr.f32.mxu1 %v3814_v38 }
 0x409   :  { %9056 = vmatmul.mubr.f32.gmra.mrb[120].mxu1 %v3815_v40  ;;  %9655 = vmatprep.subr.msk.bf16.mxu1 %vm10528_vm3, %v9653_v48 }
 0x40a   :  { %v3817_v2 = vmax.f32 %v12544_v43, %v10394_v15  ;;  %v3816_v55 = vmax.f32 %v13970_v25, %v10393_v11  ;;  %9658 = vmatpush3.bf16.msk.msra.mxu1 %vm10528_vm3, %v9653_v48 }
 0x40c   :  { %9058 = vmatprep.mubr.f32.mxu1 %v3816_v55 }
 0x40d   :  { %9059 = vmatmul.mubr.f32.gmra.mrb[122].mxu1 %v3817_v2 }
 0x413   :  { %v10397_v43 = vpop.permute.xlu0 %10396 }
 0x414   :  { %v10399_v7 = vunpack.i.h.bf16 %v10397_v43  ;;  %v10398_v44 = vunpack.i.l.bf16 %v10397_v43 }
 0x416   :  { %v3819_v35 = vmax.f32 %v13972_v14, %v10399_v7  ;;  %v3818_v33 = vmax.f32 %v13973_v32, %v10398_v44  ;;  %v4209_v7 = vld [vmem:[%s13595_s4 + $0x10] sm:$0xff] }
 0x417   :  { %v10402_v1 = vpop.permute.xlu1 %10401 }
 0x418   :  { %v10404_v27 = vunpack.i.h.bf16 %v10402_v1  ;;  %v10403_v30 = vunpack.i.l.bf16 %v10402_v1  ;;  %9061 = vmatprep.mubr.f32.mxu1 %v3818_v33  ;;  %v4211_v33 = vld [vmem:[%s13595_s4 + $0x20] sm:$0xff]  ;;  %v4212_v1 = vld [vmem:[%s13595_s4 + $0x28] sm:$0xff] }
 0x419   :  { %9062 = vmatmul.mubr.f32.gmra.mrb[124].mxu1 %v3819_v35 }
 0x41a   :  { %v3821_v16 = vmax.f32 %v13974_v6, %v10404_v27  ;;  %v3820_v22 = vmax.f32 %v13975_v13, %v10403_v30  ;;  %v4213_v13 = vld [vmem:[%s13595_s4 + $0x30] sm:$0xff] }
 0x41c   :  { %9064 = vmatprep.mubr.f32.mxu1 %v3820_v22  ;;  %v4214_v22 = vld [vmem:[%s13595_s4 + $0x38] sm:$0xf] }
 0x41d   :  { %9065 = vmatmul.mubr.f32.gmra.mrb[126].mxu1 %v3821_v16  ;;  %v9667_v16 = vpack.c.bf16 %v4212_v1, %v4211_v33 }
 0x423   :  { %v10407_v57 = vpop.permute.xlu0 %10406 }
 0x424   :  { %v10409_v59 = vunpack.i.h.bf16 %v10407_v57  ;;  %v10408_v9 = vunpack.i.l.bf16 %v10407_v57  ;;  %v9671_v57 = vpack.c.bf16 %v4214_v22, %v4213_v13 }
 0x426   :  { %v3823_v34 = vmax.f32 %v12596_v61, %v10409_v59  ;;  %v3822_v24 = vmax.f32 %v12599_v62, %v10408_v9  ;;  %v7197_v59 = vld [vmem:[%s13595_s4 + $0x80] sm:$0xff]  ;;  %v7198_v9 = vld [vmem:[%s13595_s4 + $0x88] sm:$0xff] }
 0x427   :  { %v10412_v26 = vpop.permute.xlu1 %10411 }
 0x428   :  { %v10414_v5 = vunpack.i.h.bf16 %v10412_v26  ;;  %v10413_v36 = vunpack.i.l.bf16 %v10412_v26  ;;  %9067 = vmatprep.mubr.f32.mxu1 %v3822_v24 }
 0x429   :  { %9068 = vmatmul.mubr.f32.gmra.mrb[128].mxu1 %v3823_v34  ;;  %v12842_v34 = vpack.c.bf16 %v7198_v9, %v7197_v59 }
 0x42a   :  { %v3825_v4 = vmax.f32 %v12608_v8, %v10414_v5  ;;  %v3824_v45 = vmax.f32 %v12611_v20, %v10413_v36 }
 0x42c   :  { %9070 = vmatprep.mubr.f32.mxu1 %v3824_v45 }
 0x42d   :  { %9071 = vmatmul.mubr.f32.gmra.mrb[130].mxu1 %v3825_v4 }
 0x433   :  { %v10417_v31 = vpop.permute.xlu0 %10416 }
 0x434   :  { %v10419_v28 = vunpack.i.h.bf16 %v10417_v31  ;;  %v10418_v60 = vunpack.i.l.bf16 %v10417_v31 }
 0x436   :  { %v3827_v39 = vmax.f32 %v12630_v53, %v10419_v28  ;;  %v3826_v61 = vmax.f32 %v12633_v10, %v10418_v60  ;;  %v4207_v53 = vld [vmem:[%s13595_s4] sm:$0xff]  ;;  %v4208_v10 = vld [vmem:[%s13595_s4 + $0x8] sm:$0xff] }
 0x437   :  { %v10422_v50 = vpop.permute.xlu1 %10421 }
 0x438   :  { %v10424_v62 = vunpack.i.h.bf16 %v10422_v50  ;;  %v10423_v56 = vunpack.i.l.bf16 %v10422_v50  ;;  %9073 = vmatprep.mubr.f32.mxu1 %v3826_v61 }
 0x439   :  { %9074 = vmatmul.mubr.f32.gmra.mrb[132].mxu1 %v3827_v39 }
 0x43a   :  { %v3829_v51 = vmax.f32 %v12642_v21, %v10424_v62  ;;  %v3828_v8 = vmax.f32 %v12645_v63, %v10423_v56  ;;  %v9659_v21 = vpack.c.bf16 %v4208_v10, %v4207_v53 }
 0x43c   :  { %9076 = vmatprep.mubr.f32.mxu1 %v3828_v8  ;;  %9660 = vmatprep.subr.bf16.mxu1 %v9659_v21 }
 0x43d   :  { %9077 = vmatmul.mubr.f32.gmra.mrb[134].mxu1 %v3829_v51 }
 0x443   :  { %v10427_v20 = vpop.permute.xlu0 %10426 }
 0x444   :  { %v10429_v37 = vunpack.i.h.bf16 %v10427_v20  ;;  %v10428_v17 = vunpack.i.l.bf16 %v10427_v20 }
 0x446   :  { %v3831_v47 = vmax.f32 %v12664_v12, %v10429_v37  ;;  %v3830_v0 = vmax.f32 %v12667_v46, %v10428_v17 }
 0x447   :  { %v10432_v3 = vpop.permute.xlu1 %10431 }
 0x448   :  { %v10434_v63 = vunpack.i.h.bf16 %v10432_v3  ;;  %v10433_v40 = vunpack.i.l.bf16 %v10432_v3  ;;  %9079 = vmatprep.mubr.f32.mxu1 %v3830_v0 }
 0x449   :  { %9080 = vmatmul.mubr.f32.gmra.mrb[136].mxu1 %v3831_v47 }
 0x44a   :  { %v3833_v38 = vmax.f32 %v12676_v41, %v10434_v63  ;;  %v3832_v18 = vmax.f32 %v12679_v29, %v10433_v40 }
 0x44c   :  { %9082 = vmatprep.mubr.f32.mxu1 %v3832_v18 }
 0x44d   :  { %9083 = vmatmul.mubr.f32.gmra.mrb[138].mxu1 %v3833_v38 }
 0x453   :  { %v10437_v15 = vpop.permute.xlu0 %10436 }
 0x454   :  { %v10439_v11 = vunpack.i.h.bf16 %v10437_v15  ;;  %v10438_v2 = vunpack.i.l.bf16 %v10437_v15 }
 0x456   :  { %v3835_v12 = vmax.f32 %v12698_v42, %v10439_v11  ;;  %v3834_v46 = vmax.f32 %v12701_v19, %v10438_v2 }
 0x457   :  { %v10442_v25 = vpop.permute.xlu1 %10441 }
 0x458   :  { %v10444_v55 = vunpack.i.h.bf16 %v10442_v25  ;;  %v10443_v52 = vunpack.i.l.bf16 %v10442_v25  ;;  %9085 = vmatprep.mubr.f32.mxu1 %v3834_v46 }
 0x459   :  { %9086 = vmatmul.mubr.f32.gmra.mrb[140].mxu1 %v3835_v12 }
 0x45a   :  { %v3837_v54 = vmax.f32 %v12716_v58, %v10444_v55  ;;  %v3836_v41 = vmax.f32 %v12718_v49, %v10443_v52  ;;  %v4210_v58 = vld [vmem:[%s13595_s4 + $0x18] sm:$0xff] }
 0x45b   :  { %v9663_v35 = vpack.c.bf16 %v4210_v58, %v4209_v7 }
 0x45c   :  { %9088 = vmatprep.mubr.f32.mxu1 %v3836_v41 }
 0x45d   :  { %9089 = vmatmul.mubr.f32.gmra.mrb[142].mxu1 %v3837_v54 }
 0x47c   :  { %v12784_v29 = vpop.f32.mrb[96].mxu1 }
 0x47d   :  { %v12786_v48 = vpop.f32.mrb[97].mxu1 }
 0x480   :  { %v12788_v43 = vpop.f32.mrb[98].mxu1 }
 0x481   :  { %v12790_v42 = vpop.f32.mrb[99].mxu1 }
 0x48c   :  { %v12792_v19 = vpop.f32.mrb[100].mxu1 }
 0x48d   :  { %v12800_v49 = vpop.f32.mrb[101].mxu1  ;;  %v4164_v14 = vmax.f32 %v12792_v19, 0.0 }
 0x48e   :  { %v4163_v44 = vmax.f32 %v12800_v49, 0.0 }
 0x490   :  { %v12804_v32 = vpop.f32.mrb[102].mxu1  ;;  %9107 = vmatprep.mubr.msk.f32.mxu1 %vm4224_vm4, %v4163_v44 }
 0x491   :  { %v12815_v27 = vpop.f32.mrb[103].mxu1  ;;  %9108 = vmatmul.mubr.msk.f32.vlgmr.msra.gmra.mrb[144].mxu1 %vm4224_vm4, %v4164_v14  ;;  %v4166_v6 = vmax.f32 %v12804_v32, 0.0 }
 0x492   :  { %v4165_v30 = vmax.f32 %v12815_v27, 0.0  ;;  %9662 = vmatpush3.bf16.msra.mxu1 %v9659_v21 }
 0x493   :  { %9664 = vmatprep.subr.bf16.mxu1 %v9663_v35 }
 0x494   :  { %9110 = vmatprep.mubr.msk.f32.mxu1 %vm4224_vm4, %v4165_v30 }
 0x495   :  { %9111 = vmatmul.mubr.msk.f32.gmra.mrb[146].mxu1 %vm4224_vm4, %v4166_v6 }
 0x496   :  { %9666 = vmatpush3.bf16.msra.mxu1 %v9663_v35 }
 0x497   :  { %9668 = vmatprep.subr.bf16.mxu1 %v9667_v16 }
 0x49a   :  { %9670 = vmatpush3.bf16.msra.mxu1 %v9667_v16 }
 0x49b   :  { %9673 = vmatprep.subr.msk.bf16.mxu1 %vm10528_vm3, %v9671_v57 }
 0x49c   :  { %v9033_v24 = vpop.f32.mrb[104].mxu1 }
 0x49d   :  { %v3960_v26 = vpop.f32.mrb[105].mxu1  ;;  %v12848_v36 = vmax.f32 %v9033_v24, 0.0 }
 0x49e   :  { %v12844_v5 = vmax.f32 %v3960_v26, 0.0  ;;  %9676 = vmatpush3.bf16.msk.msra.mxu1 %vm10528_vm3, %v9671_v57 }
 0x49f   :  { %9678 = vmatprep.subr.bf16.mxu1 %v12842_v34 }
 0x4a0   :  { %v9036_v4 = vpop.f32.mrb[106].mxu1  ;;  %9113 = vmatprep.mubr.msk.f32.mxu1 %vm4224_vm4, %v12844_v5 }
 0x4a1   :  { %v3970_v45 = vpop.f32.mrb[107].mxu1  ;;  %9114 = vmatmul.mubr.msk.f32.gmra.mrb[148].mxu1 %vm4224_vm4, %v12848_v36  ;;  %v12857_v28 = vmax.f32 %v9036_v4, 0.0 }
 0x4a2   :  { %v12855_v31 = vmax.f32 %v3970_v45, 0.0 }
 0x4a4   :  { %9116 = vmatprep.mubr.msk.f32.mxu1 %vm4224_vm4, %v12855_v31 }
 0x4a5   :  { %9117 = vmatmul.mubr.msk.f32.gmra.mrb[150].mxu1 %vm4224_vm4, %v12857_v28 }
 0x4ac   :  { %v9039_v60 = vpop.f32.mrb[108].mxu1 }
 0x4ad   :  { %v3980_v39 = vpop.f32.mrb[109].mxu1  ;;  %v12865_v50 = vmax.f32 %v9039_v60, 0.0 }
 0x4ae   :  { %v12863_v61 = vmax.f32 %v3980_v39, 0.0 }
 0x4b0   :  { %v9042_v62 = vpop.f32.mrb[110].mxu1  ;;  %9119 = vmatprep.mubr.msk.f32.mxu1 %vm4224_vm4, %v12863_v61 }
 0x4b1   :  { %v3990_v56 = vpop.f32.mrb[111].mxu1  ;;  %9120 = vmatmul.mubr.msk.f32.gmra.mrb[152].mxu1 %vm4224_vm4, %v12865_v50  ;;  %v12873_v8 = vmax.f32 %v9042_v62, 0.0  ;;  %v4159_v62 = vmax.f32 %v12786_v48, 0.0  ;;  %v4161_v48 = vmax.f32 %v12790_v42, 0.0  ;;  %v7203_v42 = vld [vmem:[%s13595_s4 + $0xb0] sm:$0xff] }
 0x4b2   :  { %v12871_v51 = vmax.f32 %v3990_v56, 0.0  ;;  %v7199_v56 = vld [vmem:[%s13595_s4 + $0x90] sm:$0xff] }
 0x4b4   :  { %9122 = vmatprep.mubr.msk.f32.mxu1 %vm4224_vm4, %v12871_v51 }
 0x4b5   :  { %9123 = vmatmul.mubr.msk.f32.gmra.mrb[154].mxu1 %vm4224_vm4, %v12873_v8 }
 0x4bc   :  { %v9045_v20 = vpop.f32.mrb[112].mxu1 }
 0x4bd   :  { %v4000_v37 = vpop.f32.mrb[113].mxu1  ;;  %v12881_v53 = vmax.f32 %v9045_v20, 0.0  ;;  %v7200_v20 = vld [vmem:[%s13595_s4 + $0x98] sm:$0xff] }
 0x4be   :  { %v12879_v17 = vmax.f32 %v4000_v37, 0.0  ;;  %v4160_v37 = vmax.f32 %v12784_v29, 0.0 }
 0x4c0   :  { %v9048_v10 = vpop.f32.mrb[114].mxu1  ;;  %9125 = vmatprep.mubr.msk.f32.mxu1 %vm4224_vm4, %v12879_v17 }
 0x4c1   :  { %v4010_v47 = vpop.f32.mrb[115].mxu1  ;;  %9126 = vmatmul.mubr.msk.f32.gmra.mrb[156].mxu1 %vm4224_vm4, %v12881_v53  ;;  %v12889_v21 = vmax.f32 %v9048_v10, 0.0  ;;  %v9681_v10 = vpack.c.bf16 %v7200_v20, %v7199_v56 }
 0x4c2   :  { %v12887_v0 = vmax.f32 %v4010_v47, 0.0  ;;  %v7201_v47 = vld [vmem:[%s13595_s4 + $0xa0] sm:$0xff] }
 0x4c4   :  { %9128 = vmatprep.mubr.msk.f32.mxu1 %vm4224_vm4, %v12887_v0 }
 0x4c5   :  { %9129 = vmatmul.mubr.msk.f32.gmra.mrb[158].mxu1 %vm4224_vm4, %v12889_v21 }
 0x4cc   :  { %v9051_v3 = vpop.f32.mrb[116].mxu1 }
 0x4cd   :  { %v4020_v63 = vpop.f32.mrb[117].mxu1  ;;  %v12897_v38 = vmax.f32 %v9051_v3, 0.0  ;;  %v7202_v3 = vld [vmem:[%s13595_s4 + $0xa8] sm:$0xff] }
 0x4ce   :  { %v12895_v40 = vmax.f32 %v4020_v63, 0.0  ;;  %v4162_v63 = vmax.f32 %v12788_v43, 0.0  ;;  %v9685_v29 = vpack.c.bf16 %v7202_v3, %v7201_v47  ;;  %v7282_v47 = vld [vmem:[%s13595_s4 + $0x118] sm:$0xff] }
 0x4d0   :  { %v9054_v18 = vpop.f32.mrb[118].mxu1  ;;  %9131 = vmatprep.mubr.msk.f32.mxu1 %vm4224_vm4, %v12895_v40 }
 0x4d1   :  { %v4030_v15 = vpop.f32.mrb[119].mxu1  ;;  %9132 = vmatmul.mubr.msk.f32.gmra.mrb[160].mxu1 %vm4224_vm4, %v12897_v38  ;;  %v12905_v2 = vmax.f32 %v9054_v18, 0.0 }
 0x4d2   :  { %v12903_v11 = vmax.f32 %v4030_v15, 0.0  ;;  %v7204_v15 = vld [vmem:[%s13595_s4 + $0xb8] sm:$0xf] }
 0x4d3   :  { %v9689_v43 = vpack.c.bf16 %v7204_v15, %v7203_v42  ;;  %v7286_v42 = vld [vmem:[%s13595_s4 + $0x138] sm:$0xf]  ;;  %v5688_v15 = vld [vmem:[%s13596_s6 + $0x8] sm:$0xff] }
 0x4d4   :  { %9134 = vmatprep.mubr.msk.f32.mxu1 %vm4224_vm4, %v12903_v11 }
 0x4d5   :  { %9135 = vmatmul.mubr.msk.f32.gmra.mrb[162].mxu1 %vm4224_vm4, %v12905_v2 }
 0x4dc   :  { %v9057_v12 = vpop.f32.mrb[120].mxu1 }
 0x4dd   :  { %v4040_v46 = vpop.f32.mrb[121].mxu1  ;;  %v12913_v55 = vmax.f32 %v9057_v12, 0.0 }
 0x4de   :  { %v12911_v25 = vmax.f32 %v4040_v46, 0.0  ;;  %v7238_v46 = vld [vmem:[%s13595_s4 + $0xc0] sm:$0xff] }
 0x4e0   :  { %v9060_v52 = vpop.f32.mrb[122].mxu1  ;;  %9137 = vmatprep.mubr.msk.f32.mxu1 %vm4224_vm4, %v12911_v25 }
 0x4e1   :  { %v4050_v54 = vpop.f32.mrb[123].mxu1  ;;  %9138 = vmatmul.mubr.msk.f32.gmra.mrb[164].mxu1 %vm4224_vm4, %v12913_v55  ;;  %v12921_v7 = vmax.f32 %v9060_v52, 0.0  ;;  %v7239_v52 = vld [vmem:[%s13595_s4 + $0xc8] sm:$0xff] }
 0x4e2   :  { %v12919_v41 = vmax.f32 %v4050_v54, 0.0  ;;  %v9695_v49 = vpack.c.bf16 %v7239_v52, %v7238_v46  ;;  %v5689_v46 = vld [vmem:[%s13596_s6 + $0x10] sm:$0xff]  ;;  %v5690_v52 = vld [vmem:[%s13596_s6 + $0x18] sm:$0xff] }
 0x4e4   :  { %9140 = vmatprep.mubr.msk.f32.mxu1 %vm4224_vm4, %v12919_v41 }
 0x4e5   :  { %9141 = vmatmul.mubr.msk.f32.gmra.mrb[166].mxu1 %vm4224_vm4, %v12921_v7 }
 0x4ec   :  { %v9063_v58 = vpop.f32.mrb[124].mxu1 }
 0x4ed   :  { %v4060_v35 = vpop.f32.mrb[125].mxu1  ;;  %v12929_v1 = vmax.f32 %v9063_v58, 0.0 }
 0x4ee   :  { %v12927_v33 = vmax.f32 %v4060_v35, 0.0  ;;  %v7240_v35 = vld [vmem:[%s13595_s4 + $0xd0] sm:$0xff] }
 0x4f0   :  { %v9066_v16 = vpop.f32.mrb[126].mxu1  ;;  %9143 = vmatprep.mubr.msk.f32.mxu1 %vm4224_vm4, %v12927_v33 }
 0x4f1   :  { %v4070_v13 = vpop.f32.mrb[127].mxu1  ;;  %9144 = vmatmul.mubr.msk.f32.gmra.mrb[168].mxu1 %vm4224_vm4, %v12929_v1  ;;  %v12937_v57 = vmax.f32 %v9066_v16, 0.0  ;;  %v7241_v16 = vld [vmem:[%s13595_s4 + $0xd8] sm:$0xff] }
 0x4f2   :  { %v12935_v22 = vmax.f32 %v4070_v13, 0.0  ;;  %v9699_v13 = vpack.c.bf16 %v7241_v16, %v7240_v35 }
 0x4f4   :  { %9146 = vmatprep.mubr.msk.f32.mxu1 %vm4224_vm4, %v12935_v22 }
 0x4f5   :  { %9147 = vmatmul.mubr.msk.f32.gmra.mrb[170].mxu1 %vm4224_vm4, %v12937_v57 }
 0x4fc   :  { %v9069_v59 = vpop.f32.mrb[128].mxu1 }
 0x4fd   :  { %v4080_v9 = vpop.f32.mrb[129].mxu1  ;;  %v12945_v26 = vmax.f32 %v9069_v59, 0.0  ;;  %v7242_v59 = vld [vmem:[%s13595_s4 + $0xe0] sm:$0xff] }
 0x4fe   :  { %v12943_v24 = vmax.f32 %v4080_v9, 0.0  ;;  %v7243_v9 = vld [vmem:[%s13595_s4 + $0xe8] sm:$0xff] }
 0x500   :  { %v9072_v4 = vpop.f32.mrb[130].mxu1  ;;  %9149 = vmatprep.mubr.msk.f32.mxu1 %vm4224_vm4, %v12943_v24 }
 0x501   :  { %v4090_v45 = vpop.f32.mrb[131].mxu1  ;;  %9150 = vmatmul.mubr.msk.f32.gmra.mrb[172].mxu1 %vm4224_vm4, %v12945_v26  ;;  %v12953_v39 = vmax.f32 %v9072_v4, 0.0  ;;  %v9703_v4 = vpack.c.bf16 %v7243_v9, %v7242_v59 }
 0x502   :  { %v12951_v60 = vmax.f32 %v4090_v45, 0.0  ;;  %v7245_v45 = vld [vmem:[%s13595_s4 + $0xf8] sm:$0xf] }
 0x504   :  { %9152 = vmatprep.mubr.msk.f32.mxu1 %vm4224_vm4, %v12951_v60 }
 0x505   :  { %9153 = vmatmul.mubr.msk.f32.gmra.mrb[174].mxu1 %vm4224_vm4, %v12953_v39 }
 0x506   :  { %9171 = vmatprep.mubr.msk.f32.mxu1 %vm4224_vm4, %v4159_v62  ;;  %v7280_v62 = vld [vmem:[%s13595_s4 + $0x108] sm:$0xff] }
 0x509   :  { %9172 = vmatmul.mubr.msk.f32.vlgmr.msra.gmra.mrb[144].mxu1 %vm4224_vm4, %v4160_v37 }
 0x50a   :  { %9174 = vmatprep.mubr.msk.f32.mxu1 %vm4224_vm4, %v4161_v48  ;;  %9680 = vmatpush3.bf16.msra.mxu1 %v12842_v34  ;;  %v7281_v48 = vld [vmem:[%s13595_s4 + $0x110] sm:$0xff] }
 0x50b   :  { %9682 = vmatprep.subr.bf16.mxu1 %v9681_v10  ;;  %v9717_v3 = vpack.c.bf16 %v7282_v47, %v7281_v48 }
 0x50c   :  { %v12979_v18 = vpop.f32.mrb[132].mxu1 }
 0x50d   :  { %v12987_v12 = vpop.f32.mrb[133].mxu1  ;;  %9175 = vmatmul.mubr.msk.f32.gmra.mrb[146].mxu1 %vm4224_vm4, %v4162_v63  ;;  %v13170_v20 = vmax.f32 %v12979_v18, 0.0  ;;  %v7283_v63 = vld [vmem:[%s13595_s4 + $0x120] sm:$0xff] }
 0x50e   :  { %9177 = vmatprep.mubr.msk.f32.mxu1 %vm4224_vm4, %v4163_v44  ;;  %9684 = vmatpush3.bf16.msra.mxu1 %v9681_v10  ;;  %v13163_v56 = vmax.f32 %v12987_v12, 0.0 }
 0x50f   :  { %9686 = vmatprep.subr.bf16.mxu1 %v9685_v29 }
 0x510   :  { %v12993_v34 = vpop.f32.mrb[134].mxu1 }
 0x511   :  { %v13001_v54 = vpop.f32.mrb[135].mxu1  ;;  %9178 = vmatmul.mubr.msk.f32.gmra.mrb[148].mxu1 %vm4224_vm4, %v4164_v14  ;;  %v13180_v10 = vmax.f32 %v12993_v34, 0.0 }
 0x512   :  { %9180 = vmatprep.mubr.msk.f32.mxu1 %vm4224_vm4, %v4165_v30  ;;  %9688 = vmatpush3.bf16.msra.mxu1 %v9685_v29  ;;  %v13173_v37 = vmax.f32 %v13001_v54, 0.0  ;;  %v7284_v29 = vld [vmem:[%s13595_s4 + $0x128] sm:$0xff]  ;;  %v9735_v54 = vpack.c.bf16 %v5690_v52, %v5689_v46 }
 0x513   :  { %9691 = vmatprep.subr.msk.bf16.mxu1 %vm10528_vm3, %v9689_v43  ;;  %v9721_v18 = vpack.c.bf16 %v7284_v29, %v7283_v63 }
 0x515   :  { %9181 = vmatmul.mubr.msk.f32.gmra.mrb[150].mxu1 %vm4224_vm4, %v4166_v6 }
 0x516   :  { %9183 = vmatprep.mubr.msk.f32.mxu1 %vm4224_vm4, %v12844_v5  ;;  %9694 = vmatpush3.bf16.msk.msra.mxu1 %vm10528_vm3, %v9689_v43 }
 0x517   :  { %9696 = vmatprep.subr.bf16.mxu1 %v9695_v49 }
 0x519   :  { %9184 = vmatmul.mubr.msk.f32.gmra.mrb[152].mxu1 %vm4224_vm4, %v12848_v36 }
 0x51a   :  { %9186 = vmatprep.mubr.msk.f32.mxu1 %vm4224_vm4, %v12855_v31 }
 0x51c   :  { %v13022_v19 = vpop.f32.mrb[136].mxu1 }
 0x51d   :  { %v13024_v44 = vpop.f32.mrb[137].mxu1  ;;  %9187 = vmatmul.mubr.msk.f32.gmra.mrb[154].mxu1 %vm4224_vm4, %v12857_v28  ;;  %v4200_v12 = vmax.f32 %v13022_v19, 0.0 }
 0x51e   :  { %9189 = vmatprep.mubr.msk.f32.mxu1 %vm4224_vm4, %v12863_v61  ;;  %v4199_v23 = vmax.f32 %v13024_v44, 0.0 }
 0x520   :  { %v13030_v14 = vpop.f32.mrb[138].mxu1 }
 0x521   :  { %v13032_v32 = vpop.f32.mrb[139].mxu1  ;;  %9190 = vmatmul.mubr.msk.f32.gmra.mrb[156].mxu1 %vm4224_vm4, %v12865_v50  ;;  %v4202_v34 = vmax.f32 %v13030_v14, 0.0 }
 0x522   :  { %9192 = vmatprep.mubr.msk.f32.mxu1 %vm4224_vm4, %v12871_v51  ;;  %v4201_v43 = vmax.f32 %v13032_v32, 0.0  ;;  %v5891_v32 = vld [vmem:[%s13597_s7 + $0x10] sm:$0xff] }
 0x525   :  { %9193 = vmatmul.mubr.msk.f32.gmra.mrb[158].mxu1 %vm4224_vm4, %v12873_v8 }
 0x526   :  { %9195 = vmatprep.mubr.msk.f32.mxu1 %vm4224_vm4, %v12879_v17 }
 0x529   :  { %9196 = vmatmul.mubr.msk.f32.gmra.mrb[160].mxu1 %vm4224_vm4, %v12881_v53 }
 0x52a   :  { %9198 = vmatprep.mubr.msk.f32.mxu1 %vm4224_vm4, %v12887_v0 }
 0x52c   :  { %v13046_v27 = vpop.f32.mrb[140].mxu1 }
 0x52d   :  { %v13048_v30 = vpop.f32.mrb[141].mxu1  ;;  %9199 = vmatmul.mubr.msk.f32.gmra.mrb[162].mxu1 %vm4224_vm4, %v12889_v21 }
 0x52e   :  { %9201 = vmatprep.mubr.msk.f32.mxu1 %vm4224_vm4, %v12895_v40 }
 0x530   :  { %v13054_v6 = vpop.f32.mrb[142].mxu1 }
 0x531   :  { %v13056_v58 = vpop.f32.mrb[143].mxu1  ;;  %9202 = vmatmul.mubr.msk.f32.gmra.mrb[164].mxu1 %vm4224_vm4, %v12897_v38 }
 0x532   :  { %9204 = vmatprep.mubr.msk.f32.mxu1 %vm4224_vm4, %v12903_v11 }
 0x535   :  { %9205 = vmatmul.mubr.msk.f32.gmra.mrb[166].mxu1 %vm4224_vm4, %v12905_v2 }
 0x536   :  { %9207 = vmatprep.mubr.msk.f32.mxu1 %vm4224_vm4, %v12911_v25 }
 0x539   :  { %9208 = vmatmul.mubr.msk.f32.gmra.mrb[168].mxu1 %vm4224_vm4, %v12913_v55 }
 0x53a   :  { %9210 = vmatprep.mubr.msk.f32.mxu1 %vm4224_vm4, %v12919_v41 }
 0x53d   :  { %9211 = vmatmul.mubr.msk.f32.gmra.mrb[170].mxu1 %vm4224_vm4, %v12921_v7 }
 0x53e   :  { %9213 = vmatprep.mubr.msk.f32.mxu1 %vm4224_vm4, %v12927_v33 }
 0x541   :  { %9214 = vmatmul.mubr.msk.f32.gmra.mrb[172].mxu1 %vm4224_vm4, %v12929_v1 }
 0x542   :  { %9216 = vmatprep.mubr.msk.f32.mxu1 %vm4224_vm4, %v12935_v22 }
 0x545   :  { %9217 = vmatmul.mubr.msk.f32.gmra.mrb[174].mxu1 %vm4224_vm4, %v12937_v57 }
 0x546   :  { %9235 = vmatprep.mubr.msk.f32.mxu1 %vm4224_vm4, %v12844_v5  ;;  %v7244_v5 = vld [vmem:[%s13595_s4 + $0xf0] sm:$0xff] }
 0x549   :  { %9236 = vmatmul.mubr.msk.f32.vlgmr.msra.gmra.mrb[144].mxu1 %vm4224_vm4, %v12848_v36  ;;  %v9707_v36 = vpack.c.bf16 %v7245_v45, %v7244_v5  ;;  %v5893_v5 = vld [vmem:[%s13597_s7 + $0x20] sm:$0xff]  ;;  %v5894_v45 = vld [vmem:[%s13597_s7 + $0x28] sm:$0xff] }
 0x54a   :  { %9238 = vmatprep.mubr.msk.f32.mxu1 %vm4224_vm4, %v12855_v31  ;;  %9698 = vmatpush3.bf16.msra.mxu1 %v9695_v49  ;;  %v7279_v31 = vld [vmem:[%s13595_s4 + $0x100] sm:$0xff] }
 0x54b   :  { %9700 = vmatprep.subr.bf16.mxu1 %v9699_v13 }
 0x54d   :  { %9239 = vmatmul.mubr.msk.f32.gmra.mrb[146].mxu1 %vm4224_vm4, %v12857_v28  ;;  %v9713_v28 = vpack.c.bf16 %v7280_v62, %v7279_v31 }
 0x54e   :  { %9241 = vmatprep.mubr.msk.f32.mxu1 %vm4224_vm4, %v12863_v61  ;;  %9702 = vmatpush3.bf16.msra.mxu1 %v9699_v13 }
 0x54f   :  { %9704 = vmatprep.subr.bf16.mxu1 %v9703_v4 }
 0x551   :  { %9242 = vmatmul.mubr.msk.f32.gmra.mrb[148].mxu1 %vm4224_vm4, %v12865_v50 }
 0x552   :  { %9244 = vmatprep.mubr.msk.f32.mxu1 %vm4224_vm4, %v12871_v51  ;;  %9706 = vmatpush3.bf16.msra.mxu1 %v9703_v4 }
 0x553   :  { %9709 = vmatprep.subr.msk.bf16.mxu1 %vm10528_vm3, %v9707_v36 }
 0x555   :  { %9245 = vmatmul.mubr.msk.f32.gmra.mrb[150].mxu1 %vm4224_vm4, %v12873_v8 }
 0x556   :  { %9247 = vmatprep.mubr.msk.f32.mxu1 %vm4224_vm4, %v12879_v17  ;;  %9712 = vmatpush3.bf16.msk.msra.mxu1 %vm10528_vm3, %v9707_v36 }
 0x557   :  { %9714 = vmatprep.subr.bf16.mxu1 %v9713_v28 }
 0x559   :  { %9248 = vmatmul.mubr.msk.f32.gmra.mrb[152].mxu1 %vm4224_vm4, %v12881_v53 }
 0x55a   :  { %9250 = vmatprep.mubr.msk.f32.mxu1 %vm4224_vm4, %v12887_v0 }
 0x55d   :  { %9251 = vmatmul.mubr.msk.f32.gmra.mrb[154].mxu1 %vm4224_vm4, %v12889_v21 }
 0x55e   :  { %9253 = vmatprep.mubr.msk.f32.mxu1 %vm4224_vm4, %v12895_v40 }
 0x561   :  { %9254 = vmatmul.mubr.msk.f32.gmra.mrb[156].mxu1 %vm4224_vm4, %v12897_v38 }
 0x562   :  { %9256 = vmatprep.mubr.msk.f32.mxu1 %vm4224_vm4, %v12903_v11 }
 0x565   :  { %9257 = vmatmul.mubr.msk.f32.gmra.mrb[158].mxu1 %vm4224_vm4, %v12905_v2 }
 0x566   :  { %9259 = vmatprep.mubr.msk.f32.mxu1 %vm4224_vm4, %v12911_v25 }
 0x569   :  { %9260 = vmatmul.mubr.msk.f32.gmra.mrb[160].mxu1 %vm4224_vm4, %v12913_v55 }
 0x56a   :  { %9262 = vmatprep.mubr.msk.f32.mxu1 %vm4224_vm4, %v12919_v41 }
 0x56d   :  { %9263 = vmatmul.mubr.msk.f32.gmra.mrb[162].mxu1 %vm4224_vm4, %v12921_v7 }
 0x56e   :  { %9265 = vmatprep.mubr.msk.f32.mxu1 %vm4224_vm4, %v12927_v33 }
 0x571   :  { %9266 = vmatmul.mubr.msk.f32.gmra.mrb[164].mxu1 %vm4224_vm4, %v12929_v1 }
 0x572   :  { %9268 = vmatprep.mubr.msk.f32.mxu1 %vm4224_vm4, %v12935_v22 }
 0x575   :  { %9269 = vmatmul.mubr.msk.f32.gmra.mrb[166].mxu1 %vm4224_vm4, %v12937_v57 }
 0x576   :  { %9271 = vmatprep.mubr.msk.f32.mxu1 %vm4224_vm4, %v12943_v24 }
 0x579   :  { %9272 = vmatmul.mubr.msk.f32.gmra.mrb[168].mxu1 %vm4224_vm4, %v12945_v26 }
 0x57a   :  { %9274 = vmatprep.mubr.msk.f32.mxu1 %vm4224_vm4, %v12951_v60 }
 0x57d   :  { %9275 = vmatmul.mubr.msk.f32.gmra.mrb[170].mxu1 %vm4224_vm4, %v12953_v39 }
 0x57e   :  { %9277 = vmatprep.mubr.msk.f32.mxu1 %vm4224_vm4, %v13163_v56 }
 0x581   :  { %9278 = vmatmul.mubr.msk.f32.gmra.mrb[172].mxu1 %vm4224_vm4, %v13170_v20 }
 0x582   :  { %9280 = vmatprep.mubr.msk.f32.mxu1 %vm4224_vm4, %v13173_v37 }
 0x585   :  { %9281 = vmatmul.mubr.msk.f32.gmra.mrb[174].mxu1 %vm4224_vm4, %v13180_v10 }
 0x586   :  { %9299 = vmatprep.mubr.msk.f32.mxu1 %vm4224_vm4, %v12863_v61  ;;  %v7285_v61 = vld [vmem:[%s13595_s4 + $0x130] sm:$0xff] }
 0x589   :  { %9300 = vmatmul.mubr.msk.f32.vlgmr.msra.gmra.mrb[144].mxu1 %vm4224_vm4, %v12865_v50  ;;  %v9725_v50 = vpack.c.bf16 %v7286_v42, %v7285_v61 }
 0x58a   :  { %9302 = vmatprep.mubr.msk.f32.mxu1 %vm4224_vm4, %v12871_v51  ;;  %9716 = vmatpush3.bf16.msra.mxu1 %v9713_v28  ;;  %v5687_v51 = vld [vmem:[%s13596_s6] sm:$0xff] }
 0x58b   :  { %9718 = vmatprep.subr.bf16.mxu1 %v9717_v3 }
 0x58d   :  { %9303 = vmatmul.mubr.msk.f32.gmra.mrb[146].mxu1 %vm4224_vm4, %v12873_v8  ;;  %v9731_v8 = vpack.c.bf16 %v5688_v15, %v5687_v51 }
 0x58e   :  { %9305 = vmatprep.mubr.msk.f32.mxu1 %vm4224_vm4, %v12879_v17  ;;  %9720 = vmatpush3.bf16.msra.mxu1 %v9717_v3 }
 0x58f   :  { %9722 = vmatprep.subr.bf16.mxu1 %v9721_v18 }
 0x591   :  { %9306 = vmatmul.mubr.msk.f32.gmra.mrb[148].mxu1 %vm4224_vm4, %v12881_v53 }
 0x592   :  { %9308 = vmatprep.mubr.msk.f32.mxu1 %vm4224_vm4, %v12887_v0  ;;  %9724 = vmatpush3.bf16.msra.mxu1 %v9721_v18 }
 0x593   :  { %9727 = vmatprep.subr.msk.bf16.mxu1 %vm10528_vm3, %v9725_v50 }
 0x595   :  { %9309 = vmatmul.mubr.msk.f32.gmra.mrb[150].mxu1 %vm4224_vm4, %v12889_v21 }
 0x596   :  { %9311 = vmatprep.mubr.msk.f32.mxu1 %vm4224_vm4, %v12895_v40  ;;  %9730 = vmatpush3.bf16.msk.msra.mxu1 %vm10528_vm3, %v9725_v50 }
 0x597   :  { %9732 = vmatprep.subr.bf16.mxu1 %v9731_v8 }
 0x599   :  { %9312 = vmatmul.mubr.msk.f32.gmra.mrb[152].mxu1 %vm4224_vm4, %v12897_v38 }
 0x59a   :  { %9314 = vmatprep.mubr.msk.f32.mxu1 %vm4224_vm4, %v12903_v11 }
 0x59d   :  { %9315 = vmatmul.mubr.msk.f32.gmra.mrb[154].mxu1 %vm4224_vm4, %v12905_v2 }
 0x59e   :  { %9317 = vmatprep.mubr.msk.f32.mxu1 %vm4224_vm4, %v12911_v25 }
 0x5a1   :  { %9318 = vmatmul.mubr.msk.f32.gmra.mrb[156].mxu1 %vm4224_vm4, %v12913_v55 }
 0x5a2   :  { %9320 = vmatprep.mubr.msk.f32.mxu1 %vm4224_vm4, %v12919_v41 }
 0x5a5   :  { %9321 = vmatmul.mubr.msk.f32.gmra.mrb[158].mxu1 %vm4224_vm4, %v12921_v7 }
 0x5a6   :  { %9323 = vmatprep.mubr.msk.f32.mxu1 %vm4224_vm4, %v12927_v33 }
 0x5a9   :  { %9324 = vmatmul.mubr.msk.f32.gmra.mrb[160].mxu1 %vm4224_vm4, %v12929_v1 }
 0x5aa   :  { %9326 = vmatprep.mubr.msk.f32.mxu1 %vm4224_vm4, %v12935_v22 }
 0x5ad   :  { %9327 = vmatmul.mubr.msk.f32.gmra.mrb[162].mxu1 %vm4224_vm4, %v12937_v57 }
 0x5ae   :  { %9329 = vmatprep.mubr.msk.f32.mxu1 %vm4224_vm4, %v12943_v24 }
 0x5b1   :  { %9330 = vmatmul.mubr.msk.f32.gmra.mrb[164].mxu1 %vm4224_vm4, %v12945_v26 }
 0x5b2   :  { %9332 = vmatprep.mubr.msk.f32.mxu1 %vm4224_vm4, %v12951_v60 }
 0x5b5   :  { %9333 = vmatmul.mubr.msk.f32.gmra.mrb[166].mxu1 %vm4224_vm4, %v12953_v39 }
 0x5b6   :  { %9335 = vmatprep.mubr.msk.f32.mxu1 %vm4224_vm4, %v13163_v56 }
 0x5b9   :  { %9336 = vmatmul.mubr.msk.f32.gmra.mrb[168].mxu1 %vm4224_vm4, %v13170_v20 }
 0x5ba   :  { %9338 = vmatprep.mubr.msk.f32.mxu1 %vm4224_vm4, %v13173_v37 }
 0x5bd   :  { %9339 = vmatmul.mubr.msk.f32.gmra.mrb[170].mxu1 %vm4224_vm4, %v13180_v10 }
 0x5be   :  { %9341 = vmatprep.mubr.msk.f32.mxu1 %vm4224_vm4, %v4199_v23 }
 0x5c1   :  { %9342 = vmatmul.mubr.msk.f32.gmra.mrb[172].mxu1 %vm4224_vm4, %v4200_v12 }
 0x5c2   :  { %9344 = vmatprep.mubr.msk.f32.mxu1 %vm4224_vm4, %v4201_v43 }
 0x5c5   :  { %9345 = vmatmul.mubr.msk.f32.gmra.mrb[174].mxu1 %vm4224_vm4, %v4202_v34 }
 0x5c6   :  { %9363 = vmatprep.mubr.msk.f32.mxu1 %vm4224_vm4, %v12879_v17  ;;  %v4203_v17 = vmax.f32 %v13048_v30, 0.0 }
 0x5c9   :  { %9364 = vmatmul.mubr.msk.f32.vlgmr.msra.gmra.mrb[144].mxu1 %vm4224_vm4, %v12881_v53  ;;  %v4204_v53 = vmax.f32 %v13046_v27, 0.0  ;;  %v5892_v27 = vld [vmem:[%s13597_s7 + $0x18] sm:$0xff] }
 0x5ca   :  { %9366 = vmatprep.mubr.msk.f32.mxu1 %vm4224_vm4, %v12887_v0  ;;  %9734 = vmatpush3.bf16.msra.mxu1 %v9731_v8  ;;  %v4205_v0 = vmax.f32 %v13056_v58, 0.0  ;;  %v9751_v59 = vpack.c.bf16 %v5892_v27, %v5891_v32 }
 0x5cb   :  { %9736 = vmatprep.subr.bf16.mxu1 %v9735_v54 }
 0x5cd   :  { %9367 = vmatmul.mubr.msk.f32.gmra.mrb[146].mxu1 %vm4224_vm4, %v12889_v21  ;;  %v4206_v21 = vmax.f32 %v13054_v6, 0.0 }
 0x5ce   :  { %9369 = vmatprep.mubr.msk.f32.mxu1 %vm4224_vm4, %v12895_v40  ;;  %9738 = vmatpush3.bf16.msra.mxu1 %v9735_v54  ;;  %v5691_v40 = vld [vmem:[%s13596_s6 + $0x20] sm:$0xff] }
 0x5d1   :  { %9370 = vmatmul.mubr.msk.f32.gmra.mrb[148].mxu1 %vm4224_vm4, %v12897_v38  ;;  %v5692_v38 = vld [vmem:[%s13596_s6 + $0x28] sm:$0xff] }
 0x5d2   :  { %9372 = vmatprep.mubr.msk.f32.mxu1 %vm4224_vm4, %v12903_v11  ;;  %v9739_v11 = vpack.c.bf16 %v5692_v38, %v5691_v40 }
 0x5d4   :  { %9740 = vmatprep.subr.bf16.mxu1 %v9739_v11 }
 0x5d5   :  { %9373 = vmatmul.mubr.msk.f32.gmra.mrb[150].mxu1 %vm4224_vm4, %v12905_v2  ;;  %v5693_v2 = vld [vmem:[%s13596_s6 + $0x30] sm:$0xff] }
 0x5d6   :  { %9375 = vmatprep.mubr.msk.f32.mxu1 %vm4224_vm4, %v12911_v25  ;;  %9742 = vmatpush3.bf16.msra.mxu1 %v9739_v11  ;;  %v5694_v25 = vld [vmem:[%s13596_s6 + $0x38] sm:$0xff] }
 0x5d9   :  { %9376 = vmatmul.mubr.msk.f32.gmra.mrb[152].mxu1 %vm4224_vm4, %v12913_v55  ;;  %v9743_v55 = vpack.c.bf16 %v5694_v25, %v5693_v2 }
 0x5da   :  { %9378 = vmatprep.mubr.msk.f32.mxu1 %vm4224_vm4, %v12919_v41  ;;  %v5889_v41 = vld [vmem:[%s13597_s7] sm:$0xff] }
 0x5db   :  { %9744 = vmatprep.subr.bf16.mxu1 %v9743_v55 }
 0x5dc   :  { %9746 = vmatpush3.bf16.msra.mxu1 %v9743_v55 }
 0x5dd   :  { %9379 = vmatmul.mubr.msk.f32.gmra.mrb[154].mxu1 %vm4224_vm4, %v12921_v7  ;;  %v5890_v7 = vld [vmem:[%s13597_s7 + $0x8] sm:$0xff] }
 0x5de   :  { %9381 = vmatprep.mubr.msk.f32.mxu1 %vm4224_vm4, %v12927_v33  ;;  %v9747_v33 = vpack.c.bf16 %v5890_v7, %v5889_v41 }
 0x5e0   :  { %9748 = vmatprep.subr.bf16.mxu1 %v9747_v33 }
 0x5e1   :  { %9382 = vmatmul.mubr.msk.f32.gmra.mrb[156].mxu1 %vm4224_vm4, %v12929_v1 }
 0x5e2   :  { %9384 = vmatprep.mubr.msk.f32.mxu1 %vm4224_vm4, %v12935_v22 }
 0x5e5   :  { %9385 = vmatmul.mubr.msk.f32.gmra.mrb[158].mxu1 %vm4224_vm4, %v12937_v57 }
 0x5e6   :  { %9387 = vmatprep.mubr.msk.f32.mxu1 %vm4224_vm4, %v12943_v24 }
 0x5e9   :  { %9388 = vmatmul.mubr.msk.f32.gmra.mrb[160].mxu1 %vm4224_vm4, %v12945_v26  ;;  %v13363_v26 = vld [vmem:[%s13598_s5] ss:$0 sm:$0xff] }
 0x5ea   :  { %9390 = vmatprep.mubr.msk.f32.mxu1 %vm4224_vm4, %v12951_v60 }
 0x5ed   :  { %9391 = vmatmul.mubr.msk.f32.gmra.mrb[162].mxu1 %vm4224_vm4, %v12953_v39 }
 0x5ee   :  { %9393 = vmatprep.mubr.msk.f32.mxu1 %vm4224_vm4, %v13163_v56  ;;  %v9755_v56 = vpack.c.bf16 %v5894_v45, %v5893_v5 }
 0x5f1   :  { %9394 = vmatmul.mubr.msk.f32.gmra.mrb[164].mxu1 %vm4224_vm4, %v13170_v20  ;;  %v5895_v20 = vld [vmem:[%s13597_s7 + $0x30] sm:$0xff] }
 0x5f2   :  { %9396 = vmatprep.mubr.msk.f32.mxu1 %vm4224_vm4, %v13173_v37  ;;  %v5896_v37 = vld [vmem:[%s13597_s7 + $0x38] sm:$0xff] }
 0x5f3   :  { %v9759_v47 = vpack.c.bf16 %v5896_v37, %v5895_v20 }
 0x5f5   :  { %9397 = vmatmul.mubr.msk.f32.gmra.mrb[166].mxu1 %vm4224_vm4, %v13180_v10 }
 0x5f6   :  { %9399 = vmatprep.mubr.msk.f32.mxu1 %vm4224_vm4, %v4199_v23 }
 0x5f9   :  { %9400 = vmatmul.mubr.msk.f32.gmra.mrb[168].mxu1 %vm4224_vm4, %v4200_v12 }
 0x5fa   :  { %9402 = vmatprep.mubr.msk.f32.mxu1 %vm4224_vm4, %v4201_v43 }
 0x5fd   :  { %9403 = vmatmul.mubr.msk.f32.gmra.mrb[170].mxu1 %vm4224_vm4, %v4202_v34 }
 0x5fe   :  { %9405 = vmatprep.mubr.msk.f32.mxu1 %vm4224_vm4, %v4203_v17 }
 0x601   :  { %9406 = vmatmul.mubr.msk.f32.gmra.mrb[172].mxu1 %vm4224_vm4, %v4204_v53 }
 0x602   :  { %9408 = vmatprep.mubr.msk.f32.mxu1 %vm4224_vm4, %v4205_v0 }
 0x605   :  { %9409 = vmatmul.mubr.msk.f32.gmra.mrb[174].mxu1 %vm4224_vm4, %v4206_v21 }
 0x69c   :  { %v9365_v1 = vpop.f32.mrb[144].mxu1 }
 0x69d   :  { %v5441_v22 = vpop.f32.mrb[145].mxu1  ;;  %v5640_v39 = vadd.f32 %v9365_v1, %v13363_v26 }
 0x69e   :  { %v5639_v44 = vadd.f32 %v13363_v26, %v5441_v22 }
 0x6a0   :  { %v9368_v57 = vpop.f32.mrb[146].mxu1 }
 0x6a1   :  { %v5451_v24 = vpop.f32.mrb[147].mxu1  ;;  %v5642_v35 = vadd.f32 %v9368_v57, %v13363_v26 }
 0x6a2   :  { %v5641_v9 = vadd.f32 %v13363_v26, %v5451_v24 }
 0x6a4   :  { %v9371_v60 = vpop.f32.mrb[148].mxu1 }
 0x6a5   :  { %v5644_v49 = vadd.f32 %v9371_v60, %v13363_v26  ;;  %v5461_v19 = vpop.f32.mrb[149].mxu1 }
 0x6a6   :  { %v5643_v14 = vadd.f32 %v13363_v26, %v5461_v19 }
 0x6a7   :  { %v13375_v30 = vmax.f32 %v5640_v39, %v5644_v49 }
 0x6a8   :  { %v13377_v6 = vmax.f32 %v5639_v44, %v5643_v14  ;;  %v9374_v58 = vpop.f32.mrb[150].mxu1 }
 0x6a9   :  { %v5646_v16 = vadd.f32 %v9374_v58, %v13363_v26  ;;  %v5471_v13 = vpop.f32.mrb[151].mxu1 }
 0x6aa   :  { %v5645_v4 = vadd.f32 %v13363_v26, %v5471_v13  ;;  %9427 = vmatprep.mubr.msk.f32.mxu1 %vm5695_vm5, %v13377_v6 }
 0x6ab   :  { %v13391_v36 = vmax.f32 %v5642_v35, %v5646_v16  ;;  %9428 = vmatmul.mubr.msk.f32.vlgmr.msra.gmra.mrb[176].mxu1 %vm5695_vm5, %v13375_v30 }
 0x6ac   :  { %v13395_v31 = vmax.f32 %v5641_v9, %v5645_v4  ;;  %v9377_v62 = vpop.f32.mrb[152].mxu1  ;;  %9750 = vmatpush3.bf16.msra.mxu1 %v9747_v33 }
 0x6ad   :  { %v5481_v28 = vpop.f32.mrb[153].mxu1  ;;  %9752 = vmatprep.subr.bf16.mxu1 %v9751_v59  ;;  %v5648_v63 = vadd.f32 %v9377_v62, %v13363_v26 }
 0x6ae   :  { %9430 = vmatprep.mubr.msk.f32.mxu1 %vm5695_vm5, %v13395_v31  ;;  %v5647_v61 = vadd.f32 %v13363_v26, %v5481_v28 }
 0x6af   :  { %9431 = vmatmul.mubr.msk.f32.gmra.mrb[178].mxu1 %vm5695_vm5, %v13391_v36 }
 0x6b0   :  { %v9380_v10 = vpop.f32.mrb[154].mxu1  ;;  %9754 = vmatpush3.bf16.msra.mxu1 %v9751_v59 }
 0x6b1   :  { %v5491_v48 = vpop.f32.mrb[155].mxu1  ;;  %9756 = vmatprep.subr.bf16.mxu1 %v9755_v56  ;;  %v5650_v8 = vadd.f32 %v9380_v10, %v13363_v26 }
 0x6b2   :  { %v5649_v43 = vadd.f32 %v13363_v26, %v5491_v48  ;;  %v6074_v48 = vld [vmem:[%s13599_s8] sm:$0xff] }
 0x6b4   :  { %v9383_v3 = vpop.f32.mrb[156].mxu1  ;;  %9758 = vmatpush3.bf16.msra.mxu1 %v9755_v56 }
 0x6b5   :  { %v5652_v29 = vadd.f32 %v9383_v3, %v13363_v26  ;;  %v5501_v18 = vpop.f32.mrb[157].mxu1  ;;  %9760 = vmatprep.subr.bf16.mxu1 %v9759_v47 }
 0x6b6   :  { %v5651_v42 = vadd.f32 %v13363_v26, %v5501_v18 }
 0x6b7   :  { %v13411_v50 = vmax.f32 %v5648_v63, %v5652_v29 }
 0x6b8   :  { %v13413_v51 = vmax.f32 %v5647_v61, %v5651_v42  ;;  %v9386_v15 = vpop.f32.mrb[158].mxu1  ;;  %9762 = vmatpush3.bf16.msra.mxu1 %v9759_v47  ;;  %v6075_v47 = vld [vmem:[%s13599_s8 + $0x8] sm:$0xff] }
 0x6b9   :  { %v5654_v23 = vadd.f32 %v9386_v15, %v13363_v26  ;;  %v5511_v12 = vpop.f32.mrb[159].mxu1  ;;  %v9771_v3 = vpack.c.bf16 %v6075_v47, %v6074_v48 }
 0x6ba   :  { %v5653_v34 = vadd.f32 %v13363_v26, %v5511_v12  ;;  %9433 = vmatprep.mubr.msk.f32.mxu1 %vm5695_vm5, %v13413_v51 }
 0x6bb   :  { %v5678_v46 = vmax.f32 %v5650_v8, %v5654_v23  ;;  %9434 = vmatmul.mubr.msk.f32.gmra.mrb[180].mxu1 %vm5695_vm5, %v13411_v50 }
 0x6bc   :  { %v5677_v52 = vmax.f32 %v5649_v43, %v5653_v34  ;;  %v9389_v54 = vpop.f32.mrb[160].mxu1 }
 0x6bd   :  { %v5521_v17 = vpop.f32.mrb[161].mxu1  ;;  %v5656_v40 = vadd.f32 %v9389_v54, %v13363_v26 }
 0x6be   :  { %9436 = vmatprep.mubr.msk.f32.mxu1 %vm5695_vm5, %v5677_v52  ;;  %v5655_v2 = vadd.f32 %v13363_v26, %v5521_v17 }
 0x6bf   :  { %9437 = vmatmul.mubr.msk.f32.gmra.mrb[182].mxu1 %vm5695_vm5, %v5678_v46 }
 0x6c0   :  { %v9392_v53 = vpop.f32.mrb[162].mxu1 }
 0x6c1   :  { %v5531_v0 = vpop.f32.mrb[163].mxu1  ;;  %v5658_v33 = vadd.f32 %v9392_v53, %v13363_v26 }
 0x6c2   :  { %v5657_v57 = vadd.f32 %v13363_v26, %v5531_v0 }
 0x6c4   :  { %v9395_v21 = vpop.f32.mrb[164].mxu1 }
 0x6c5   :  { %v5660_v38 = vadd.f32 %v9395_v21, %v13363_v26  ;;  %v5541_v11 = vpop.f32.mrb[165].mxu1 }
 0x6c6   :  { %v5659_v25 = vadd.f32 %v13363_v26, %v5541_v11 }
 0x6c7   :  { %v5680_v55 = vmax.f32 %v5656_v40, %v5660_v38 }
 0x6c8   :  { %v5679_v41 = vmax.f32 %v5655_v2, %v5659_v25  ;;  %v9398_v7 = vpop.f32.mrb[166].mxu1 }
 0x6c9   :  { %v5662_v1 = vadd.f32 %v9398_v7, %v13363_v26  ;;  %v5551_v22 = vpop.f32.mrb[167].mxu1 }
 0x6ca   :  { %v5661_v24 = vadd.f32 %v13363_v26, %v5551_v22  ;;  %9439 = vmatprep.mubr.msk.f32.mxu1 %vm5695_vm5, %v5679_v41 }
 0x6cb   :  { %v5682_v60 = vmax.f32 %v5658_v33, %v5662_v1  ;;  %9440 = vmatmul.mubr.msk.f32.gmra.mrb[184].mxu1 %vm5695_vm5, %v5680_v55  ;;  %v6076_v33 = vld [vmem:[%s13599_s8 + $0x10] sm:$0xff]  ;;  %v6077_v1 = vld [vmem:[%s13599_s8 + $0x18] sm:$0xff] }
 0x6cc   :  { %v5681_v39 = vmax.f32 %v5657_v57, %v5661_v24  ;;  %v9401_v49 = vpop.f32.mrb[168].mxu1 }
 0x6cd   :  { %v5561_v19 = vpop.f32.mrb[169].mxu1  ;;  %v5664_v27 = vadd.f32 %v9401_v49, %v13363_v26  ;;  %v9775_v49 = vpack.c.bf16 %v6077_v1, %v6076_v33 }
 0x6ce   :  { %9442 = vmatprep.mubr.msk.f32.mxu1 %vm5695_vm5, %v5681_v39  ;;  %v5663_v16 = vadd.f32 %v13363_v26, %v5561_v19 }
 0x6cf   :  { %9443 = vmatmul.mubr.msk.f32.gmra.mrb[186].mxu1 %vm5695_vm5, %v5682_v60 }
 0x6d0   :  { %v9404_v44 = vpop.f32.mrb[170].mxu1 }
 0x6d1   :  { %v5571_v14 = vpop.f32.mrb[171].mxu1  ;;  %v5666_v5 = vadd.f32 %v9404_v44, %v13363_v26  ;;  %v6277_v44 = vld [vmem:[%s13599_s8 + $0x40] sm:$0xff] }
 0x6d2   :  { %v5665_v28 = vadd.f32 %v13363_v26, %v5571_v14  ;;  %v6278_v14 = vld [vmem:[%s13599_s8 + $0x48] sm:$0xff] }
 0x6d4   :  { %v9407_v32 = vpop.f32.mrb[172].mxu1 }
 0x6d5   :  { %v5668_v58 = vadd.f32 %v9407_v32, %v13363_v26  ;;  %v5581_v35 = vpop.f32.mrb[173].mxu1 }
 0x6d6   :  { %v5667_v13 = vadd.f32 %v13363_v26, %v5581_v35 }
 0x6d7   :  { %v5684_v59 = vmax.f32 %v5664_v27, %v5668_v58 }
 0x6d8   :  { %v5683_v9 = vmax.f32 %v5663_v16, %v5667_v13  ;;  %v9410_v4 = vpop.f32.mrb[174].mxu1  ;;  %v9779_v13 = vpack.c.bf16 %v6278_v14, %v6277_v44 }
 0x6d9   :  { %v5670_v45 = vadd.f32 %v9410_v4, %v13363_v26  ;;  %v5591_v62 = vpop.f32.mrb[175].mxu1  ;;  %v6279_v4 = vld [vmem:[%s13599_s8 + $0x50] sm:$0xff] }
 0x6da   :  { %v5669_v56 = vadd.f32 %v13363_v26, %v5591_v62  ;;  %9445 = vmatprep.mubr.msk.f32.mxu1 %vm5695_vm5, %v5683_v9  ;;  %v6078_v26 = vld [vmem:[%s13599_s8 + $0x20] sm:$0xff] }
 0x6db   :  { %v5686_v20 = vmax.f32 %v5666_v5, %v5670_v45  ;;  %9446 = vmatmul.mubr.msk.f32.gmra.mrb[188].mxu1 %vm5695_vm5, %v5684_v59  ;;  %v6280_v5 = vld [vmem:[%s13599_s8 + $0x58] sm:$0xff] }
 0x6dc   :  { %v5685_v37 = vmax.f32 %v5665_v28, %v5669_v56 }
 0x6de   :  { %9448 = vmatprep.mubr.msk.f32.mxu1 %vm5695_vm5, %v5685_v37 }
 0x6df   :  { %9449 = vmatmul.mubr.msk.f32.gmra.mrb[190].mxu1 %vm5695_vm5, %v5686_v20 }
 0x6e0   :  { %9467 = vmatprep.mubr.msk.f32.mxu1 %vm5695_vm5, %v13377_v6 }
 0x6e3   :  { %9468 = vmatmul.mubr.msk.f32.vlgmr.msra.gmra.mrb[192].mxu1 %vm5695_vm5, %v13375_v30  ;;  %v6079_v30 = vld [vmem:[%s13599_s8 + $0x28] sm:$0xff] }
 0x6e4   :  { %9470 = vmatprep.mubr.msk.f32.mxu1 %vm5695_vm5, %v13395_v31  ;;  %v9763_v6 = vpack.c.bf16 %v6079_v30, %v6078_v26  ;;  %v6081_v31 = vld [vmem:[%s13599_s8 + $0x38] sm:$0xff]  ;;  %v6382_v30 = vld [vmem:[%s13599_s8 + $0x60] sm:$0xff] }
 0x6e6   :  { %9764 = vmatprep.subr.bf16.mxu1 %v9763_v6 }
 0x6e7   :  { %9471 = vmatmul.mubr.msk.f32.gmra.mrb[194].mxu1 %vm5695_vm5, %v13391_v36  ;;  %v6080_v36 = vld [vmem:[%s13599_s8 + $0x30] sm:$0xff] }
 0x6e8   :  { %9473 = vmatprep.mubr.msk.f32.mxu1 %vm5695_vm5, %v13413_v51  ;;  %9766 = vmatpush3.bf16.msra.mxu1 %v9763_v6  ;;  %v9767_v10 = vpack.c.bf16 %v6081_v31, %v6080_v36  ;;  %v6383_v6 = vld [vmem:[%s13599_s8 + $0x68] sm:$0xff] }
 0x6e9   :  { %v9787_v47 = vpack.c.bf16 %v6383_v6, %v6382_v30 }
 0x6ea   :  { %9768 = vmatprep.subr.bf16.mxu1 %v9767_v10 }
 0x6eb   :  { %9474 = vmatmul.mubr.msk.f32.gmra.mrb[196].mxu1 %vm5695_vm5, %v13411_v50 }
 0x6ec   :  { %9476 = vmatprep.mubr.msk.f32.mxu1 %vm5695_vm5, %v5677_v52  ;;  %9770 = vmatpush3.bf16.msra.mxu1 %v9767_v10 }
 0x6ed   :  { %9772 = vmatprep.subr.bf16.mxu1 %v9771_v3 }
 0x6ef   :  { %9477 = vmatmul.mubr.msk.f32.gmra.mrb[198].mxu1 %vm5695_vm5, %v5678_v46 }
 0x6f0   :  { %9479 = vmatprep.mubr.msk.f32.mxu1 %vm5695_vm5, %v5679_v41 }
 0x6f3   :  { %9480 = vmatmul.mubr.msk.f32.gmra.mrb[200].mxu1 %vm5695_vm5, %v5680_v55 }
 0x6f4   :  { %9482 = vmatprep.mubr.msk.f32.mxu1 %vm5695_vm5, %v5681_v39 }
 0x6f7   :  { %9483 = vmatmul.mubr.msk.f32.gmra.mrb[202].mxu1 %vm5695_vm5, %v5682_v60 }
 0x6f8   :  { %9485 = vmatprep.mubr.msk.f32.mxu1 %vm5695_vm5, %v5683_v9 }
 0x6fb   :  { %9486 = vmatmul.mubr.msk.f32.gmra.mrb[204].mxu1 %vm5695_vm5, %v5684_v59 }
 0x6fc   :  { %9488 = vmatprep.mubr.msk.f32.mxu1 %vm5695_vm5, %v5685_v37 }
 0x6ff   :  { %9489 = vmatmul.mubr.msk.f32.gmra.mrb[206].mxu1 %vm5695_vm5, %v5686_v20  ;;  %v9783_v20 = vpack.c.bf16 %v6280_v5, %v6279_v4 }
 0x77e   :  { %v9429_v63 = vpop.f32.mrb[176].mxu1 }
 0x77f   :  { %v5810_v29 = vpop.f32.mrb[177].mxu1 }
 0x782   :  { %v13489_v18 = vpop.f32.mrb[178].mxu1 }
 0x783   :  { %v5820_v61 = vpop.f32.mrb[179].mxu1 }
 0x78e   :  { %v9435_v42 = vpop.f32.mrb[180].mxu1 }
 0x78f   :  { %v5830_v50 = vpop.f32.mrb[181].mxu1 }
 0x792   :  { %v9438_v51 = vpop.f32.mrb[182].mxu1 }
 0x793   :  { %v5840_v15 = vpop.f32.mrb[183].mxu1 }
 0x79e   :  { %v13491_v8 = vpop.f32.mrb[184].mxu1 }
 0x79f   :  { %v13493_v23 = vpop.f32.mrb[185].mxu1 }
 0x7a2   :  { %v13495_v12 = vpop.f32.mrb[186].mxu1 }
 0x7a3   :  { %v13497_v43 = vpop.f32.mrb[187].mxu1 }
 0x7ae   :  { %v13499_v34 = vpop.f32.mrb[188].mxu1 }
 0x7af   :  { %v13501_v46 = vpop.f32.mrb[189].mxu1 }
 0x7b2   :  { %v13503_v52 = vpop.f32.mrb[190].mxu1 }
 0x7b3   :  { %v13505_v54 = vpop.f32.mrb[191].mxu1 }
 0x7b6   :  { %v9469_v17 = vpop.f32.mrb[192].mxu1 }
 0x7b7   :  { %v6043_v53 = vmax.f32 %v9429_v63, %v9469_v17  ;;  %v5963_v0 = vpop.f32.mrb[193].mxu1 }
 0x7b8   :  { %v6042_v21 = vmax.f32 %v5810_v29, %v5963_v0  ;;  %v6384_v29 = vld [vmem:[%s13599_s8 + $0x70] sm:$0xff] }
 0x7b9   :  { %v6059_v62 = vmax.f32 %v6043_v53, 0.0  ;;  %v6504_v0 = vld [vmem:[%s13600_s10 + $0x10] sm:$0xf] }
 0x7ba   :  { %v9472_v40 = vpop.f32.mrb[194].mxu1  ;;  %v6058_v59 = vmax.f32 %v6042_v21, 0.0  ;;  %v7369_v21 = vld [vmem:[%s13601_s9] ss:$0 sm:$0xff] }
 0x7bb   :  { %v6045_v38 = vmax.f32 %v13489_v18, %v9472_v40  ;;  %v5973_v11 = vpop.f32.mrb[195].mxu1  ;;  %v6385_v18 = vld [vmem:[%s13599_s8 + $0x78] sm:$0xff] }
 0x7bc   :  { %v6044_v2 = vmax.f32 %v5820_v61, %v5973_v11 }
 0x7bd   :  { %v6061_v31 = vmax.f32 %v6045_v38, 0.0 }
 0x7be   :  { %v9475_v25 = vpop.f32.mrb[196].mxu1  ;;  %v6060_v37 = vmax.f32 %v6044_v2, 0.0 }
 0x7bf   :  { %v6047_v55 = vmax.f32 %v9435_v42, %v9475_v25  ;;  %v5983_v41 = vpop.f32.mrb[197].mxu1 }
 0x7c0   :  { %v6046_v7 = vmax.f32 %v5830_v50, %v5983_v41 }
 0x7c1   :  { %v6063_v24 = vmax.f32 %v6047_v55, 0.0 }
 0x7c2   :  { %v6062_v22 = vmax.f32 %v6046_v7, 0.0  ;;  %v9478_v57 = vpop.f32.mrb[198].mxu1 }
 0x7c3   :  { %v6049_v60 = vmax.f32 %v9438_v51, %v9478_v57  ;;  %v5993_v39 = vpop.f32.mrb[199].mxu1 }
 0x7c4   :  { %v6048_v19 = vmax.f32 %v5840_v15, %v5993_v39  ;;  %9499 = vmatprep.mubr.msk.f32.mxu1 %vm6082_vm6, %v6062_v22  ;;  %v9791_v15 = vpack.c.bf16 %v6385_v18, %v6384_v29 }
 0x7c5   :  { %9500 = vmatmul.mubr.msk.f32.vlgmr.msra.gmra.mrb[208].mxu1 %vm6082_vm6, %v6063_v24  ;;  %v6065_v58 = vmax.f32 %v6049_v60, 0.0  ;;  %v7370_v24 = vld [vmem:[%s13602_s11] ss:$0 sm:$0xff] }
 0x7c6   :  { %v6064_v32 = vmax.f32 %v6048_v19, 0.0  ;;  %v9481_v27 = vpop.f32.mrb[200].mxu1  ;;  %9774 = vmatpush3.bf16.msra.mxu1 %v9771_v3 }
 0x7c7   :  { %v6051_v35 = vmax.f32 %v13491_v8, %v9481_v27  ;;  %v6003_v16 = vpop.f32.mrb[201].mxu1  ;;  %9776 = vmatprep.subr.bf16.mxu1 %v9775_v49 }
 0x7c8   :  { %v6050_v9 = vmax.f32 %v13493_v23, %v6003_v16  ;;  %9502 = vmatprep.mubr.msk.f32.mxu1 %vm6082_vm6, %v6064_v32 }
 0x7c9   :  { %9503 = vmatmul.mubr.msk.f32.gmra.mrb[210].mxu1 %vm6082_vm6, %v6065_v58  ;;  %v6067_v42 = vmax.f32 %v6051_v35, 0.0 }
 0x7ca   :  { %v9484_v45 = vpop.f32.mrb[202].mxu1  ;;  %9778 = vmatpush3.bf16.msra.mxu1 %v9775_v49  ;;  %9513 = vmatprep.mubr.msk.f32.mxu1 %vm6082_vm6, %v6058_v59  ;;  %v6066_v3 = vmax.f32 %v6050_v9, 0.0 }
 0x7cb   :  { %v6053_v28 = vmax.f32 %v13495_v12, %v9484_v45  ;;  %v6013_v56 = vpop.f32.mrb[203].mxu1  ;;  %9780 = vmatprep.subr.bf16.mxu1 %v9779_v13  ;;  %v6502_v12 = vld [vmem:[%s13600_s10] sm:$0xff] }
 0x7cc   :  { %v6052_v26 = vmax.f32 %v13497_v43, %v6013_v56  ;;  %v6503_v43 = vld [vmem:[%s13600_s10 + $0x8] sm:$0xff] }
 0x7cd   :  { %9514 = vmatmul.mubr.msk.f32.vlgmr.msra.gmra.mrb[208].mxu1 %vm6082_vm6, %v6059_v62 }
 0x7ce   :  { %v9487_v36 = vpop.f32.mrb[204].mxu1  ;;  %9516 = vmatprep.mubr.msk.f32.mxu1 %vm6082_vm6, %v6060_v37  ;;  %9782 = vmatpush3.bf16.msra.mxu1 %v9779_v13  ;;  %v6068_v8 = vmax.f32 %v6052_v26, 0.0 }
 0x7cf   :  { %v6055_v10 = vmax.f32 %v13499_v34, %v9487_v36  ;;  %v6023_v48 = vpop.f32.mrb[205].mxu1  ;;  %9784 = vmatprep.subr.bf16.mxu1 %v9783_v20  ;;  %v6069_v34 = vmax.f32 %v6053_v28, 0.0 }
 0x7d0   :  { %v6054_v63 = vmax.f32 %v13501_v46, %v6023_v48  ;;  %v9795_v46 = vpack.c.bf16 %v6503_v43, %v6502_v12 }
 0x7d1   :  { %9517 = vmatmul.mubr.msk.f32.gmra.mrb[210].mxu1 %vm6082_vm6, %v6061_v31 }
 0x7d2   :  { %v9490_v61 = vpop.f32.mrb[206].mxu1  ;;  %9786 = vmatpush3.bf16.msra.mxu1 %v9783_v20  ;;  %9527 = vmatprep.mubr.msk.f32.mxu1 %vm6082_vm6, %v6066_v3 }
 0x7d3   :  { %v6057_v50 = vmax.f32 %v13503_v52, %v9490_v61  ;;  %v6033_v51 = vpop.f32.mrb[207].mxu1  ;;  %9788 = vmatprep.subr.bf16.mxu1 %v9787_v47  ;;  %v6070_v52 = vmax.f32 %v6054_v63, 0.0 }
 0x7d4   :  { %v6056_v23 = vmax.f32 %v13505_v54, %v6033_v51  ;;  %v6071_v54 = vmax.f32 %v6055_v10, 0.0 }
 0x7d5   :  { %9528 = vmatmul.mubr.msk.f32.vlgmr.msra.gmra.mrb[208].mxu1 %vm6082_vm6, %v6067_v42  ;;  %v6073_v53 = vmax.f32 %v6057_v50, 0.0 }
 0x7d6   :  { %9530 = vmatprep.mubr.msk.f32.mxu1 %vm6082_vm6, %v6068_v8  ;;  %9790 = vmatpush3.bf16.msra.mxu1 %v9787_v47  ;;  %v6072_v17 = vmax.f32 %v6056_v23, 0.0 }
 0x7d7   :  { %9792 = vmatprep.subr.bf16.mxu1 %v9791_v15 }
 0x7d9   :  { %9531 = vmatmul.mubr.msk.f32.gmra.mrb[210].mxu1 %vm6082_vm6, %v6069_v34 }
 0x7da   :  { %9794 = vmatpush3.bf16.msra.mxu1 %v9791_v15  ;;  %9541 = vmatprep.mubr.msk.f32.mxu1 %vm6082_vm6, %v6070_v52 }
 0x7db   :  { %9796 = vmatprep.subr.bf16.mxu1 %v9795_v46 }
 0x7dd   :  { %9542 = vmatmul.mubr.msk.f32.vlgmr.msra.gmra.mrb[208].mxu1 %vm6082_vm6, %v6071_v54 }
 0x7de   :  { %9544 = vmatprep.mubr.msk.f32.mxu1 %vm6082_vm6, %v6072_v17  ;;  %9798 = vmatpush3.bf16.msra.mxu1 %v9795_v46 }
 0x7df   :  { %9551 = vmatprep.subr.msk.mxu1 %vm451_vm0, %v6504_v0 }
 0x7e1   :  { %9545 = vmatmul.mubr.msk.f32.gmra.mrb[210].mxu1 %vm6082_vm6, %v6073_v53 }
 0x7e2   :  { %9552 = vmatpush3.msk.msra.mxu1 %vm451_vm0, %v6504_v0 }
 0x8b0   :  { %v9543_v40 = vpop.f32.mrb[208].mxu1 }
 0x8b1   :  { %v6495_v38 = vadd.f32 %v9543_v40, %v7369_v21  ;;  %v6464_v11 = vpop.f32.mrb[209].mxu1 }
 0x8b2   :  { %v6494_v2 = vadd.f32 %v7369_v21, %v6464_v11 }
 0x8b3   :  { %v6499_v41 = vmax.f32 %v6495_v38, 0.0 }
 0x8b4   :  { %v6498_v25 = vmax.f32 %v6494_v2, 0.0  ;;  %v9546_v55 = vpop.f32.mrb[210].mxu1 }
 0x8b5   :  { %v6497_v7 = vadd.f32 %v9546_v55, %v7369_v21  ;;  %v6474_v33 = vpop.f32.mrb[211].mxu1 }
 0x8b6   :  { %v6496_v1 = vadd.f32 %v7369_v21, %v6474_v33  ;;  %9553 = vmatprep.mubr.msk.f32.mxu1 %vm6512_vm7, %v6498_v25 }
 0x8b7   :  { %9554 = vmatmul.mubr.msk.f32.vlgmr.msra.gmra.mrb[212].mxu1 %vm6512_vm7, %v6499_v41  ;;  %v6501_v57 = vmax.f32 %v6497_v7, 0.0 }
 0x8b8   :  { %v6500_v22 = vmax.f32 %v6496_v1, 0.0 }
 0x8ba   :  { %9556 = vmatprep.mubr.msk.f32.mxu1 %vm6512_vm7, %v6500_v22 }
 0x8bb   :  { %9557 = vmatmul.mubr.msk.f32.gmra.mrb[214].mxu1 %vm6512_vm7, %v6501_v57 }
 0x98a   :  { %v9555_v60 = vpop.f32.mrb[212].mxu1 }
 0x98b   :  { %v6600_v39 = vadd.f32 %v9555_v60, %v7370_v24  ;;  %v6594_v49 = vpop.f32.mrb[213].mxu1 }
 0x98c   :  { %v6595_v19 = vadd.f32 %v7370_v24, %v6594_v49 }
 0x98d   :  { %6614 = vst [vmem:[%s13603_s12 + $0x8] sm:$0xff] %v6600_v39 }
 0x98e   :  { %6613 = vst [vmem:[%s13603_s12] sm:$0xff] %v6595_v19  ;;  %v9558_v44 = vpop.f32.mrb[214].mxu1 }
 0x98f   :  { %v6610_v14 = vadd.f32 %v9558_v44, %v7370_v24  ;;  %v6604_v32 = vpop.f32.mrb[215].mxu1 }
 0x990   :  { %v6605_v27 = vadd.f32 %v7370_v24, %v6604_v32 }
 0x991   :  { %6616 = vst [vmem:[%s13603_s12 + $0x18] sm:$0xff] %v6610_v14 }
 0x992   :  { %6615 = vst [vmem:[%s13603_s12 + $0x10] sm:$0xff] %v6605_v27 }

</bundles_post_ra>
